<compile_context>
chip_gen: v5e
topology: v5e:2x2
jax: 0.10.0
libtpu: 0.0.40
codegen_flags: <defaults>
</compile_context>

<pallas_src>
import jax
import jax.numpy as jnp
from jax.experimental import pallas as pl
from jax.experimental.pallas import tpu as pltpu

HIDDEN = 32
N_HIDDEN_LAYERS = 4  # fc2..fc5


def pinn_kernel(x_ref, w1_ref, b1_ref, ws_ref, bs_ref, w6_ref, b6_ref, o_ref):
    """Whole 6-layer MLP forward for one batch tile, entirely in VMEM."""
    x = x_ref[...]                                       # (1, tm)

    # fc1: in_features=1, so the "matmul" is an outer product -> VPU broadcast mul.
    h = jnp.tanh(w1_ref[...] * x + b1_ref[...])          # (32,1)*(1,tm) -> (32, tm)

    # fc2..fc5: (32,32) @ (32,tm) on the MXU; batch sits on the wide MXU N axis.
    for i in range(N_HIDDEN_LAYERS):                     # static unroll (4 layers)
        h = jnp.tanh(
            jnp.dot(ws_ref[i], h,
                    preferred_element_type=jnp.float32,
                    precision=jax.lax.Precision.HIGHEST)
            + bs_ref[i])                                 # (32, tm)

    # fc6: out_features=1 -> weighted sublane reduce (VPU mul + XLU sum), lane-dense.
    y = jnp.sum(w6_ref[...] * h, axis=0, keepdims=True) + b6_ref[...]   # (1, tm)
    o_ref[...] = y.astype(o_ref.dtype)


def pinn_forward(x, params, *, tm=None, max_tm=8192):
    """x: (N, 1) float32. params: PyTorch-layout [(W (out,in), b (out,)), ...].

    tm: batch-tile width (multiple of 128). If None it is chosen adaptively:
    two balanced tiles when the batch is small/medium (so both v7x TensorCores
    get equal work under dimension_semantics=("parallel",)), capped at max_tm
    for large batches to amortize per-grid-step overhead.
    """
    N = x.shape[0]
    if tm is None:
        tm = min(max_tm, max(128, pl.cdiv(pl.cdiv(N, 2), 128) * 128))
    assert tm % 128 == 0, "tile must be a multiple of 128 for lane-dense stores"
    n_pad = pl.cdiv(N, tm) * tm

    # Batch on lanes; pad tail tile with zeros (sliced off after the call).
    xt = jnp.pad(x[:, 0], (0, n_pad - N)).reshape(1, n_pad).astype(jnp.float32)

    (w1, b1), (w2, b2), (w3, b3), (w4, b4), (w5, b5), (w6, b6) = params
    w1c = w1.reshape(HIDDEN, 1)                          # (32, 1)
    b1c = b1.reshape(HIDDEN, 1)                          # (32, 1)
    ws = jnp.stack([w2, w3, w4, w5])                     # (4, 32, 32)  (out, in)
    bs = jnp.stack([b2, b3, b4, b5]).reshape(N_HIDDEN_LAYERS, HIDDEN, 1)
    w6c = w6.reshape(HIDDEN, 1)                          # (1,32) -> (32, 1)
    b6c = b6.reshape(1, 1)                               # (1, 1)

    out = pl.pallas_call(
        pinn_kernel,
        out_shape=jax.ShapeDtypeStruct((1, n_pad), jnp.float32),
        grid_spec=pltpu.PrefetchScalarGridSpec(
            num_scalar_prefetch=0,
            grid=(n_pad // tm,),
            in_specs=[
                pl.BlockSpec((1, tm), lambda i: (0, i)),             # x tile
                pl.BlockSpec((HIDDEN, 1), lambda i: (0, 0)),         # w1
                pl.BlockSpec((HIDDEN, 1), lambda i: (0, 0)),         # b1
                pl.BlockSpec((N_HIDDEN_LAYERS, HIDDEN, HIDDEN),
                             lambda i: (0, 0, 0)),                   # w2..w5 stacked
                pl.BlockSpec((N_HIDDEN_LAYERS, HIDDEN, 1),
                             lambda i: (0, 0, 0)),                   # b2..b5 stacked
                pl.BlockSpec((HIDDEN, 1), lambda i: (0, 0)),         # w6 (transposed)
                pl.BlockSpec((1, 1), lambda i: (0, 0)),              # b6
            ],
            out_specs=pl.BlockSpec((1, tm), lambda i: (0, i)),
        ),
        compiler_params=pltpu.CompilerParams(
            dimension_semantics=("parallel",),
            vmem_limit_bytes=32 * 1024 * 1024,
        ),
    )(xt, w1c, b1c, ws, bs, w6c, b6c)

    return out[0, :N].reshape(N, 1)


def init_params(key):
    """Xavier-normal weights, zero biases, matching the PyTorch _init_weights.

    Weights kept in PyTorch nn.Linear layout: W is (out_features, in_features),
    b is (out_features,).
    """
    dims = [(HIDDEN, 1), (HIDDEN, HIDDEN), (HIDDEN, HIDDEN),
            (HIDDEN, HIDDEN), (HIDDEN, HIDDEN), (1, HIDDEN)]
    params = []
    for (fan_out, fan_in) in dims:
        key, sub = jax.random.split(key)
        std = (2.0 / (fan_in + fan_out)) ** 0.5
        w = std * jax.random.normal(sub, (fan_out, fan_in), dtype=jnp.float32)
        b = jnp.zeros((fan_out,), dtype=jnp.float32)
        params.append((w, b))
    return params


def pinn_reference(x, params):
    """Pure-JAX reference for the same forward pass (PyTorch (out,in) layout)."""
    h = x
    for i, (w, b) in enumerate(params):
        h = jnp.dot(h, w.T, precision=jax.lax.Precision.HIGHEST) + b
        if i < len(params) - 1:
            h = jnp.tanh(h)
    return h


if __name__ == "__main__":
    key = jax.random.PRNGKey(0)
    kp, kx = jax.random.split(key)

    params = init_params(kp)

    # Small batch of collocation points; non-multiple of 128 to exercise the
    # padding path.  Adaptive tm picks 512 -> padded size 1024 -> 2 grid steps,
    # so both v7x TensorCores get work under dimension_semantics=("parallel",).
    N = 1000
    x = jax.random.uniform(kx, (N, 1), dtype=jnp.float32)

    y = pinn_forward(x, params)
    y = jax.block_until_ready(y)

    y_ref = pinn_reference(x, params)
    assert y.shape == (N, 1)
    assert jnp.allclose(y, y_ref, atol=1e-5, rtol=1e-5)

    # TODO(synk): compute_derivatives (autograd d/dx, d2/dx2) is a training-time
    # utility; jax.grad does not differentiate through pl.pallas_call, so wire a
    # custom_vjp / fused forward+tangent kernel (input dim is 1, so forward-mode
    # propagation of one tangent reuses the resident weights) for PINN losses.
    print("KERNEL_OK")
</pallas_src>

<mosaic_0001>
module attributes {stable_mosaic.version = 11 : i64} {
  func.func @pinn_kernel(%arg0: i32, %arg1: memref<1x512xf32, #tpu.memory_space<vmem>>, %arg2: memref<32x1xf32, #tpu.memory_space<vmem>>, %arg3: memref<32x1xf32, #tpu.memory_space<vmem>>, %arg4: memref<4x32x32xf32, #tpu.memory_space<vmem>>, %arg5: memref<4x32x1xf32, #tpu.memory_space<vmem>>, %arg6: memref<32x1xf32, #tpu.memory_space<vmem>>, %arg7: memref<1x1xf32, #tpu.memory_space<vmem>>, %arg8: memref<1x512xf32, #tpu.memory_space<vmem>>) attributes {dimension_semantics = [#tpu.dimension_semantics<parallel>], iteration_bounds = array<i64: 2>, scalar_prefetch = 0 : i64, scratch_operands = 0 : i64, tpu.core_type = #tpu.core_type<tc>, window_params = [{transform_indices = @transform_0, window_bounds = array<i64: 1, 512>}, {pipeline_mode = #tpu.pipeline_mode<synchronous>, transform_indices = @transform_1, window_bounds = array<i64: 32, 1>}, {pipeline_mode = #tpu.pipeline_mode<synchronous>, transform_indices = @transform_2, window_bounds = array<i64: 32, 1>}, {pipeline_mode = #tpu.pipeline_mode<synchronous>, transform_indices = @transform_3, window_bounds = array<i64: 4, 32, 32>}, {pipeline_mode = #tpu.pipeline_mode<synchronous>, transform_indices = @transform_4, window_bounds = array<i64: 4, 32, 1>}, {pipeline_mode = #tpu.pipeline_mode<synchronous>, transform_indices = @transform_5, window_bounds = array<i64: 32, 1>}, {pipeline_mode = #tpu.pipeline_mode<synchronous>, transform_indices = @transform_6, window_bounds = array<i64: 1, 1>}, {transform_indices = @transform_7, window_bounds = array<i64: 1, 512>}]} {
    %c0 = arith.constant 0 : index
    %c0_0 = arith.constant 0 : index
    %0 = vector.load %arg1[%c0, %c0_0] : memref<1x512xf32, #tpu.memory_space<vmem>>, vector<1x512xf32>
    %c0_1 = arith.constant 0 : index
    %c0_2 = arith.constant 0 : index
    %1 = vector.load %arg2[%c0_1, %c0_2] : memref<32x1xf32, #tpu.memory_space<vmem>>, vector<32x1xf32>
    %2 = vector.broadcast %1 : vector<32x1xf32> to vector<32x512xf32>
    %3 = vector.broadcast %0 : vector<1x512xf32> to vector<32x512xf32>
    %4 = arith.mulf %2, %3 : vector<32x512xf32>
    %c0_3 = arith.constant 0 : index
    %c0_4 = arith.constant 0 : index
    %5 = vector.load %arg3[%c0_3, %c0_4] : memref<32x1xf32, #tpu.memory_space<vmem>>, vector<32x1xf32>
    %6 = vector.broadcast %5 : vector<32x1xf32> to vector<32x512xf32>
    %7 = arith.addf %4, %6 : vector<32x512xf32>
    %8 = math.tanh %7 : vector<32x512xf32>
    %c0_5 = arith.constant 0 : index
    %c0_6 = arith.constant 0 : index
    %c0_7 = arith.constant 0 : index
    %9 = vector.load %arg4[%c0_5, %c0_6, %c0_7] : memref<4x32x32xf32, #tpu.memory_space<vmem>>, vector<1x32x32xf32>
    %10 = vector.shape_cast %9 : vector<1x32x32xf32> to vector<32x32xf32>
    %cst = arith.constant dense<0.000000e+00> : vector<32x512xf32>
    %11 = tpu.matmul %10, %8, %cst {dimension_numbers = #tpu.dot_dimension_numbers<[1], [0], [0], [1], [0, 0, 1, 1], [], []>, precision = #tpu.contract_precision<fp32>} : vector<32x32xf32>, vector<32x512xf32>, vector<32x512xf32> -> vector<32x512xf32>
    %c0_8 = arith.constant 0 : index
    %c0_9 = arith.constant 0 : index
    %c0_10 = arith.constant 0 : index
    %12 = vector.load %arg5[%c0_8, %c0_9, %c0_10] : memref<4x32x1xf32, #tpu.memory_space<vmem>>, vector<1x32x1xf32>
    %13 = vector.shape_cast %12 : vector<1x32x1xf32> to vector<32x1xf32>
    %14 = vector.broadcast %13 : vector<32x1xf32> to vector<32x512xf32>
    %15 = arith.addf %11, %14 : vector<32x512xf32>
    %16 = math.tanh %15 : vector<32x512xf32>
    %c1 = arith.constant 1 : index
    %c0_11 = arith.constant 0 : index
    %c0_12 = arith.constant 0 : index
    %17 = vector.load %arg4[%c1, %c0_11, %c0_12] : memref<4x32x32xf32, #tpu.memory_space<vmem>>, vector<1x32x32xf32>
    %18 = vector.shape_cast %17 : vector<1x32x32xf32> to vector<32x32xf32>
    %cst_13 = arith.constant dense<0.000000e+00> : vector<32x512xf32>
    %19 = tpu.matmul %18, %16, %cst_13 {dimension_numbers = #tpu.dot_dimension_numbers<[1], [0], [0], [1], [0, 0, 1, 1], [], []>, precision = #tpu.contract_precision<fp32>} : vector<32x32xf32>, vector<32x512xf32>, vector<32x512xf32> -> vector<32x512xf32>
    %c1_14 = arith.constant 1 : index
    %c0_15 = arith.constant 0 : index
    %c0_16 = arith.constant 0 : index
    %20 = vector.load %arg5[%c1_14, %c0_15, %c0_16] : memref<4x32x1xf32, #tpu.memory_space<vmem>>, vector<1x32x1xf32>
    %21 = vector.shape_cast %20 : vector<1x32x1xf32> to vector<32x1xf32>
    %22 = vector.broadcast %21 : vector<32x1xf32> to vector<32x512xf32>
    %23 = arith.addf %19, %22 : vector<32x512xf32>
    %24 = math.tanh %23 : vector<32x512xf32>
    %c2 = arith.constant 2 : index
    %c0_17 = arith.constant 0 : index
    %c0_18 = arith.constant 0 : index
    %25 = vector.load %arg4[%c2, %c0_17, %c0_18] : memref<4x32x32xf32, #tpu.memory_space<vmem>>, vector<1x32x32xf32>
    %26 = vector.shape_cast %25 : vector<1x32x32xf32> to vector<32x32xf32>
    %cst_19 = arith.constant dense<0.000000e+00> : vector<32x512xf32>
    %27 = tpu.matmul %26, %24, %cst_19 {dimension_numbers = #tpu.dot_dimension_numbers<[1], [0], [0], [1], [0, 0, 1, 1], [], []>, precision = #tpu.contract_precision<fp32>} : vector<32x32xf32>, vector<32x512xf32>, vector<32x512xf32> -> vector<32x512xf32>
    %c2_20 = arith.constant 2 : index
    %c0_21 = arith.constant 0 : index
    %c0_22 = arith.constant 0 : index
    %28 = vector.load %arg5[%c2_20, %c0_21, %c0_22] : memref<4x32x1xf32, #tpu.memory_space<vmem>>, vector<1x32x1xf32>
    %29 = vector.shape_cast %28 : vector<1x32x1xf32> to vector<32x1xf32>
    %30 = vector.broadcast %29 : vector<32x1xf32> to vector<32x512xf32>
    %31 = arith.addf %27, %30 : vector<32x512xf32>
    %32 = math.tanh %31 : vector<32x512xf32>
    %c3 = arith.constant 3 : index
    %c0_23 = arith.constant 0 : index
    %c0_24 = arith.constant 0 : index
    %33 = vector.load %arg4[%c3, %c0_23, %c0_24] : memref<4x32x32xf32, #tpu.memory_space<vmem>>, vector<1x32x32xf32>
    %34 = vector.shape_cast %33 : vector<1x32x32xf32> to vector<32x32xf32>
    %cst_25 = arith.constant dense<0.000000e+00> : vector<32x512xf32>
    %35 = tpu.matmul %34, %32, %cst_25 {dimension_numbers = #tpu.dot_dimension_numbers<[1], [0], [0], [1], [0, 0, 1, 1], [], []>, precision = #tpu.contract_precision<fp32>} : vector<32x32xf32>, vector<32x512xf32>, vector<32x512xf32> -> vector<32x512xf32>
    %c3_26 = arith.constant 3 : index
    %c0_27 = arith.constant 0 : index
    %c0_28 = arith.constant 0 : index
    %36 = vector.load %arg5[%c3_26, %c0_27, %c0_28] : memref<4x32x1xf32, #tpu.memory_space<vmem>>, vector<1x32x1xf32>
    %37 = vector.shape_cast %36 : vector<1x32x1xf32> to vector<32x1xf32>
    %38 = vector.broadcast %37 : vector<32x1xf32> to vector<32x512xf32>
    %39 = arith.addf %35, %38 : vector<32x512xf32>
    %40 = math.tanh %39 : vector<32x512xf32>
    %c0_29 = arith.constant 0 : index
    %c0_30 = arith.constant 0 : index
    %41 = vector.load %arg6[%c0_29, %c0_30] : memref<32x1xf32, #tpu.memory_space<vmem>>, vector<32x1xf32>
    %42 = vector.broadcast %41 : vector<32x1xf32> to vector<32x512xf32>
    %43 = arith.mulf %42, %40 : vector<32x512xf32>
    %cst_31 = arith.constant dense<0.000000e+00> : vector<512xf32>
    %44 = vector.multi_reduction <add>, %43, %cst_31 [0] : vector<32x512xf32> to vector<512xf32>
    %45 = vector.shape_cast %44 : vector<512xf32> to vector<1x512xf32>
    %c0_32 = arith.constant 0 : index
    %c0_33 = arith.constant 0 : index
    %46 = vector.load %arg7[%c0_32, %c0_33] : memref<1x1xf32, #tpu.memory_space<vmem>>, vector<1x1xf32>
    %47 = vector.broadcast %46 : vector<1x1xf32> to vector<1x512xf32>
    %48 = arith.addf %45, %47 : vector<1x512xf32>
    %c0_34 = arith.constant 0 : index
    %c0_35 = arith.constant 0 : index
    %49 = vector.load %arg8[%c0_34, %c0_35] : memref<1x512xf32, #tpu.memory_space<vmem>>, vector<1x512xf32>
    tpu.vector_store %arg8[%c0_34, %c0_35], %48 {strides = array<i32>} : memref<1x512xf32, #tpu.memory_space<vmem>>, vector<1x512xf32>,
    return
  }
  func.func @transform_0(%arg0: i32) -> (i32, i32) {
    %c0_i32 = arith.constant 0 : i32
    %c0_i32_0 = arith.constant 0 : i32
    return %c0_i32, %arg0 : i32, i32
  }
  func.func @transform_1(%arg0: i32) -> (i32, i32) {
    %c0_i32 = arith.constant 0 : i32
    %c0_i32_0 = arith.constant 0 : i32
    %c0_i32_1 = arith.constant 0 : i32
    return %c0_i32, %c0_i32_0 : i32, i32
  }
  func.func @transform_2(%arg0: i32) -> (i32, i32) {
    %c0_i32 = arith.constant 0 : i32
    %c0_i32_0 = arith.constant 0 : i32
    %c0_i32_1 = arith.constant 0 : i32
    return %c0_i32, %c0_i32_0 : i32, i32
  }
  func.func @transform_3(%arg0: i32) -> (i32, i32, i32) {
    %c0_i32 = arith.constant 0 : i32
    %c0_i32_0 = arith.constant 0 : i32
    %c0_i32_1 = arith.constant 0 : i32
    %c0_i32_2 = arith.constant 0 : i32
    return %c0_i32, %c0_i32_0, %c0_i32_1 : i32, i32, i32
  }
  func.func @transform_4(%arg0: i32) -> (i32, i32, i32) {
    %c0_i32 = arith.constant 0 : i32
    %c0_i32_0 = arith.constant 0 : i32
    %c0_i32_1 = arith.constant 0 : i32
    %c0_i32_2 = arith.constant 0 : i32
    return %c0_i32, %c0_i32_0, %c0_i32_1 : i32, i32, i32
  }
  func.func @transform_5(%arg0: i32) -> (i32, i32) {
    %c0_i32 = arith.constant 0 : i32
    %c0_i32_0 = arith.constant 0 : i32
    %c0_i32_1 = arith.constant 0 : i32
    return %c0_i32, %c0_i32_0 : i32, i32
  }
  func.func @transform_6(%arg0: i32) -> (i32, i32) {
    %c0_i32 = arith.constant 0 : i32
    %c0_i32_0 = arith.constant 0 : i32
    %c0_i32_1 = arith.constant 0 : i32
    return %c0_i32, %c0_i32_0 : i32, i32
  }
  func.func @transform_7(%arg0: i32) -> (i32, i32) {
    %c0_i32 = arith.constant 0 : i32
    %c0_i32_0 = arith.constant 0 : i32
    return %c0_i32, %arg0 : i32, i32
  }
}

</mosaic_0001>

<bundles_post_ra>
// kernel: tpu_custom_call.1
= control target key start
LH: loop header
LB: loop body
LE: loop exit
PB: predicated region body
PF: predicated region fallthrough
CT: control target
= control target key end

     0   :  { %s7343_s0 = inlined_call_operand.vmem [shape: f32[1,1024], index: 0, kind: input, shape index: {}]   ;;  %s7344_s1 = inlined_call_operand.vmem [shape: f32[32,1], index: 1, kind: input, shape index: {}]   ;;  %s7345_s2 = inlined_call_operand.vmem [shape: f32[32,1], index: 2, kind: input, shape index: {}]   ;;  %s7346_s3 = inlined_call_operand.vmem [shape: f32[4,32,32], index: 3, kind: input, shape index: {}]   ;;  %s7347_s4 = inlined_call_operand.vmem [shape: f32[4,32,1], index: 4, kind: input, shape index: {}]   ;;  %s7348_s5 = inlined_call_operand.vmem [shape: f32[32,1], index: 5, kind: input, shape index: {}]   ;;  %s7349_s6 = inlined_call_operand.<no memory space> [shape: f32[1,1], index: 6, kind: input, shape index: {}]   ;;  %s7350_s7 = inlined_call_operand.hbm [shape: f32[1,1024], index: 7, kind: output, shape index: {}]  }
   0x1   :  { %v12_v0 = vstv %s7349_s6 }
   0x2   :  { %13 = vst [vmem:[#allocation2] sm:$0x1] %v12_v0 }
   0x3   :  { %14 = vsyncpa [#allocation4], 0 }
   0x4   :  { %16 = vsyncpa [#allocation4 + $0x1], 0  ;;  %s5587_s26 = smov 0   ;;  %s5589_s27 = smov 0  }
   0x5   :  { %s5591_s28 = smov 0   ;;  %s5593_s29 = smov 0  }
   0x6 LB: > { %s5241_s6 = sadd.s32 4294967295, %s5541_s29   ;;  %s5242_s30 = sadd.s32 4294967294, %s5541_s29   ;;  %s5541_s29 = sphi %s5593_s29, %s7356_s29   ;;  %s5537_s28 = sphi %s5591_s28, %s7355_s28   ;;  %s5533_s27 = sphi %s5589_s27, %s7354_s27   ;;  %s5529_s26 = sphi %s5587_s26, %s7353_s26  }
   0x7   : > { %s5610_s8 = sadd.s32 1, %s5541_s29   ;;  %s181_s9 = sadd.s32 1, %s5537_s28 }
   0x8   : > { %s178_s10 = ssub.s32 %s5541_s29, %s5610_s8  ;;  %p191_p0 = scmp.ne.s32.totalorder %s5537_s28, %s5533_s27 }
   0x9   : > { %p179_p1 = scmp.eq.s32.totalorder %s178_s10, 0  ;;  %p192_p2 = scmp.eq.s32.totalorder %s5241_s6, 1 }
   0xa   : > { %p197_p3 = scmp.ne.s32.totalorder %s5533_s27, %s5529_s26  ;;  %p198_p4 = scmp.eq.s32.totalorder %s5242_s30, 1 }
   0xb   : > { %s5622_s11 = scalar_select %p179_p1, %s5537_s28, %s181_s9  }
   0xc   : > { %p5624_p5 = por %p192_p2, %p191_p0  ;;  %p5628_p6 = por %p198_p4, %p197_p3 }
   0xd   : > { %p5245_p7 = scmp.ge.s32.totalorder %s5541_s29, 1  ;;  %p242_p8 = scmp.lt.s32.totalorder %s5541_s29, 3 }
   0xf   : > { %p243_p9 = pnand %p5245_p7, %p242_p8 }
  0x10   : > { %s5720_s25 = sshll.u32 (!%p243_p9), %s5241_s6, 2  ;;  %s270_s16 = sand.u32 (!%p243_p9), 1, %s5533_s27  }
  0x11   : > { %246 = sbr.rel (%p243_p9) target bundleno = 1183 (0x49f), region = 48  ;;  %p274_p10 = scmp.lt.s32.totalorder (!%p243_p9), %s5720_s25, 7 }
  0x12   : > { %s5246_s17 = sshll.u32 (!%p243_p9), %s270_s16, 2  ;;  %s5181_s20 = scalar_lea.hbm (!%p243_p9), %s7350_s7, %s5720_s25 }
  0x13   : > { %s272_s21 = scalar_lea.vmem (!%p243_p9), [#allocation3], %s5246_s17  ;;  %s5185_s23 = sshll.u32 (!%p243_p9), %s5181_s20, 4  ;;  %s5186_s23 = int_to_ptr.hbm [resolvable:$true] %s5185_s23 }
  0x14   : > { %s5183_s22 = sshll.u32 (!%p243_p9), %s272_s21, 4  ;;  %s5171_s24 = scalar_lea.sflag (!%p243_p9), [#allocation4], %s270_s16  ;;  %s5184_s22 = int_to_ptr.vmem [resolvable:$true] %s5183_s22 }
  0x16   : > { %v331_v1 = vld [vmem:[%s7345_s2 + $0x10] sm:$0xff]  ;;  %v332_v2 = vld [vmem:[%s7345_s2 + $0x18] sm:$0xff]  ;;  %v5543_v4 = vmov 0   ;;  %v280_v5 = vld [vmem:[%s7344_s1] sm:$0xff]  ;;  %s275_s30 = scalar_select %p274_p10, %s5720_s25, 7  ;;  %vm413_vm0 = vcmask 261120  }
  0x17   : > { %v283_v3 = vld [vmem:[%s7344_s1 + $0x18] sm:$0xff]  ;;  %5318 = vset.pattern.permute.xlu2 %v5543_v4  ;;  %5317 = vset.pattern.permute.xlu1 %v5543_v4  ;;  %v282_v6 = vld [vmem:[%s7344_s1 + $0x10] sm:$0xff]  ;;  %v281_v7 = vld [vmem:[%s7344_s1 + $0x8] sm:$0xff]  ;;  %vm5158_vm1 = vcmask 1040384   ;;  %vm5160_vm2 = vcmask 1042434   ;;  %vm5162_vm3 = vcmask 1041408  }
  0x18   : > { %5316 = vset.pattern.permute.xlu0 %v5543_v4  ;;  %345 = vperm.xlu2 %5318, %v331_v1   ;;  %v392_v8 = vld [vmem:[%s7347_s4 + $0x18] sm:$0xff]  ;;  %v330_v9 = vld [vmem:[%s7345_s2 + $0x8] sm:$0xff]  ;;  %v329_v10 = vld [vmem:[%s7345_s2] sm:$0xff]  ;;  %s276_s14 = scalar_lea.vmem %s7343_s0, %s275_s30  ;;  %s5493_s25 = sshra.s32 %s5186_s23, 4  ;;  %s5494_s25 = int_to_ptr.hbm [resolvable:$true] %s5493_s25 }
  0x19   : > { %350 = vperm.xlu1 %5317, %v332_v2   ;;  %301 = vperm.xlu0 %5316, %v283_v3   ;;  %v389_v11 = vld [vmem:[%s7347_s4] sm:$0xff]  ;;  %v391_v12 = vld [vmem:[%s7347_s4 + $0x10] sm:$0xff]  ;;  %v390_v13 = vld [vmem:[%s7347_s4 + $0x8] sm:$0xff]  ;;  %s5495_s30 = scalar_lea.hbm %s5494_s25, 4  ;;  %p5500_p0 = scmp.lt.s32.totalorder %s5494_s25, %s7350_s7 }
  0x1a   : > { %v5253_v14 = vld [vmem:[%s7347_s4 + $0x28] sm:$0xff]  ;;  %v5255_v15 = vld [vmem:[%s7347_s4 + $0x38] sm:$0xff]  ;;  %v5254_v16 = vld [vmem:[%s7347_s4 + $0x30] sm:$0xff]  ;;  %p5496_p11 = scmp.ne.s32.totalorder %s5494_s25, %s5495_s30 }
  0x1b   : > { %v5262_v17 = vld [vmem:[%s7347_s4 + $0x50] sm:$0xff]  ;;  %v5252_v18 = vld [vmem:[%s7347_s4 + $0x20] sm:$0xff]  ;;  %v5263_v19 = vld [vmem:[%s7347_s4 + $0x58] sm:$0xff] }
  0x1c   : > { %v5268_v20 = vld [vmem:[%s7347_s4 + $0x60] sm:$0xff]  ;;  %v5261_v21 = vld [vmem:[%s7347_s4 + $0x48] sm:$0xff]  ;;  %v5271_v23 = vld [vmem:[%s7347_s4 + $0x78] sm:$0xff]  ;;  %p5497_p12 = pnand %p5496_p11, %p5624_p5 }
  0x1d   : > { %v5260_v22 = vld [vmem:[%s7347_s4 + $0x40] sm:$0xff]  ;;  %v5269_v24 = vld [vmem:[%s7347_s4 + $0x68] sm:$0xff]  ;;  %v5270_v25 = vld [vmem:[%s7347_s4 + $0x70] sm:$0xff] }
  0x1e   : > { %v5066_v26 = vld [vmem:[%s7348_s5 + $0x10] sm:$0xff]  ;;  %v5064_v27 = vld [vmem:[%s7348_s5] sm:$0xff]  ;;  %v5065_v28 = vld [vmem:[%s7348_s5 + $0x8] sm:$0xff]  ;;  %p5498_p13 = pneg %p5497_p12 }
  0x1f   : > { %v5067_v29 = vld [vmem:[%s7348_s5 + $0x18] sm:$0xff]  ;;  %v5140_v30 = vld [vmem:[#allocation2] sm:$0x1] }
  0x20   : > { %286 = vperm.xlu2 %5318, %v280_v5   ;;  %v5729_v32 = vld [vmem:[%s276_s14] sm:$0xf]  ;;  %v386_v5 = vld [vmem:[%s7346_s3 + $0x8] sm:$0xff]  ;;  %s5499_s14 = scalar_lea.hbm %s7350_s7, 8 }
  0x21   : > { %296 = vperm.xlu0 %5316, %v282_v6   ;;  %291 = vperm.xlu1 %5317, %v281_v7   ;;  %v308_v33 = vperm.slane %v5729_v32, 3  ;;  %v305_v36 = vperm.slane %v5729_v32, 0  ;;  %v306_v37 = vperm.slane %v5729_v32, 1  ;;  %v385_v46 = vld [vmem:[%s7346_s3] sm:$0xff]  ;;  %p5501_p1 = scmp.lt.s32.totalorder %s5499_s14, %s5495_s30 }
  0x22   : > { %v415_v53 = vsel %vm413_vm0, %v385_v46, 0 }
  0x23   : > { %v5768_v60 = vand.u32 4294901760, %v415_v53  ;;  %p5502_p2 = por %p5501_p1, %p5500_p0 }
  0x25   : > { %p5503_p3 = pnand %p5502_p2, %p5498_p13 }
  0x28   : > { %410 = vperm.xlu2 %5318, %v392_v8  }
  0x29   : > { %340 = vperm.xlu0 %5316, %v330_v9   ;;  %335 = vperm.xlu1 %5317, %v329_v10   ;;  %v5795_v9 = vsub.f32 %v415_v53, %v5768_v60 }
  0x30   : > { %395 = vperm.xlu2 %5318, %v389_v11  }
  0x31   : > { %405 = vperm.xlu0 %5316, %v391_v12   ;;  %400 = vperm.xlu1 %5317, %v390_v13  }
  0x38   : > { %1571 = vperm.xlu2 %5318, %v5253_v14  }
  0x39   : > { %1581 = vperm.xlu0 %5316, %v5255_v15   ;;  %1576 = vperm.xlu1 %5317, %v5254_v16   ;;  %v418_v15 = vsel %vm413_vm0, %v386_v5, 0 }
  0x40   : > { %2746 = vperm.xlu2 %5318, %v5262_v17  }
  0x41   : > { %1566 = vperm.xlu0 %5316, %v5252_v18   ;;  %2751 = vperm.xlu1 %5317, %v5263_v19  }
  0x48   : > { %3906 = vperm.xlu2 %5318, %v5268_v20  }
  0x49   : > { %2741 = vperm.xlu0 %5316, %v5261_v21   ;;  %2736 = vperm.xlu1 %5317, %v5260_v22   ;;  %v5813_v21 = vand.u32 4294901760, %v5795_v9 }
  0x50   : > { %3921 = vperm.xlu2 %5318, %v5271_v23  }
  0x51   : > { %3911 = vperm.xlu0 %5316, %v5269_v24   ;;  %3916 = vperm.xlu1 %5317, %v5270_v25   ;;  %v5823_v25 = vand.u32 4294901760, %v418_v15 }
  0x58   : > { %5080 = vperm.xlu2 %5318, %v5066_v26  }
  0x59   : > { %5070 = vperm.xlu0 %5316, %v5064_v27   ;;  %5075 = vperm.xlu1 %5317, %v5065_v28  }
  0x61   : > { %5085 = vperm.xlu0 %5316, %v5067_v29   ;;  %5143 = vperm.xlu1 %5317, %v5140_v30   ;;  %v449_v29 = vsub.f32 %v5795_v9, %v5813_v21 }
  0x72   : > { %v5724_v31 = vpop.permute.xlu2 %345 }
  0x7a   : > { %v5732_v34 = vpop.permute.xlu2 %286 }
  0x7b   : > { %v316_v35 = vmul.f32 %v308_v33, %v5732_v34  ;;  %v313_v0 = vmul.f32 %v305_v36, %v5732_v34  ;;  %v314_v10 = vmul.f32 %v306_v37, %v5732_v34 }
  0x8b   : > { %v5737_v38 = vpop.permute.xlu1 %350  ;;  %v5739_v39 = vpop.permute.xlu0 %301 }
  0x8c   : > { %v325_v40 = vmul.f32 %v305_v36, %v5739_v39  ;;  %v326_v41 = vmul.f32 %v306_v37, %v5739_v39  ;;  %v328_v42 = vmul.f32 %v308_v33, %v5739_v39 }
  0x8e   : > { %v365_v43 = vadd.f32 %v5737_v38, %v325_v40  ;;  %v366_v44 = vadd.f32 %v5737_v38, %v326_v41  ;;  %v5747_v45 = vadd.f32 %v5737_v38, %v328_v42  ;;  %v5834_v40 = vsub.f32 %v418_v15, %v5823_v25  ;;  %v387_v41 = vld [vmem:[%s7346_s3 + $0x10] sm:$0xff] }
  0x90   : > { %5319 = vtanh.f32 %v365_v43 }
  0x91   : > { %5321 = vtanh.f32 %v366_v44 }
  0x93   : > { %v5752_v47 = vpop.permute.xlu0 %296  ;;  %v5754_v48 = vpop.permute.xlu1 %291 }
  0x94   : > { %v321_v49 = vmul.f32 %v305_v36, %v5752_v47  ;;  %v322_v50 = vmul.f32 %v306_v37, %v5752_v47  ;;  %v324_v51 = vmul.f32 %v308_v33, %v5752_v47  ;;  %v320_v52 = vmul.f32 %v308_v33, %v5754_v48 }
  0x95   : > { %v317_v62 = vmul.f32 %v305_v36, %v5754_v48  ;;  %v318_v63 = vmul.f32 %v306_v37, %v5754_v48 }
  0x96   : > { %v5320_v54 = vpop.eup %5319  ;;  %v361_v55 = vadd.f32 %v5724_v31, %v321_v49  ;;  %v362_v56 = vadd.f32 %v5724_v31, %v322_v50  ;;  %v5764_v57 = vadd.f32 %v5724_v31, %v324_v51  ;;  %v5845_v49 = vand.u32 4294901760, %v449_v29 }
  0x97   : > { %v5766_v58 = vand.u32 4294901760, %v5320_v54  ;;  %v5322_v59 = vpop.eup %5321 }
  0x98   : > { %5323 = vtanh.f32 %v361_v55  ;;  %v5784_v4 = vand.u32 4294901760, %v5322_v59 }
  0x99   : > { %5325 = vtanh.f32 %v362_v56  ;;  %439 = vmatpush.msra.mxu0 %v5766_v58  ;;  %590 = vmatpush.msra.mxu3 %v5766_v58  ;;  %v5773_v61 = vsub.f32 %v5320_v54, %v5766_v58  ;;  %v421_v54 = vsel %vm413_vm0, %v387_v41, 0 }
  0x9a   : > { %v5810_v19 = vsub.f32 %v5322_v59, %v5784_v4 }
  0x9b   : > { %v5778_v1 = vpop.permute.xlu0 %340  ;;  %v5780_v2 = vpop.permute.xlu1 %335  ;;  %546 = vmatpush.msra.mxu2 %v5773_v61  ;;  %v493_v3 = vand.u32 4294901760, %v5773_v61 }
  0x9c   : > { %v357_v6 = vadd.f32 %v5778_v1, %v317_v62  ;;  %v358_v7 = vadd.f32 %v5778_v1, %v318_v63  ;;  %v5792_v8 = vadd.f32 %v5778_v1, %v320_v52  ;;  %v5799_v11 = vadd.f32 %v5780_v2, %v316_v35 }
  0x9d   : > { %v353_v13 = vadd.f32 %v5780_v2, %v313_v0  ;;  %v494_v14 = vsub.f32 %v5773_v61, %v493_v3  ;;  %v354_v17 = vadd.f32 %v5780_v2, %v314_v10  ;;  %v771_v27 = vand.u32 4294901760, %v5810_v19 }
  0x9e   : > { %v5324_v12 = vpop.eup %5323  ;;  %5327 = vtanh.f32 %v357_v6  ;;  %v5860_v62 = vand.u32 4294901760, %v5834_v40  ;;  %v5873_v10 = vand.u32 4294901760, %v421_v54 }
  0x9f   : > { %v5326_v16 = vpop.eup %5325  ;;  %5329 = vtanh.f32 %v358_v7  ;;  %v5807_v18 = vand.u32 4294901760, %v5324_v12  ;;  %v495_v20 = vand.u32 4294901760, %v494_v14  ;;  %v772_v44 = vsub.f32 %v5810_v19, %v771_v27 }
  0xa0   : > { %v5815_v22 = vand.u32 4294901760, %v5326_v16  ;;  %5331 = vtanh.f32 %v353_v13 }
  0xa1   : > { %441 = vmatpush.msra.mxu0 %v5807_v18  ;;  %592 = vmatpush.msra.mxu3 %v5807_v18  ;;  %v498_v23 = vsub.f32 %v5324_v12, %v5807_v18  ;;  %5333 = vtanh.f32 %v354_v17  ;;  %v773_v63 = vand.u32 4294901760, %v772_v44  ;;  %v457_v17 = vsub.f32 %v5834_v40, %v5860_v62 }
  0xa2   : > { %496 = vmatpush.msra.mxu1 %v495_v20  ;;  %v5821_v24 = vsub.f32 %v5326_v16, %v5815_v22  ;;  %v388_v20 = vld [vmem:[%s7346_s3 + $0x18] sm:$0xff] }
  0xa3   : > { %549 = vmatpush.msra.mxu2 %v498_v23  ;;  %v499_v26 = vand.u32 4294901760, %v498_v23  ;;  %v424_v29 = vsel %vm413_vm0, %v388_v20, 0 }
  0xa4   : > { %v5328_v28 = vpop.eup %5327  ;;  %v777_v37 = vand.u32 4294901760, %v5821_v24 }
  0xa5   : > { %v5330_v30 = vpop.eup %5329  ;;  %v5828_v33 = vand.u32 4294901760, %v5328_v28  ;;  %v500_v35 = vsub.f32 %v498_v23, %v499_v26  ;;  %v5887_v23 = vsub.f32 %v421_v54, %v5873_v10 }
  0xa6   : > { %v5830_v36 = vand.u32 4294901760, %v5330_v30  ;;  %v5332_v46 = vpop.eup %5331  ;;  %v778_v56 = vsub.f32 %v5821_v24, %v777_v37 }
  0xa7   : > { %443 = vmatpush.msra.mxu0 %v5828_v33  ;;  %594 = vmatpush.msra.mxu3 %v5828_v33  ;;  %v501_v42 = vand.u32 4294901760, %v500_v35  ;;  %v504_v43 = vsub.f32 %v5328_v28, %v5828_v33  ;;  %v5334_v51 = vpop.eup %5333  ;;  %v5850_v52 = vand.u32 4294901760, %v5332_v46  ;;  %v5891_v35 = vand.u32 4294901760, %v457_v17 }
  0xa8   : > { %v5848_v50 = vsub.f32 %v5330_v30, %v5830_v36  ;;  %v5853_v55 = vand.u32 4294901760, %v5334_v51  ;;  %v779_v14 = vand.u32 4294901760, %v778_v56  ;;  %v5896_v41 = vand.u32 4294901760, %v5887_v23 }
  0xa9   : > { %502 = vmatpush.msra.mxu1 %v501_v42  ;;  %552 = vmatpush.msra.mxu2 %v504_v43  ;;  %v505_v53 = vand.u32 4294901760, %v504_v43  ;;  %v510_v0 = vsub.f32 %v5332_v46, %v5850_v52  ;;  %v5898_v42 = vand.u32 4294901760, %v424_v29 }
  0xaa   : > { %v783_v59 = vand.u32 4294901760, %v5848_v50  ;;  %445 = vmatpush.msra.mxu0 %v5850_v52  ;;  %596 = vmatpush.msra.mxu3 %v5850_v52  ;;  %v5871_v7 = vsub.f32 %v5334_v51, %v5853_v55 }
  0xab   : > { %v506_v5 = vsub.f32 %v504_v43, %v505_v53  ;;  %451 = vmatmul.f32.vlgmr.msra.gmra.mxu0 %v5845_v49  ;;  %600 = vmatmul.f32.vlgmr.msra.gmra.mxu3 %v5813_v21  ;;  %v511_v13 = vand.u32 4294901760, %v510_v0  ;;  %v465_v43 = vsub.f32 %v5887_v23, %v5896_v41  ;;  %v5912_v44 = vsub.f32 %v424_v29, %v5898_v42 }
  0xac   : > { %v784_v6 = vsub.f32 %v5848_v50, %v783_v59  ;;  %637 = vmatpush.msrb.mxu0 %v493_v3  ;;  %774 = vmatpush.msrb.mxu3 %v773_v63  ;;  %v789_v16 = vand.u32 4294901760, %v5871_v7 }
  0xad   : > { %v507_v12 = vand.u32 4294901760, %v506_v5  ;;  %555 = vmatpush.msra.mxu2 %v510_v0  ;;  %v512_v61 = vsub.f32 %v510_v0, %v511_v13 }
  0xae   : > { %v785_v15 = vand.u32 4294901760, %v784_v6  ;;  %558 = vmatmul.f32.vlgmr.msra.gmra.mxu2 %v5795_v9  ;;  %641 = vmatpush.msrb.mxu0 %v499_v26  ;;  %v790_v3 = vsub.f32 %v5871_v7, %v789_v16  ;;  %v307_v26 = vperm.slane %v5729_v32, 2 }
  0xaf   : > { %717 = vmatpush.msrb.mxu2 %v5784_v4  ;;  %780 = vmatpush.msrb.mxu3 %v779_v14  ;;  %v513_v28 = vand.u32 4294901760, %v512_v61 }
  0xb0   : > { %645 = vmatpush.msrb.mxu0 %v505_v53  ;;  %508 = vmatpush.msra.mxu1 %v507_v12  ;;  %v791_v30 = vand.u32 4294901760, %v790_v3  ;;  %v327_v32 = vmul.f32 %v307_v26, %v5739_v39  ;;  %v323_v46 = vmul.f32 %v307_v26, %v5752_v47  ;;  %v5926_v47 = vand.u32 4294901760, %v465_v43 }
  0xb1   : > { %719 = vmatpush.msrb.mxu2 %v5815_v22  ;;  %786 = vmatpush.msrb.mxu3 %v785_v15 }
  0xb2   : > { %649 = vmatpush.msrb.mxu0 %v511_v13  ;;  %514 = vmatpush.msra.mxu1 %v513_v28  ;;  %v367_v39 = vadd.f32 %v5737_v38, %v327_v32  ;;  %v315_v38 = vmul.f32 %v307_v26, %v5732_v34 }
  0xb3   : > { %721 = vmatpush.msrb.mxu2 %v5830_v36  ;;  %792 = vmatpush.msrb.mxu3 %v791_v30 }
  0xb4   : > { %824 = vmatpush.msra.mxu0 %v5810_v19  ;;  %516 = vmatmul.f32.vlgmr.msra.gmra.mxu1 %v5768_v60  ;;  %v319_v19 = vmul.f32 %v307_v26, %v5754_v48  ;;  %5335 = vtanh.f32 %v367_v39  ;;  %v355_v48 = vadd.f32 %v5780_v2, %v315_v38 }
  0xb5   : > { %459 = vmatmul.f32.gmra.mxu0 %v5891_v35  ;;  %606 = vmatmul.f32.gmra.mxu3 %v5860_v62 }
  0xb6   : > { %680 = vmatpush.msrb.mxu1 %v5766_v58  ;;  %723 = vmatpush.msrb.mxu2 %v5853_v55  ;;  %v5929_v58 = vand.u32 4294901760, %v5912_v44 }
  0xb7   : > { %958 = vmatpush.msra.mxu3 %v5784_v4  ;;  %827 = vmatpush.msra.mxu0 %v5821_v24  ;;  %v359_v24 = vadd.f32 %v5778_v1, %v319_v19 }
  0xb8   : > { %915 = vmatpush.msra.mxu2 %v771_v27  ;;  %682 = vmatpush.msrb.mxu1 %v5807_v18  ;;  %v363_v18 = vadd.f32 %v5724_v31, %v323_v46  ;;  %v473_v31 = vsub.f32 %v5912_v44, %v5929_v58 }
  0xb9   : > { %563 = vmatmul.f32.gmra.mxu2 %v5834_v40  ;;  %960 = vmatpush.msra.mxu3 %v5815_v22 }
  0xba   : > { %830 = vmatpush.msra.mxu0 %v5848_v50  ;;  %919 = vmatpush.msra.mxu2 %v777_v37  ;;  %5337 = vtanh.f32 %v363_v18  ;;  %v5950_v34 = vand.u32 4294901760, %v473_v31  ;;  %v5336_v1 = vpop.eup %5335 }
  0xbb   : > { %684 = vmatpush.msrb.mxu1 %v5828_v33  ;;  %962 = vmatpush.msra.mxu3 %v5830_v36  ;;  %5339 = vtanh.f32 %v359_v24  ;;  %v5955_v2 = vand.u32 4294901760, %v5336_v1 }
  0xbc   : > { %833 = vmatpush.msra.mxu0 %v5871_v7  ;;  %923 = vmatpush.msra.mxu2 %v783_v59  ;;  %5341 = vtanh.f32 %v355_v48 }
  0xbd   : > { %686 = vmatpush.msrb.mxu1 %v5850_v52  ;;  %964 = vmatpush.msra.mxu3 %v5853_v55  ;;  %5343 = vtanh.f32 %v5747_v45 }
  0xbe   : > { %927 = vmatpush.msra.mxu2 %v789_v16  ;;  %467 = vmatmul.f32.gmra.mxu0 %v5926_v47  ;;  %5345 = vtanh.f32 %v5764_v57 }
  0xbf   : > { %868 = vmatpush.msra.mxu1 %v5784_v4  ;;  %612 = vmatmul.f32.gmra.mxu3 %v5896_v41  ;;  %5347 = vtanh.f32 %v5792_v8 }
  0xc0   : > { %520 = vmatmul.f32.gmra.mxu1 %v5823_v25  ;;  %v5338_v4 = vpop.eup %5337  ;;  %5349 = vtanh.f32 %v5799_v11 }
  0xc1   : > { %870 = vmatpush.msra.mxu1 %v5815_v22  ;;  %568 = vmatmul.f32.gmra.mxu2 %v5887_v23  ;;  %v5340_v27 = vpop.eup %5339  ;;  %v5959_v22 = vand.u32 4294901760, %v5338_v4 }
  0xc2   : > { %v5342_v33 = vpop.eup %5341  ;;  %v5964_v37 = vand.u32 4294901760, %v5340_v27 }
  0xc3   : > { %872 = vmatpush.msra.mxu1 %v5830_v36  ;;  %v5962_v36 = vsub.f32 %v5336_v1, %v5955_v2  ;;  %v5967_v50 = vsub.f32 %v5338_v4, %v5959_v22  ;;  %v5969_v51 = vand.u32 4294901760, %v5342_v33  ;;  %v5344_v13 = vpop.eup %5343 }
  0xc4   : > { %v5974_v52 = vsub.f32 %v5340_v27, %v5964_v37  ;;  %v5346_v57 = vpop.eup %5345  ;;  %v6017_v15 = vand.u32 4294901760, %v5344_v13 }
  0xc5   : > { %874 = vmatpush.msra.mxu1 %v5853_v55  ;;  %v1049_v53 = vand.u32 4294901760, %v5962_v36  ;;  %v5982_v54 = vsub.f32 %v5342_v33, %v5969_v51  ;;  %v1055_v55 = vand.u32 4294901760, %v5967_v50  ;;  %v5348_v16 = vpop.eup %5347  ;;  %v6022_v17 = vand.u32 4294901760, %v5346_v57 }
  0xc6   : > { %475 = vmatmul.f32.gmra.mxu0 %v5950_v34  ;;  %v1061_v59 = vand.u32 4294901760, %v5974_v52  ;;  %v5350_v8 = vpop.eup %5349  ;;  %v1326_v11 = vsub.f32 %v5344_v13, %v6017_v15  ;;  %v6026_v20 = vand.u32 4294901760, %v5348_v16 }
  0xc7   : > { %618 = vmatmul.f32.gmra.mxu3 %v5929_v58  ;;  %v1050_v56 = vsub.f32 %v5962_v36, %v1049_v53  ;;  %v1056_v63 = vsub.f32 %v5967_v50, %v1055_v55  ;;  %v1067_v0 = vand.u32 4294901760, %v5982_v54  ;;  %v6028_v61 = vand.u32 4294901760, %v5350_v8 }
  0xc8   : > { %524 = vmatmul.f32.gmra.mxu1 %v5873_v10  ;;  %v1062_v6 = vsub.f32 %v5974_v52, %v1061_v59  ;;  %v1332_v3 = vsub.f32 %v5346_v57, %v6022_v17  ;;  %v1327_v28 = vand.u32 4294901760, %v1326_v11  ;;  %v1338_v29 = vsub.f32 %v5348_v16, %v6026_v20 }
  0xc9   : > { %573 = vmatmul.f32.gmra.mxu2 %v5912_v44  ;;  %v1051_v5 = vand.u32 4294901760, %v1050_v56  ;;  %v1057_v45 = vand.u32 4294901760, %v1056_v63  ;;  %v1068_v7 = vsub.f32 %v5982_v54, %v1067_v0  ;;  %v1344_v26 = vsub.f32 %v5350_v8, %v6028_v61 }
  0xca   : > { %v1063_v12 = vand.u32 4294901760, %v1062_v6  ;;  %v1333_v30 = vand.u32 4294901760, %v1332_v3  ;;  %v1328_v32 = vsub.f32 %v1326_v11, %v1327_v28  ;;  %v1339_v43 = vand.u32 4294901760, %v1338_v29  ;;  %v6123_v6 = vpop.permute.xlu1 %400 }
  0xcb   : > { %v1069_v14 = vand.u32 4294901760, %v1068_v7  ;;  %v1345_v39 = vand.u32 4294901760, %v1344_v26 }
  0xcc   : > { %v1334_v46 = vsub.f32 %v1332_v3, %v1333_v30  ;;  %v1329_v18 = vand.u32 4294901760, %v1328_v32  ;;  %v1340_v19 = vsub.f32 %v1338_v29, %v1339_v43 }
  0xcd   : > { %v1346_v24 = vsub.f32 %v1344_v26, %v1345_v39 }
  0xce   : > { %651 = vmatmul.f32.vlgmr.msrb.gmra.mxu0 %v5768_v60  ;;  %v1335_v38 = vand.u32 4294901760, %v1334_v46  ;;  %v1341_v31 = vand.u32 4294901760, %v1340_v19 }
  0xcf   : > { %794 = vmatmul.f32.vlgmr.msrb.gmra.mxu3 %v5768_v60  ;;  %995 = vmatpush.msrb.mxu0 %v5955_v2  ;;  %v1347_v48 = vand.u32 4294901760, %v1346_v24 }
  0xd0   : > { %528 = vmatmul.f32.gmra.mxu1 %v5898_v42  ;;  %1146 = vmatpush.msrb.mxu3 %v5955_v2 }
  0xd1   : > { %729 = vmatmul.f32.vlgmr.msrb.gmra.mxu2 %v5845_v49  ;;  %997 = vmatpush.msrb.mxu0 %v5959_v22 }
  0xd2   : > { %1102 = vmatpush.msrb.mxu2 %v5962_v36  ;;  %1148 = vmatpush.msrb.mxu3 %v5959_v22 }
  0xd3   : > { %999 = vmatpush.msrb.mxu0 %v5964_v37 }
  0xd4   : > { %1105 = vmatpush.msrb.mxu2 %v5967_v50  ;;  %1150 = vmatpush.msrb.mxu3 %v5964_v37 }
  0xd5   : > { %1001 = vmatpush.msrb.mxu0 %v5969_v51 }
  0xd6   : > { %1108 = vmatpush.msrb.mxu2 %v5974_v52  ;;  %1152 = vmatpush.msrb.mxu3 %v5969_v51 }
  0xd7   : > { %655 = vmatmul.f32.gmra.mxu0 %v5823_v25  ;;  %798 = vmatmul.f32.gmra.mxu3 %v5823_v25 }
  0xd8   : > { %688 = vmatmul.f32.vlgmr.msrb.gmra.mxu1 %v5768_v60  ;;  %1111 = vmatpush.msrb.mxu2 %v5982_v54 }
  0xd9   : > { %1052 = vmatpush.msrb.mxu1 %v1051_v5  ;;  %737 = vmatmul.f32.gmra.mxu2 %v5891_v35  ;;  %v6121_v5 = vpop.permute.xlu0 %405 }
  0xdb   : > { %1058 = vmatpush.msrb.mxu1 %v1057_v45 }
  0xdd   : > { %1064 = vmatpush.msrb.mxu1 %v1063_v12 }
  0xdf   : > { %1070 = vmatpush.msrb.mxu1 %v1069_v14  ;;  %659 = vmatmul.f32.gmra.mxu0 %v5873_v10 }
  0xe0   : > { %692 = vmatmul.f32.gmra.mxu1 %v5823_v25  ;;  %802 = vmatmul.f32.gmra.mxu3 %v5873_v10 }
  0xe1   : > { %745 = vmatmul.f32.gmra.mxu2 %v5926_v47 }
  0xe7   : > { %663 = vmatmul.f32.gmra.mxu0 %v5898_v42 }
  0xe8   : > { %696 = vmatmul.f32.gmra.mxu1 %v5873_v10  ;;  %806 = vmatmul.f32.gmra.mxu3 %v5898_v42 }
  0xe9   : > { %753 = vmatmul.f32.gmra.mxu2 %v5950_v34 }
  0xef   : > { %836 = vmatmul.f32.vlgmr.msra.gmra.mxu0 %v5795_v9 }
  0xf0   : > { %700 = vmatmul.f32.gmra.mxu1 %v5898_v42  ;;  %966 = vmatmul.f32.vlgmr.msra.gmra.mxu3 %v5768_v60 }
  0xf1   : > { %1193 = vmatpush.msra.mxu0 %v1049_v53  ;;  %1330 = vmatpush.msra.mxu3 %v1329_v18 }
  0xf2   : > { %929 = vmatmul.f32.vlgmr.msra.gmra.mxu2 %v5768_v60 }
  0xf3   : > { %1197 = vmatpush.msra.mxu0 %v1055_v55  ;;  %1273 = vmatpush.msra.mxu2 %v6017_v15 }
  0xf4   : > { %1336 = vmatpush.msra.mxu3 %v1335_v38 }
  0xf5   : > { %1201 = vmatpush.msra.mxu0 %v1061_v59  ;;  %1275 = vmatpush.msra.mxu2 %v6022_v17  ;;  %v6111_v59 = vpop.permute.xlu2 %410 }
  0xf6   : > { %1342 = vmatpush.msra.mxu3 %v1341_v31 }
  0xf7   : > { %1205 = vmatpush.msra.mxu0 %v1067_v0  ;;  %1277 = vmatpush.msra.mxu2 %v6026_v20 }
  0xf8   : > { %1348 = vmatpush.msra.mxu3 %v1347_v48  ;;  %841 = vmatmul.f32.gmra.mxu0 %v5834_v40 }
  0xf9   : > { %878 = vmatmul.f32.vlgmr.msra.gmra.mxu1 %v5813_v21  ;;  %970 = vmatmul.f32.gmra.mxu3 %v5823_v25 }
  0xfa   : > { %1236 = vmatpush.msra.mxu1 %v5955_v2  ;;  %1279 = vmatpush.msra.mxu2 %v6028_v61 }
  0xfb   : > { %933 = vmatmul.f32.gmra.mxu2 %v5823_v25 }
  0xfc   : > { %1238 = vmatpush.msra.mxu1 %v5959_v22 }
  0xfd   : > { %v6127_v7 = vpop.permute.xlu2 %395 }
  0xfe   : > { %1240 = vmatpush.msra.mxu1 %v5964_v37 }
 0x100   : > { %1242 = vmatpush.msra.mxu1 %v5969_v51  ;;  %846 = vmatmul.f32.gmra.mxu0 %v5887_v23 }
 0x101   : > { %884 = vmatmul.f32.gmra.mxu1 %v5860_v62  ;;  %974 = vmatmul.f32.gmra.mxu3 %v5873_v10 }
 0x103   : > { %937 = vmatmul.f32.gmra.mxu2 %v5873_v10 }
 0x108   : > { %851 = vmatmul.f32.gmra.mxu0 %v5912_v44 }
 0x109   : > { %890 = vmatmul.f32.gmra.mxu1 %v5896_v41  ;;  %978 = vmatmul.f32.gmra.mxu3 %v5898_v42 }
 0x10b   : > { %941 = vmatmul.f32.gmra.mxu2 %v5898_v42 }
 0x110   : > { %1007 = vmatmul.f32.vlgmr.msrb.gmra.mxu0 %v5845_v49 }
 0x111   : > { %896 = vmatmul.f32.gmra.mxu1 %v5929_v58  ;;  %1156 = vmatmul.f32.vlgmr.msrb.gmra.mxu3 %v5813_v21 }
 0x112   : > { %1380 = vmatpush.msrb.mxu0 %v1326_v11  ;;  %1514 = vmatpush.msrb.mxu3 %v6017_v15 }
 0x113   : > { %1114 = vmatmul.f32.vlgmr.msrb.gmra.mxu2 %v5795_v9 }
 0x114   : > { %1383 = vmatpush.msrb.mxu0 %v1332_v3  ;;  %1471 = vmatpush.msrb.mxu2 %v1327_v28 }
 0x115   : > { %1516 = vmatpush.msrb.mxu3 %v6022_v17 }
 0x116   : > { %1386 = vmatpush.msrb.mxu0 %v1338_v29  ;;  %1475 = vmatpush.msrb.mxu2 %v1333_v30 }
 0x117   : > { %1518 = vmatpush.msrb.mxu3 %v6026_v20 }
 0x118   : > { %1389 = vmatpush.msrb.mxu0 %v1344_v26  ;;  %1479 = vmatpush.msrb.mxu2 %v1339_v43 }
 0x119   : > { %1520 = vmatpush.msrb.mxu3 %v6028_v61  ;;  %1015 = vmatmul.f32.gmra.mxu0 %v5891_v35 }
 0x11a   : > { %1072 = vmatmul.f32.vlgmr.msrb.gmra.mxu1 %v5768_v60  ;;  %1483 = vmatpush.msrb.mxu2 %v1345_v39 }
 0x11b   : > { %1424 = vmatpush.msrb.mxu1 %v6017_v15  ;;  %1119 = vmatmul.f32.gmra.mxu2 %v5834_v40 }
 0x11c   : > { %1162 = vmatmul.f32.gmra.mxu3 %v5860_v62 }
 0x11d   : > { %1426 = vmatpush.msrb.mxu1 %v6022_v17 }
 0x11f   : > { %1428 = vmatpush.msrb.mxu1 %v6026_v20 }
 0x121   : > { %1430 = vmatpush.msrb.mxu1 %v6028_v61  ;;  %1023 = vmatmul.f32.gmra.mxu0 %v5926_v47 }
 0x122   : > { %1076 = vmatmul.f32.gmra.mxu1 %v5823_v25 }
 0x123   : > { %1124 = vmatmul.f32.gmra.mxu2 %v5887_v23 }
 0x124   : > { %1168 = vmatmul.f32.gmra.mxu3 %v5896_v41 }
 0x128   : > { %v452_v1 = vpop.f32.mrf.mxu0 }
 0x129   : > { %1031 = vmatmul.f32.gmra.mxu0 %v5950_v34  ;;  %v453_v12 = vadd.f32 %v452_v1, %v6127_v7 }
 0x12a   : > { %1080 = vmatmul.f32.gmra.mxu1 %v5873_v10 }
 0x12b   : > { %1129 = vmatmul.f32.gmra.mxu2 %v5912_v44 }
 0x12c   : > { %1174 = vmatmul.f32.gmra.mxu3 %v5929_v58 }
 0x12e   : > { %v6093_v4 = vpop.f32.mrf.mxu3 }
 0x131   : > { %1207 = vmatmul.f32.vlgmr.msra.gmra.mxu0 %v5768_v60  ;;  %v517_v27 = vpop.f32.mrf.mxu1  ;;  %v559_v22 = vpop.f32.mrf.mxu2 }
 0x132   : > { %1084 = vmatmul.f32.gmra.mxu1 %v5898_v42  ;;  %v460_v2 = vpop.f32.mrf.mxu0  ;;  %v518_v57 = vadd.f32 %v517_v27, %v453_v12 }
 0x133   : > { %1285 = vmatmul.f32.vlgmr.msra.gmra.mxu2 %v5845_v49  ;;  %v461_v45 = vadd.f32 %v460_v2, %v6123_v6 }
 0x134   : > { %1350 = vmatmul.f32.vlgmr.msra.gmra.mxu3 %v5768_v60 }
 0x138   : > { %v607_v33 = vpop.f32.mrf.mxu3 }
 0x139   : > { %1211 = vmatmul.f32.gmra.mxu0 %v5823_v25 }
 0x13a   : > { %1244 = vmatmul.f32.vlgmr.msra.gmra.mxu1 %v5768_v60 }
 0x13b   : > { %1293 = vmatmul.f32.gmra.mxu2 %v5891_v35  ;;  %v468_v36 = vpop.f32.mrf.mxu0 }
 0x13c   : > { %1354 = vmatmul.f32.gmra.mxu3 %v5823_v25  ;;  %v564_v50 = vpop.f32.mrf.mxu2 }
 0x13d   : > { %v521_v37 = vpop.f32.mrf.mxu1 }
 0x13e   : > { %v522_v13 = vadd.f32 %v521_v37, %v461_v45 }
 0x140   : > { %v565_v8 = vadd.f32 %v564_v50, %v522_v13 }
 0x141   : > { %1215 = vmatmul.f32.gmra.mxu0 %v5873_v10 }
 0x142   : > { %1248 = vmatmul.f32.gmra.mxu1 %v5823_v25  ;;  %v613_v49 = vpop.f32.mrf.mxu3  ;;  %v608_v61 = vadd.f32 %v607_v33, %v565_v8 }
 0x143   : > { %1301 = vmatmul.f32.gmra.mxu2 %v5926_v47  ;;  %v476_v51 = vpop.f32.mrf.mxu0 }
 0x144   : > { %1358 = vmatmul.f32.gmra.mxu3 %v5873_v10  ;;  %v569_v53 = vpop.f32.mrf.mxu2  ;;  %v477_v20 = vadd.f32 %v476_v51, %v6111_v59 }
 0x145   : > { %v525_v52 = vpop.f32.mrf.mxu1 }
 0x149   : > { %1219 = vmatmul.f32.gmra.mxu0 %v5898_v42 }
 0x14a   : > { %1252 = vmatmul.f32.gmra.mxu1 %v5873_v10  ;;  %v619_v35 = vpop.f32.mrf.mxu3 }
 0x14b   : > { %1309 = vmatmul.f32.gmra.mxu2 %v5950_v34  ;;  %v652_v55 = vpop.f32.mrf.mxu0 }
 0x14c   : > { %1362 = vmatmul.f32.gmra.mxu3 %v5898_v42  ;;  %v574_v56 = vpop.f32.mrf.mxu2 }
 0x14d   : > { %v529_v54 = vpop.f32.mrf.mxu1 }
 0x14e   : > { %v530_v3 = vadd.f32 %v529_v54, %v477_v20 }
 0x151   : > { %1392 = vmatmul.f32.vlgmr.msrb.gmra.mxu0 %v5795_v9  ;;  %v469_v9 = vadd.f32 %v468_v36, %v6121_v5 }
 0x152   : > { %1256 = vmatmul.f32.gmra.mxu1 %v5898_v42  ;;  %v6116_v47 = vpop.f32.mrf.mxu3 }
 0x153   : > { %1485 = vmatmul.f32.vlgmr.msrb.gmra.mxu2 %v5768_v60  ;;  %v526_v14 = vadd.f32 %v525_v52, %v469_v9 }
 0x154   : > { %v656_v63 = vpop.f32.mrf.mxu0  ;;  %1522 = vmatmul.f32.vlgmr.msrb.gmra.mxu3 %v5768_v60  ;;  %v6119_v0 = vpop.f32.mrf.mxu2 }
 0x155   : > { %v689_v34 = vpop.f32.mrf.mxu1  ;;  %v570_v11 = vadd.f32 %v569_v53, %v526_v14  ;;  %v657_v29 = vadd.f32 %v656_v63, %v608_v61 }
 0x159   : > { %1397 = vmatmul.f32.gmra.mxu0 %v5834_v40  ;;  %v560_v40 = vadd.f32 %v559_v22, %v518_v57 }
 0x15a   : > { %1434 = vmatmul.f32.vlgmr.msrb.gmra.mxu1 %v5813_v21  ;;  %v6133_v60 = vpop.f32.mrf.mxu3  ;;  %v614_v21 = vadd.f32 %v613_v49, %v570_v11 }
 0x15b   : > { %1489 = vmatmul.f32.gmra.mxu2 %v5823_v25 }
 0x15c   : > { %v660_v15 = vpop.f32.mrf.mxu0  ;;  %1526 = vmatmul.f32.gmra.mxu3 %v5823_v25  ;;  %v6136_v17 = vpop.f32.mrf.mxu2  ;;  %v602_v25 = vadd.f32 %v6093_v4, %v560_v40  ;;  %v731_v40 = vadd.f32 %v6119_v0, %v6127_v7 }
 0x15d   : > { %v693_v16 = vpop.f32.mrf.mxu1  ;;  %v661_v30 = vadd.f32 %v660_v15, %v614_v21 }
 0x15e   : > { %v653_v46 = vadd.f32 %v652_v55, %v602_v25  ;;  %v694_v39 = vadd.f32 %v693_v16, %v657_v29  ;;  %v739_v16 = vadd.f32 %v6136_v17, %v6123_v6 }
 0x160   : > { %v690_v19 = vadd.f32 %v689_v34, %v653_v46 }
 0x161   : > { %1402 = vmatmul.f32.gmra.mxu0 %v5887_v23  ;;  %v575_v23 = vadd.f32 %v574_v56, %v530_v3 }
 0x162   : > { %1440 = vmatmul.f32.gmra.mxu1 %v5860_v62  ;;  %v5248_v62 = vld [vmem:[%s7346_s3 + $0x20] sm:$0xff] }
 0x163   : > { %1493 = vmatmul.f32.gmra.mxu2 %v5873_v10  ;;  %v6142_v28 = vpop.f32.mrf.mxu3  ;;  %v1585_v38 = vsel %vm413_vm0, %v5248_v62, 0  ;;  %v620_v24 = vadd.f32 %v619_v35, %v575_v23  ;;  %v800_v23 = vadd.f32 %v6133_v60, %v739_v16  ;;  %v796_v62 = vadd.f32 %v6116_v47, %v731_v40 }
 0x164   : > { %v664_v26 = vpop.f32.mrf.mxu0  ;;  %1530 = vmatmul.f32.gmra.mxu3 %v5873_v10  ;;  %v6146_v43 = vpop.f32.mrf.mxu2  ;;  %v6160_v1 = vand.u32 4294901760, %v1585_v38 }
 0x165   : > { %v697_v32 = vpop.f32.mrf.mxu1  ;;  %v665_v31 = vadd.f32 %v664_v26, %v620_v24  ;;  %v747_v46 = vadd.f32 %v6146_v43, %v6121_v5 }
 0x166   : > { %v698_v18 = vadd.f32 %v697_v32, %v661_v30  ;;  %v6168_v33 = vsub.f32 %v1585_v38, %v6160_v1  ;;  %v5251_v32 = vld [vmem:[%s7346_s3 + $0x38] sm:$0xff] }
 0x167   : > { %v804_v47 = vadd.f32 %v6142_v28, %v747_v46 }
 0x168   : > { %5351 = vtanh.f32 %v698_v18  ;;  %v6179_v51 = vand.u32 4294901760, %v6168_v33 }
 0x169   : > { %1407 = vmatmul.f32.gmra.mxu0 %v5912_v44  ;;  %5353 = vtanh.f32 %v694_v39 }
 0x16a   : > { %1446 = vmatmul.f32.gmra.mxu1 %v5896_v41  ;;  %5355 = vtanh.f32 %v690_v19  ;;  %v5249_v41 = vld [vmem:[%s7346_s3 + $0x28] sm:$0xff]  ;;  %v1619_v9 = vsub.f32 %v6168_v33, %v6179_v51 }
 0x16b   : > { %1497 = vmatmul.f32.gmra.mxu2 %v5898_v42  ;;  %v6155_v10 = vpop.f32.mrf.mxu3 }
 0x16c   : > { %v6157_v48 = vpop.f32.mrf.mxu0  ;;  %1534 = vmatmul.f32.gmra.mxu3 %v5898_v42  ;;  %v6162_v44 = vpop.f32.mrf.mxu2  ;;  %v1588_v42 = vsel %vm413_vm0, %v5249_v41, 0  ;;  %v6216_v61 = vand.u32 4294901760, %v1619_v9 }
 0x16d   : > { %v701_v4 = vpop.f32.mrf.mxu1  ;;  %v6181_v52 = vand.u32 4294901760, %v1588_v42 }
 0x16e   : > { %v5352_v2 = vpop.eup %5351  ;;  %v702_v27 = vadd.f32 %v701_v4, %v665_v31  ;;  %v1594_v31 = vsel %vm413_vm0, %v5251_v32, 0  ;;  %v838_v4 = vadd.f32 %v6157_v48, %v796_v62 }
 0x16f   : > { %v5354_v22 = vpop.eup %5353  ;;  %v6170_v36 = vand.u32 4294901760, %v5352_v2  ;;  %v6199_v12 = vsub.f32 %v1588_v42, %v6181_v52 }
 0x170   : > { %5357 = vtanh.f32 %v702_v27  ;;  %v5356_v37 = vpop.eup %5355  ;;  %v6176_v49 = vand.u32 4294901760, %v5354_v22 }
 0x171   : > { %v1668_v54 = vsub.f32 %v5352_v2, %v6170_v36  ;;  %v6186_v55 = vand.u32 4294901760, %v5356_v37  ;;  %v6219_v21 = vand.u32 4294901760, %v6199_v12 }
 0x172   : > { %1452 = vmatmul.f32.gmra.mxu1 %v5929_v58  ;;  %v5250_v58 = vld [vmem:[%s7346_s3 + $0x30] sm:$0xff]  ;;  %v1674_v45 = vsub.f32 %v5354_v22, %v6176_v49 }
 0x173   : > { %v6174_v50 = vpop.f32.mrf.mxu3  ;;  %v6205_v14 = vsub.f32 %v5356_v37, %v6186_v55  ;;  %v1669_v57 = vand.u32 4294901760, %v1668_v54  ;;  %v1591_v15 = vsel %vm413_vm0, %v5250_v58, 0  ;;  %v1627_v19 = vsub.f32 %v6199_v12, %v6219_v21 }
 0x174   : > { %v1675_v11 = vand.u32 4294901760, %v1674_v45  ;;  %v6221_v3 = vand.u32 4294901760, %v1591_v15  ;;  %v6253_v37 = vand.u32 4294901760, %v1594_v31 }
 0x175   : > { %v842_v53 = vpop.f32.mrf.mxu0  ;;  %v6183_v35 = vpop.f32.mrf.mxu2  ;;  %v1670_v29 = vsub.f32 %v1668_v54, %v1669_v57  ;;  %v1681_v30 = vand.u32 4294901760, %v6205_v14  ;;  %v6248_v22 = vand.u32 4294901760, %v1627_v19 }
 0x176   : > { %v5358_v56 = vpop.eup %5357  ;;  %v6188_v63 = vpop.f32.mrf.mxu1  ;;  %v1676_v18 = vsub.f32 %v1674_v45, %v1675_v11  ;;  %v6239_v38 = vsub.f32 %v1591_v15, %v6221_v3  ;;  %v843_v60 = vadd.f32 %v842_v53, %v800_v23 }
 0x177   : > { %v6193_v34 = vand.u32 4294901760, %v5358_v56  ;;  %v1671_v43 = vand.u32 4294901760, %v1670_v29  ;;  %v1682_v24 = vsub.f32 %v6205_v14, %v1681_v30  ;;  %v880_v53 = vadd.f32 %v6188_v63, %v838_v4 }
 0x178   : > { %v1677_v27 = vand.u32 4294901760, %v1676_v18  ;;  %v6251_v42 = vand.u32 4294901760, %v6239_v38 }
 0x179   : > { %1609 = vmatpush.msra.mxu0 %v6193_v34  ;;  %1760 = vmatpush.msra.mxu3 %v6193_v34  ;;  %v1662_v13 = vsub.f32 %v5358_v56, %v6193_v34  ;;  %v1683_v48 = vand.u32 4294901760, %v1682_v24 }
 0x17a   : > { %v1635_v63 = vsub.f32 %v6239_v38, %v6251_v42 }
 0x17b   : > { %1611 = vmatpush.msra.mxu0 %v6170_v36  ;;  %1716 = vmatpush.msra.mxu2 %v1662_v13  ;;  %v1663_v8 = vand.u32 4294901760, %v1662_v13 }
 0x17c   : > { %1762 = vmatpush.msra.mxu3 %v6170_v36  ;;  %v6214_v20 = vpop.f32.mrf.mxu3  ;;  %v6272_v40 = vand.u32 4294901760, %v1635_v63 }
 0x17d   : > { %v847_v17 = vpop.f32.mrf.mxu0  ;;  %1613 = vmatpush.msra.mxu0 %v6176_v49  ;;  %1719 = vmatpush.msra.mxu2 %v1668_v54  ;;  %v1664_v25 = vsub.f32 %v1662_v13, %v1663_v8 }
 0x17e   : > { %v885_v0 = vpop.f32.mrf.mxu1  ;;  %v934_v26 = vpop.f32.mrf.mxu2  ;;  %1764 = vmatpush.msra.mxu3 %v6176_v49  ;;  %v848_v54 = vadd.f32 %v847_v17, %v804_v47 }
 0x17f   : > { %1615 = vmatpush.msra.mxu0 %v6186_v55  ;;  %1722 = vmatpush.msra.mxu2 %v1674_v45  ;;  %v1665_v39 = vand.u32 4294901760, %v1664_v25  ;;  %v886_v2 = vadd.f32 %v885_v0, %v843_v60  ;;  %v755_v45 = vadd.f32 %v6162_v44, %v6111_v59 }
 0x180   : > { %1766 = vmatpush.msra.mxu3 %v6186_v55  ;;  %1621 = vmatmul.f32.vlgmr.msra.gmra.mxu0 %v6216_v61 }
 0x181   : > { %1807 = vmatpush.msrb.mxu0 %v1663_v8  ;;  %1666 = vmatpush.msra.mxu1 %v1665_v39  ;;  %v935_v9 = vadd.f32 %v934_v26, %v886_v2  ;;  %v808_v44 = vadd.f32 %v6155_v10, %v755_v45 }
 0x182   : > { %1725 = vmatpush.msra.mxu2 %v6205_v14  ;;  %1770 = vmatmul.f32.vlgmr.msra.gmra.mxu3 %v6179_v51  ;;  %v6263_v14 = vsub.f32 %v1594_v31, %v6253_v37 }
 0x183   : > { %1811 = vmatpush.msrb.mxu0 %v1669_v57  ;;  %1672 = vmatpush.msra.mxu1 %v1671_v43  ;;  %v931_v57 = vadd.f32 %v6183_v35, %v880_v53  ;;  %v972_v16 = vadd.f32 %v6214_v20, %v935_v9 }
 0x184   : > { %1728 = vmatmul.f32.vlgmr.msra.gmra.mxu2 %v6168_v33  ;;  %v975_v41 = vpop.f32.mrf.mxu3  ;;  %v6275_v17 = vand.u32 4294901760, %v6263_v14 }
 0x185   : > { %1815 = vmatpush.msrb.mxu0 %v1675_v11  ;;  %v852_v28 = vpop.f32.mrf.mxu0  ;;  %1678 = vmatpush.msra.mxu1 %v1677_v27  ;;  %v968_v35 = vadd.f32 %v6174_v50, %v931_v57 }
 0x186   : > { %v891_v56 = vpop.f32.mrf.mxu1  ;;  %v938_v58 = vpop.f32.mrf.mxu2  ;;  %v1643_v29 = vsub.f32 %v6263_v14, %v6275_v17 }
 0x187   : > { %v892_v13 = vadd.f32 %v891_v56, %v848_v54  ;;  %1819 = vmatpush.msrb.mxu0 %v1681_v30  ;;  %1684 = vmatpush.msra.mxu1 %v1683_v48 }
 0x188   : > { %1629 = vmatmul.f32.gmra.mxu0 %v6248_v22  ;;  %1686 = vmatmul.f32.vlgmr.msra.gmra.mxu1 %v6160_v1  ;;  %v6288_v0 = vand.u32 4294901760, %v1643_v29 }
 0x189   : > { %v939_v15 = vadd.f32 %v938_v58, %v892_v13  ;;  %1850 = vmatpush.msrb.mxu1 %v6193_v34  ;;  %v853_v34 = vadd.f32 %v852_v28, %v808_v44 }
 0x18a   : > { %1776 = vmatmul.f32.gmra.mxu3 %v6219_v21 }
 0x18b   : > { %v976_v8 = vadd.f32 %v975_v41, %v939_v15  ;;  %1852 = vmatpush.msrb.mxu1 %v6170_v36 }
 0x18c   : > { %1733 = vmatmul.f32.gmra.mxu2 %v6199_v12  ;;  %v979_v11 = vpop.f32.mrf.mxu3 }
 0x18d   : > { %5359 = vtanh.f32 %v976_v8  ;;  %1854 = vmatpush.msrb.mxu1 %v6176_v49  ;;  %v6279_v10 = vpop.f32.mrf.mxu0 }
 0x18e   : > { %v897_v20 = vpop.f32.mrf.mxu1  ;;  %v942_v25 = vpop.f32.mrf.mxu2  ;;  %5361 = vtanh.f32 %v972_v16 }
 0x18f   : > { %v898_v36 = vadd.f32 %v897_v20, %v853_v34  ;;  %1856 = vmatpush.msrb.mxu1 %v6186_v55  ;;  %5363 = vtanh.f32 %v968_v35 }
 0x190   : > { %1637 = vmatmul.f32.gmra.mxu0 %v6272_v40  ;;  %1690 = vmatmul.f32.gmra.mxu1 %v6181_v52 }
 0x191   : > { %v943_v50 = vadd.f32 %v942_v25, %v898_v36 }
 0x192   : > { %1782 = vmatmul.f32.gmra.mxu3 %v6251_v42 }
 0x193   : > { %v5360_v49 = vpop.eup %5359  ;;  %v980_v30 = vadd.f32 %v979_v11, %v943_v50 }
 0x194   : > { %1738 = vmatmul.f32.gmra.mxu2 %v6239_v38  ;;  %v5362_v26 = vpop.eup %5361  ;;  %v6290_v55 = vpop.f32.mrf.mxu3  ;;  %v6296_v46 = vand.u32 4294901760, %v5360_v49 }
 0x195   : > { %5365 = vtanh.f32 %v980_v30  ;;  %v5364_v39 = vpop.eup %5363  ;;  %v6302_v62 = vand.u32 4294901760, %v5362_v26 }
 0x196   : > { %v6292_v32 = vpop.f32.mrf.mxu0  ;;  %v6294_v23 = vpop.f32.mrf.mxu2  ;;  %v1946_v19 = vsub.f32 %v5360_v49, %v6296_v46  ;;  %v1892_v60 = vand.u32 4294901760, %v5364_v39 }
 0x197   : > { %v6298_v18 = vpop.f32.mrf.mxu1  ;;  %v1952_v31 = vsub.f32 %v5362_v26, %v6302_v62 }
 0x198   : > { %1645 = vmatmul.f32.gmra.mxu0 %v6288_v0  ;;  %1694 = vmatmul.f32.gmra.mxu1 %v6221_v3  ;;  %v1958_v27 = vsub.f32 %v5364_v39, %v1892_v60  ;;  %v1947_v41 = vand.u32 4294901760, %v1946_v19 }
 0x199   : > { %v1953_v48 = vand.u32 4294901760, %v1952_v31 }
 0x19a   : > { %1788 = vmatmul.f32.gmra.mxu3 %v6275_v17  ;;  %v1948_v58 = vsub.f32 %v1946_v19, %v1947_v41  ;;  %v1959_v45 = vand.u32 4294901760, %v1958_v27 }
 0x19b   : > { %v5366_v43 = vpop.eup %5365  ;;  %v1954_v13 = vsub.f32 %v1952_v31, %v1953_v48 }
 0x19c   : > { %1743 = vmatmul.f32.gmra.mxu2 %v6263_v14  ;;  %v1886_v24 = vand.u32 4294901760, %v5366_v43  ;;  %v1949_v15 = vand.u32 4294901760, %v1948_v58  ;;  %v1960_v44 = vsub.f32 %v1958_v27, %v1959_v45 }
 0x19d   : > { %v1955_v11 = vand.u32 4294901760, %v1954_v13 }
 0x19e   : > { %v6308_v47 = vpop.f32.mrf.mxu0  ;;  %v6310_v4 = vpop.f32.mrf.mxu2  ;;  %1887 = vmatpush.msrb.mxu2 %v1886_v24  ;;  %2038 = vmatpush.msra.mxu1 %v1886_v24  ;;  %v1940_v2 = vsub.f32 %v5366_v43, %v1886_v24  ;;  %v1961_v35 = vand.u32 4294901760, %v1960_v44 }
 0x19f   : > { %v6312_v53 = vpop.f32.mrf.mxu1  ;;  %v6314_v54 = vpop.f32.mrf.mxu3  ;;  %v1025_v26 = vadd.f32 %v6308_v47, %v6121_v5 }
 0x1a0   : > { %1889 = vmatpush.msrb.mxu2 %v6296_v46  ;;  %1994 = vmatpush.msra.mxu0 %v1940_v2  ;;  %v1941_v28 = vand.u32 4294901760, %v1940_v2 }
 0x1a1   : > { %2040 = vmatpush.msra.mxu1 %v6296_v46  ;;  %1821 = vmatmul.f32.vlgmr.msrb.gmra.mxu0 %v6160_v1 }
 0x1a2   : > { %1698 = vmatmul.f32.gmra.mxu1 %v6253_v37  ;;  %1891 = vmatpush.msrb.mxu2 %v6302_v62  ;;  %v1942_v56 = vsub.f32 %v1940_v2, %v1941_v28 }
 0x1a3   : > { %1997 = vmatpush.msra.mxu0 %v1946_v19  ;;  %2042 = vmatpush.msra.mxu1 %v6302_v62 }
 0x1a4   : > { %1893 = vmatpush.msrb.mxu2 %v1892_v60  ;;  %v1943_v9 = vand.u32 4294901760, %v1942_v56 }
 0x1a5   : > { %2000 = vmatpush.msra.mxu0 %v1952_v31  ;;  %2044 = vmatpush.msra.mxu1 %v1892_v60 }
 0x1a6   : > { %1899 = vmatmul.f32.vlgmr.msrb.gmra.mxu2 %v6216_v61  ;;  %v1032_v63 = vpop.f32.mrf.mxu0  ;;  %v1125_v57 = vpop.f32.mrf.mxu2  ;;  %1944 = vmatpush.msrb.mxu3 %v1943_v9 }
 0x1a7   : > { %2085 = vmatpush.msra.mxu2 %v1941_v28  ;;  %v1081_v16 = vpop.f32.mrf.mxu1  ;;  %2003 = vmatpush.msra.mxu0 %v1958_v27  ;;  %v1169_v8 = vpop.f32.mrf.mxu3 }
 0x1a8   : > { %1950 = vmatpush.msrb.mxu3 %v1949_v15  ;;  %v1082_v39 = vadd.f32 %v1081_v16, %v1025_v26 }
 0x1a9   : > { %2089 = vmatpush.msra.mxu2 %v1947_v41  ;;  %1825 = vmatmul.f32.gmra.mxu0 %v6181_v52 }
 0x1aa   : > { %1858 = vmatmul.f32.vlgmr.msrb.gmra.mxu1 %v6160_v1  ;;  %1956 = vmatpush.msrb.mxu3 %v1955_v11  ;;  %v1126_v2 = vadd.f32 %v1125_v57, %v1082_v39 }
 0x1ab   : > { %2093 = vmatpush.msra.mxu2 %v1953_v48 }
 0x1ac   : > { %1962 = vmatpush.msrb.mxu3 %v1961_v35  ;;  %v1170_v41 = vadd.f32 %v1169_v8, %v1126_v2 }
 0x1ad   : > { %2097 = vmatpush.msra.mxu2 %v1959_v45  ;;  %1964 = vmatmul.f32.vlgmr.msrb.gmra.mxu3 %v6160_v1 }
 0x1ae   : > { %1907 = vmatmul.f32.gmra.mxu2 %v6248_v22  ;;  %2128 = vmatpush.msra.mxu3 %v1886_v24  ;;  %v1130_v34 = vpop.f32.mrf.mxu2  ;;  %v1208_v20 = vpop.f32.mrf.mxu0 }
 0x1af   : > { %v1085_v25 = vpop.f32.mrf.mxu1  ;;  %v1175_v36 = vpop.f32.mrf.mxu3 }
 0x1b0   : > { %2130 = vmatpush.msra.mxu3 %v6296_v46  ;;  %v1017_v46 = vadd.f32 %v6292_v32, %v6123_v6 }
 0x1b1   : > { %1829 = vmatmul.f32.gmra.mxu0 %v6221_v3 }
 0x1b2   : > { %1862 = vmatmul.f32.gmra.mxu1 %v6181_v52  ;;  %2132 = vmatpush.msra.mxu3 %v6302_v62  ;;  %v1009_v62 = vadd.f32 %v6279_v10, %v6127_v7  ;;  %v1078_v19 = vadd.f32 %v6312_v53, %v1017_v46  ;;  %v1033_v10 = vadd.f32 %v1032_v63, %v6111_v59 }
 0x1b4   : > { %2134 = vmatpush.msra.mxu3 %v1892_v60  ;;  %v1074_v24 = vadd.f32 %v6298_v18, %v1009_v62  ;;  %v1121_v32 = vadd.f32 %v6310_v4, %v1078_v19  ;;  %v1086_v53 = vadd.f32 %v1085_v25, %v1033_v10 }
 0x1b5   : > { %1968 = vmatmul.f32.gmra.mxu3 %v6181_v52 }
 0x1b6   : > { %1915 = vmatmul.f32.gmra.mxu2 %v6272_v40  ;;  %v1212_v29 = vpop.f32.mrf.mxu0  ;;  %v6333_v50 = vpop.f32.mrf.mxu2  ;;  %v1116_v27 = vadd.f32 %v6294_v23, %v1074_v24  ;;  %v1164_v28 = vadd.f32 %v6314_v54, %v1121_v32  ;;  %v1131_v13 = vadd.f32 %v1130_v34, %v1086_v53 }
 0x1b7   : > { %v1245_v49 = vpop.f32.mrf.mxu1  ;;  %v6335_v30 = vpop.f32.mrf.mxu3 }
 0x1b8   : > { %v1158_v4 = vadd.f32 %v6290_v55, %v1116_v27  ;;  %v1213_v58 = vadd.f32 %v1212_v29, %v1164_v28  ;;  %v1176_v15 = vadd.f32 %v1175_v36, %v1131_v13 }
 0x1b9   : > { %1833 = vmatmul.f32.gmra.mxu0 %v6253_v37 }
 0x1ba   : > { %1866 = vmatmul.f32.gmra.mxu1 %v6221_v3  ;;  %v1209_v63 = vadd.f32 %v1208_v20, %v1158_v4 }
 0x1bc   : > { %v1246_v54 = vadd.f32 %v1245_v49, %v1209_v63 }
 0x1bd   : > { %1972 = vmatmul.f32.gmra.mxu3 %v6221_v3 }
 0x1be   : > { %1923 = vmatmul.f32.gmra.mxu2 %v6288_v0  ;;  %v1216_v60 = vpop.f32.mrf.mxu0  ;;  %v6348_v43 = vpop.f32.mrf.mxu2 }
 0x1bf   : > { %v1249_v31 = vpop.f32.mrf.mxu1  ;;  %v6351_v47 = vpop.f32.mrf.mxu3  ;;  %v1217_v18 = vadd.f32 %v1216_v60, %v1170_v41  ;;  %v1295_v27 = vadd.f32 %v6348_v43, %v6123_v6 }
 0x1c0   : > { %v1250_v57 = vadd.f32 %v1249_v31, %v1213_v58 }
 0x1c1   : > { %2006 = vmatmul.f32.vlgmr.msra.gmra.mxu0 %v6168_v33  ;;  %v1356_v13 = vadd.f32 %v6351_v47, %v1295_v27 }
 0x1c2   : > { %1870 = vmatmul.f32.gmra.mxu1 %v6253_v37 }
 0x1c5   : > { %1976 = vmatmul.f32.gmra.mxu3 %v6253_v37 }
 0x1c6   : > { %2099 = vmatmul.f32.vlgmr.msra.gmra.mxu2 %v6160_v1  ;;  %v1220_v48 = vpop.f32.mrf.mxu0  ;;  %v6361_v56 = vpop.f32.mrf.mxu2 }
 0x1c7   : > { %v1253_v45 = vpop.f32.mrf.mxu1  ;;  %v6364_v9 = vpop.f32.mrf.mxu3  ;;  %v1221_v44 = vadd.f32 %v1220_v48, %v1176_v15  ;;  %v1303_v43 = vadd.f32 %v6361_v56, %v6121_v5 }
 0x1c8   : > { %v1254_v23 = vadd.f32 %v1253_v45, %v1217_v18  ;;  %v1287_v18 = vadd.f32 %v6333_v50, %v6127_v7 }
 0x1c9   : > { %2011 = vmatmul.f32.gmra.mxu0 %v6199_v12  ;;  %v1360_v5 = vadd.f32 %v6364_v9, %v1303_v43 }
 0x1ca   : > { %2048 = vmatmul.f32.vlgmr.msra.gmra.mxu1 %v6179_v51  ;;  %5367 = vtanh.f32 %v1254_v23  ;;  %v1352_v63 = vadd.f32 %v6335_v30, %v1287_v18 }
 0x1cb   : > { %5369 = vtanh.f32 %v1250_v57 }
 0x1cc   : > { %5371 = vtanh.f32 %v1246_v54 }
 0x1cd   : > { %2136 = vmatmul.f32.vlgmr.msra.gmra.mxu3 %v6160_v1 }
 0x1ce   : > { %2103 = vmatmul.f32.gmra.mxu2 %v6181_v52  ;;  %v6370_v55 = vpop.f32.mrf.mxu2  ;;  %v6372_v16 = vpop.f32.mrf.mxu0 }
 0x1cf   : > { %v1257_v8 = vpop.f32.mrf.mxu1  ;;  %v6374_v11 = vpop.f32.mrf.mxu3  ;;  %v1394_v54 = vadd.f32 %v6372_v16, %v1352_v63 }
 0x1d0   : > { %v1258_v35 = vadd.f32 %v1257_v8, %v1221_v44  ;;  %v5368_v34 = vpop.eup %5367 }
 0x1d1   : > { %2016 = vmatmul.f32.gmra.mxu0 %v6239_v38  ;;  %v5370_v20 = vpop.eup %5369  ;;  %v6378_v25 = vand.u32 4294901760, %v5368_v34 }
 0x1d2   : > { %5373 = vtanh.f32 %v1258_v35  ;;  %2054 = vmatmul.f32.gmra.mxu1 %v6219_v21  ;;  %v5372_v36 = vpop.eup %5371  ;;  %v6384_v26 = vand.u32 4294901760, %v5370_v20 }
 0x1d3   : > { %v2224_v19 = vsub.f32 %v5368_v34, %v6378_v25  ;;  %v6389_v60 = vand.u32 4294901760, %v5372_v36 }
 0x1d4   : > { %v2230_v31 = vsub.f32 %v5370_v20, %v6384_v26  ;;  %v1311_v20 = vadd.f32 %v6370_v55, %v6111_v59 }
 0x1d5   : > { %2140 = vmatmul.f32.gmra.mxu3 %v6181_v52  ;;  %v2236_v32 = vsub.f32 %v5372_v36, %v6389_v60  ;;  %v2225_v10 = vand.u32 4294901760, %v2224_v19 }
 0x1d6   : > { %2107 = vmatmul.f32.gmra.mxu2 %v6221_v3  ;;  %v1398_v29 = vpop.f32.mrf.mxu0  ;;  %v6382_v49 = vpop.f32.mrf.mxu2  ;;  %v2231_v28 = vand.u32 4294901760, %v2230_v31 }
 0x1d7   : > { %v1435_v46 = vpop.f32.mrf.mxu1  ;;  %v6386_v39 = vpop.f32.mrf.mxu3  ;;  %v2226_v58 = vsub.f32 %v2224_v19, %v2225_v10  ;;  %v2237_v45 = vand.u32 4294901760, %v2236_v32  ;;  %v1399_v57 = vadd.f32 %v1398_v29, %v1356_v13 }
 0x1d8   : > { %v5374_v62 = vpop.eup %5373  ;;  %v2232_v50 = vsub.f32 %v2230_v31, %v2231_v28  ;;  %v1436_v35 = vadd.f32 %v1435_v46, %v1394_v54 }
 0x1d9   : > { %2021 = vmatmul.f32.gmra.mxu0 %v6263_v14  ;;  %v6392_v24 = vand.u32 4294901760, %v5374_v62  ;;  %v2227_v47 = vand.u32 4294901760, %v2226_v58  ;;  %v2238_v56 = vsub.f32 %v2236_v32, %v2237_v45 }
 0x1da   : > { %2060 = vmatmul.f32.gmra.mxu1 %v6251_v42  ;;  %v2233_v8 = vand.u32 4294901760, %v2232_v50 }
 0x1db   : > { %2165 = vmatpush.msrb.mxu0 %v6392_v24  ;;  %2316 = vmatpush.msrb.mxu3 %v6392_v24  ;;  %v2218_v2 = vsub.f32 %v5374_v62, %v6392_v24  ;;  %v2239_v16 = vand.u32 4294901760, %v2238_v56 }
 0x1dd   : > { %2167 = vmatpush.msrb.mxu0 %v6378_v25  ;;  %2272 = vmatpush.msrb.mxu2 %v2218_v2  ;;  %v2219_v41 = vand.u32 4294901760, %v2218_v2 }
 0x1de   : > { %2318 = vmatpush.msrb.mxu3 %v6378_v25  ;;  %2111 = vmatmul.f32.gmra.mxu2 %v6253_v37  ;;  %v1490_v53 = vpop.f32.mrf.mxu2  ;;  %v1403_v23 = vpop.f32.mrf.mxu0 }
 0x1df   : > { %2144 = vmatmul.f32.gmra.mxu3 %v6221_v3  ;;  %v1441_v48 = vpop.f32.mrf.mxu1  ;;  %2169 = vmatpush.msrb.mxu0 %v6384_v26  ;;  %v1527_v4 = vpop.f32.mrf.mxu3  ;;  %v2220_v6 = vsub.f32 %v2218_v2, %v2219_v41  ;;  %v1404_v44 = vadd.f32 %v1403_v23, %v1360_v5 }
 0x1e0   : > { %2275 = vmatpush.msrb.mxu2 %v2224_v19  ;;  %2320 = vmatpush.msrb.mxu3 %v6384_v26  ;;  %v1442_v15 = vadd.f32 %v1441_v48, %v1399_v57  ;;  %v1487_v19 = vadd.f32 %v6382_v49, %v1436_v35 }
 0x1e1   : > { %2171 = vmatpush.msrb.mxu0 %v6389_v60  ;;  %v2221_v7 = vand.u32 4294901760, %v2220_v6 }
 0x1e2   : > { %2278 = vmatpush.msrb.mxu2 %v2230_v31  ;;  %2322 = vmatpush.msrb.mxu3 %v6389_v60  ;;  %v1491_v29 = vadd.f32 %v1490_v53, %v1442_v15  ;;  %v1364_v31 = vadd.f32 %v6374_v11, %v1311_v20 }
 0x1e3   : > { %2066 = vmatmul.f32.gmra.mxu1 %v6275_v17  ;;  %2177 = vmatmul.f32.vlgmr.msrb.gmra.mxu0 %v6216_v61 }
 0x1e4   : > { %2363 = vmatpush.msra.mxu0 %v2219_v41  ;;  %2222 = vmatpush.msrb.mxu1 %v2221_v7  ;;  %v1528_v55 = vadd.f32 %v1527_v4, %v1491_v29 }
 0x1e5   : > { %2281 = vmatpush.msrb.mxu2 %v2236_v32  ;;  %v1524_v32 = vadd.f32 %v6386_v39, %v1487_v19 }
 0x1e6   : > { %2367 = vmatpush.msra.mxu0 %v2225_v10  ;;  %2228 = vmatpush.msrb.mxu1 %v2227_v47  ;;  %v1494_v30 = vpop.f32.mrf.mxu2  ;;  %v1408_v46 = vpop.f32.mrf.mxu0 }
 0x1e7   : > { %2148 = vmatmul.f32.gmra.mxu3 %v6253_v37  ;;  %2284 = vmatmul.f32.vlgmr.msrb.gmra.mxu2 %v6168_v33  ;;  %v1447_v34 = vpop.f32.mrf.mxu1  ;;  %v1531_v9 = vpop.f32.mrf.mxu3  ;;  %v1409_v2 = vadd.f32 %v1408_v46, %v1364_v31 }
 0x1e8   : > { %2371 = vmatpush.msra.mxu0 %v2231_v28  ;;  %v1448_v36 = vadd.f32 %v1447_v34, %v1404_v44  ;;  %2234 = vmatpush.msrb.mxu1 %v2233_v8 }
 0x1ea   : > { %2375 = vmatpush.msra.mxu0 %v2237_v45  ;;  %v1495_v62 = vadd.f32 %v1494_v30, %v1448_v36  ;;  %2240 = vmatpush.msrb.mxu1 %v2239_v16 }
 0x1eb   : > { %2185 = vmatmul.f32.gmra.mxu0 %v6248_v22  ;;  %2242 = vmatmul.f32.vlgmr.msrb.gmra.mxu1 %v6160_v1 }
 0x1ec   : > { %2406 = vmatpush.msra.mxu1 %v6392_v24  ;;  %v1532_v59 = vadd.f32 %v1531_v9, %v1495_v62 }
 0x1ee   : > { %2408 = vmatpush.msra.mxu1 %v6378_v25  ;;  %5375 = vtanh.f32 %v1532_v59  ;;  %v1498_v10 = vpop.f32.mrf.mxu2  ;;  %v6473_v59 = vpop.permute.xlu0 %1581 }
 0x1ef   : > { %2289 = vmatmul.f32.gmra.mxu2 %v6199_v12  ;;  %2326 = vmatmul.f32.vlgmr.msrb.gmra.mxu3 %v6179_v51  ;;  %v1453_v49 = vpop.f32.mrf.mxu1  ;;  %5377 = vtanh.f32 %v1528_v55  ;;  %v1535_v11 = vpop.f32.mrf.mxu3 }
 0x1f0   : > { %2410 = vmatpush.msra.mxu1 %v6384_v26  ;;  %v1454_v27 = vadd.f32 %v1453_v49, %v1409_v2  ;;  %5379 = vtanh.f32 %v1524_v32  ;;  %v6478_v2 = vpop.permute.xlu2 %1571  ;;  %v6481_v49 = vpop.permute.xlu1 %1576 }
 0x1f2   : > { %2412 = vmatpush.msra.mxu1 %v6389_v60  ;;  %v1499_v24 = vadd.f32 %v1498_v10, %v1454_v27 }
 0x1f3   : > { %2193 = vmatmul.f32.gmra.mxu0 %v6272_v40  ;;  %2246 = vmatmul.f32.gmra.mxu1 %v6181_v52 }
 0x1f4   : > { %v1536_v25 = vadd.f32 %v1535_v11, %v1499_v24  ;;  %v5376_v39 = vpop.eup %5375 }
 0x1f5   : > { %v5378_v41 = vpop.eup %5377  ;;  %v2444_v26 = vand.u32 4294901760, %v5376_v39 }
 0x1f6   : > { %5381 = vtanh.f32 %v1536_v25  ;;  %v5380_v53 = vpop.eup %5379  ;;  %v6439_v28 = vand.u32 4294901760, %v5378_v41 }
 0x1f7   : > { %2294 = vmatmul.f32.gmra.mxu2 %v6239_v38  ;;  %2332 = vmatmul.f32.gmra.mxu3 %v6219_v21  ;;  %v2502_v18 = vsub.f32 %v5376_v39, %v2444_v26  ;;  %v2448_v48 = vand.u32 4294901760, %v5380_v53 }
 0x1f8   : > { %v2508_v43 = vsub.f32 %v5378_v41, %v6439_v28 }
 0x1f9   : > { %v2514_v45 = vsub.f32 %v5380_v53, %v2448_v48  ;;  %v2503_v13 = vand.u32 4294901760, %v2502_v18 }
 0x1fa   : > { %v2509_v7 = vand.u32 4294901760, %v2508_v43 }
 0x1fb   : > { %2201 = vmatmul.f32.gmra.mxu0 %v6288_v0  ;;  %2250 = vmatmul.f32.gmra.mxu1 %v6221_v3  ;;  %v2504_v63 = vsub.f32 %v2502_v18, %v2503_v13  ;;  %v2515_v57 = vand.u32 4294901760, %v2514_v45 }
 0x1fc   : > { %v5382_v60 = vpop.eup %5381  ;;  %v2510_v54 = vsub.f32 %v2508_v43, %v2509_v7 }
 0x1fd   : > { %v6443_v4 = vpop.f32.mrf.mxu0  ;;  %v2442_v6 = vand.u32 4294901760, %v5382_v60  ;;  %v2505_v44 = vand.u32 4294901760, %v2504_v63  ;;  %v2516_v8 = vsub.f32 %v2514_v45, %v2515_v57 }
 0x1fe   : > { %v2511_v35 = vand.u32 4294901760, %v2510_v54 }
 0x1ff   : > { %2299 = vmatmul.f32.gmra.mxu2 %v6263_v14  ;;  %2338 = vmatmul.f32.gmra.mxu3 %v6251_v42  ;;  %v2496_v58 = vsub.f32 %v5382_v60, %v2442_v6  ;;  %v2517_v34 = vand.u32 4294901760, %v2516_v8 }
 0x200   : > { %2443 = vmatpush.msra.mxu2 %v2442_v6  ;;  %2594 = vmatpush.msrb.mxu1 %v2442_v6 }
 0x201   : > { %2550 = vmatpush.msrb.mxu0 %v2496_v58  ;;  %v2497_v23 = vand.u32 4294901760, %v2496_v58 }
 0x202   : > { %2445 = vmatpush.msra.mxu2 %v2444_v26  ;;  %2596 = vmatpush.msrb.mxu1 %v2444_v26 }
 0x203   : > { %2254 = vmatmul.f32.gmra.mxu1 %v6253_v37  ;;  %2377 = vmatmul.f32.vlgmr.msra.gmra.mxu0 %v6160_v1  ;;  %v2498_v50 = vsub.f32 %v2496_v58, %v2497_v23 }
 0x204   : > { %2447 = vmatpush.msra.mxu2 %v6439_v28  ;;  %2553 = vmatpush.msrb.mxu0 %v2502_v18 }
 0x205   : > { %2598 = vmatpush.msrb.mxu1 %v6439_v28  ;;  %v1630_v5 = vpop.f32.mrf.mxu0  ;;  %v6452_v47 = vpop.f32.mrf.mxu1  ;;  %v2499_v56 = vand.u32 4294901760, %v2498_v50 }
 0x206   : > { %2449 = vmatpush.msra.mxu2 %v2448_v48  ;;  %2556 = vmatpush.msrb.mxu0 %v2508_v43  ;;  %v6458_v30 = vpop.f32.mrf.mxu3 }
 0x207   : > { %2600 = vmatpush.msrb.mxu1 %v2448_v48  ;;  %2344 = vmatmul.f32.gmra.mxu3 %v6275_v17  ;;  %v6455_v15 = vpop.f32.mrf.mxu2 }
 0x208   : > { %2455 = vmatmul.f32.vlgmr.msra.gmra.mxu2 %v6216_v61  ;;  %2500 = vmatpush.msra.mxu3 %v2499_v56 }
 0x209   : > { %2641 = vmatpush.msrb.mxu2 %v2497_v23  ;;  %2559 = vmatpush.msrb.mxu0 %v2514_v45 }
 0x20a   : > { %2506 = vmatpush.msra.mxu3 %v2505_v44 }
 0x20b   : > { %2645 = vmatpush.msrb.mxu2 %v2503_v13  ;;  %2381 = vmatmul.f32.gmra.mxu0 %v6181_v52 }
 0x20c   : > { %2414 = vmatmul.f32.vlgmr.msra.gmra.mxu1 %v6160_v1  ;;  %2512 = vmatpush.msra.mxu3 %v2511_v35  ;;  %v5257_v35 = vld [vmem:[%s7346_s3 + $0x48] sm:$0xff] }
 0x20d   : > { %2649 = vmatpush.msrb.mxu2 %v2509_v7  ;;  %v1638_v9 = vpop.f32.mrf.mxu0  ;;  %v1691_v20 = vpop.f32.mrf.mxu1 }
 0x20e   : > { %2518 = vmatpush.msra.mxu3 %v2517_v34  ;;  %v1777_v36 = vpop.f32.mrf.mxu3  ;;  %v1639_v27 = vadd.f32 %v1638_v9, %v6481_v49 }
 0x20f   : > { %2653 = vmatpush.msrb.mxu2 %v2515_v57  ;;  %2520 = vmatmul.f32.vlgmr.msra.gmra.mxu3 %v6160_v1  ;;  %v1734_v61 = vpop.f32.mrf.mxu2 }
 0x210   : > { %2463 = vmatmul.f32.gmra.mxu2 %v6248_v22  ;;  %2684 = vmatpush.msrb.mxu3 %v2442_v6 }
 0x212   : > { %2686 = vmatpush.msrb.mxu3 %v2444_v26 }
 0x213   : > { %2385 = vmatmul.f32.gmra.mxu0 %v6221_v3 }
 0x214   : > { %2418 = vmatmul.f32.gmra.mxu1 %v6181_v52  ;;  %2688 = vmatpush.msrb.mxu3 %v6439_v28 }
 0x215   : > { %v1646_v16 = vpop.f32.mrf.mxu0  ;;  %v1695_v29 = vpop.f32.mrf.mxu1 }
 0x216   : > { %2690 = vmatpush.msrb.mxu3 %v2448_v48  ;;  %v1783_v22 = vpop.f32.mrf.mxu3  ;;  %v1696_v25 = vadd.f32 %v1695_v29, %v1639_v27  ;;  %v1647_v48 = vadd.f32 %v1646_v16, %v6473_v59 }
 0x217   : > { %2524 = vmatmul.f32.gmra.mxu3 %v6181_v52  ;;  %v1739_v62 = vpop.f32.mrf.mxu2 }
 0x218   : > { %2471 = vmatmul.f32.gmra.mxu2 %v6272_v40  ;;  %v1740_v28 = vadd.f32 %v1739_v62, %v1696_v25 }
 0x21b   : > { %2389 = vmatmul.f32.gmra.mxu0 %v6253_v37 }
 0x21c   : > { %2422 = vmatmul.f32.gmra.mxu1 %v6221_v3 }
 0x21e   : > { %v1822_v19 = vpop.f32.mrf.mxu0  ;;  %v1789_v32 = vpop.f32.mrf.mxu3 }
 0x21f   : > { %2528 = vmatmul.f32.gmra.mxu3 %v6221_v3  ;;  %v1699_v46 = vpop.f32.mrf.mxu1  ;;  %v1744_v31 = vpop.f32.mrf.mxu2 }
 0x220   : > { %2479 = vmatmul.f32.gmra.mxu2 %v6288_v0  ;;  %v1631_v0 = vadd.f32 %v1630_v5, %v6478_v2  ;;  %v1700_v6 = vadd.f32 %v1699_v46, %v1647_v48 }
 0x222   : > { %v1692_v24 = vadd.f32 %v1691_v20, %v1631_v0  ;;  %v1745_v7 = vadd.f32 %v1744_v31, %v1700_v6 }
 0x223   : > { %2562 = vmatmul.f32.vlgmr.msrb.gmra.mxu0 %v6168_v33  ;;  %v6487_v33 = vpop.permute.xlu0 %1566 }
 0x224   : > { %2426 = vmatmul.f32.gmra.mxu1 %v6253_v37  ;;  %v1623_v11 = vadd.f32 %v6443_v4, %v6487_v33  ;;  %v1735_v53 = vadd.f32 %v1734_v61, %v1692_v24  ;;  %v1784_v4 = vadd.f32 %v1783_v22, %v1740_v28 }
 0x226   : > { %v1826_v55 = vpop.f32.mrf.mxu0  ;;  %v1688_v39 = vadd.f32 %v6452_v47, %v1623_v11  ;;  %v1790_v47 = vadd.f32 %v1789_v32, %v1745_v7 }
 0x227   : > { %2532 = vmatmul.f32.gmra.mxu3 %v6253_v37  ;;  %v1859_v40 = vpop.f32.mrf.mxu1 }
 0x228   : > { %2655 = vmatmul.f32.vlgmr.msrb.gmra.mxu2 %v6160_v1  ;;  %v1730_v18 = vadd.f32 %v6455_v15, %v1688_v39 }
 0x229   : > { %v6483_v10 = vpop.f32.mrf.mxu2 }
 0x22b   : > { %2567 = vmatmul.f32.gmra.mxu0 %v6199_v12 }
 0x22c   : > { %2604 = vmatmul.f32.vlgmr.msrb.gmra.mxu1 %v6179_v51  ;;  %v1778_v51 = vadd.f32 %v1777_v36, %v1735_v53 }
 0x22e   : > { %v1830_v41 = vpop.f32.mrf.mxu0  ;;  %v1827_v43 = vadd.f32 %v1826_v55, %v1778_v51 }
 0x22f   : > { %2692 = vmatmul.f32.vlgmr.msrb.gmra.mxu3 %v6160_v1  ;;  %v1863_v26 = vpop.f32.mrf.mxu1  ;;  %v1772_v1 = vadd.f32 %v6458_v30, %v1730_v18  ;;  %v1831_v58 = vadd.f32 %v1830_v41, %v1784_v4 }
 0x230   : > { %2659 = vmatmul.f32.gmra.mxu2 %v6181_v52  ;;  %v6496_v60 = vpop.f32.mrf.mxu3  ;;  %v1864_v50 = vadd.f32 %v1863_v26, %v1827_v43 }
 0x231   : > { %v6498_v12 = vpop.f32.mrf.mxu2  ;;  %v1823_v23 = vadd.f32 %v1822_v19, %v1772_v1 }
 0x233   : > { %2572 = vmatmul.f32.gmra.mxu0 %v6239_v38  ;;  %v1860_v5 = vadd.f32 %v1859_v40, %v1823_v23 }
 0x234   : > { %2610 = vmatmul.f32.gmra.mxu1 %v6219_v21  ;;  %v5256_v21 = vld [vmem:[%s7346_s3 + $0x40] sm:$0xff] }
 0x236   : > { %v1834_v45 = vpop.f32.mrf.mxu0 }
 0x237   : > { %2696 = vmatmul.f32.gmra.mxu3 %v6181_v52  ;;  %v1867_v13 = vpop.f32.mrf.mxu1  ;;  %v2755_v52 = vsel %vm413_vm0, %v5256_v21, 0  ;;  %v1835_v56 = vadd.f32 %v1834_v45, %v1790_v47 }
 0x238   : > { %2663 = vmatmul.f32.gmra.mxu2 %v6221_v3  ;;  %v1868_v63 = vadd.f32 %v1867_v13, %v1831_v58  ;;  %v6507_v38 = vpop.f32.mrf.mxu3  ;;  %v6519_v15 = vand.u32 4294901760, %v2755_v52  ;;  %v5259_v58 = vld [vmem:[%s7346_s3 + $0x58] sm:$0xff] }
 0x239   : > { %v6512_v57 = vpop.f32.mrf.mxu2 }
 0x23a   : > { %5383 = vtanh.f32 %v1868_v63  ;;  %v6531_v9 = vsub.f32 %v2755_v52, %v6519_v15 }
 0x23b   : > { %2577 = vmatmul.f32.gmra.mxu0 %v6263_v14  ;;  %5385 = vtanh.f32 %v1864_v50 }
 0x23c   : > { %2616 = vmatmul.f32.gmra.mxu1 %v6251_v42  ;;  %5387 = vtanh.f32 %v1860_v5  ;;  %v6542_v29 = vand.u32 4294901760, %v6531_v9  ;;  %v2764_v5 = vsel %vm413_vm0, %v5259_v58, 0 }
 0x23e   : > { %v6517_v54 = vpop.f32.mrf.mxu0 }
 0x23f   : > { %2700 = vmatmul.f32.gmra.mxu3 %v6221_v3  ;;  %v1871_v44 = vpop.f32.mrf.mxu1  ;;  %v2758_v3 = vsel %vm413_vm0, %v5257_v35, 0  ;;  %v1917_v35 = vadd.f32 %v6512_v57, %v6481_v49 }
 0x240   : > { %v5384_v8 = vpop.eup %5383  ;;  %2667 = vmatmul.f32.gmra.mxu2 %v6253_v37  ;;  %v1872_v30 = vadd.f32 %v1871_v44, %v1835_v56  ;;  %v6523_v14 = vpop.f32.mrf.mxu3  ;;  %v6544_v62 = vand.u32 4294901760, %v2758_v3 }
 0x241   : > { %v6528_v42 = vpop.f32.mrf.mxu2  ;;  %v5386_v34 = vpop.eup %5385  ;;  %v6533_v20 = vand.u32 4294901760, %v5384_v8 }
 0x242   : > { %5389 = vtanh.f32 %v1872_v30  ;;  %v5388_v61 = vpop.eup %5387  ;;  %v6537_v36 = vand.u32 4294901760, %v5386_v34  ;;  %v6565_v27 = vsub.f32 %v2758_v3, %v6544_v62  ;;  %v1909_v30 = vadd.f32 %v6498_v12, %v6478_v2 }
 0x243   : > { %v2838_v19 = vsub.f32 %v5384_v8, %v6533_v20  ;;  %v6550_v46 = vand.u32 4294901760, %v5388_v61  ;;  %v6604_v8 = vand.u32 4294901760, %v2764_v5 }
 0x244   : > { %2622 = vmatmul.f32.gmra.mxu1 %v6275_v17  ;;  %v5258_v17 = vld [vmem:[%s7346_s3 + $0x50] sm:$0xff]  ;;  %v2844_v0 = vsub.f32 %v5386_v34, %v6537_v36  ;;  %v6577_v18 = vand.u32 4294901760, %v6565_v27 }
 0x245   : > { %v2850_v24 = vsub.f32 %v5388_v61, %v6550_v46  ;;  %v2839_v25 = vand.u32 4294901760, %v2838_v19  ;;  %v2761_v39 = vsel %vm413_vm0, %v5258_v17, 0  ;;  %v1974_v17 = vadd.f32 %v6523_v14, %v1917_v35 }
 0x246   : > { %v6539_v16 = vpop.f32.mrf.mxu0  ;;  %v2845_v26 = vand.u32 4294901760, %v2844_v0  ;;  %v6579_v48 = vand.u32 4294901760, %v2761_v39  ;;  %v2797_v7 = vsub.f32 %v6565_v27, %v6577_v18  ;;  %v6619_v57 = vsub.f32 %v2764_v5, %v6604_v8 }
 0x247   : > { %2704 = vmatmul.f32.gmra.mxu3 %v6253_v37  ;;  %v6547_v22 = vpop.f32.mrf.mxu1  ;;  %v2789_v37 = vsub.f32 %v6531_v9, %v6542_v29  ;;  %v2840_v6 = vsub.f32 %v2838_v19, %v2839_v25  ;;  %v2851_v1 = vand.u32 4294901760, %v2850_v24 }
 0x248   : > { %v5390_v31 = vpop.eup %5389  ;;  %v6552_v55 = vpop.f32.mrf.mxu3  ;;  %v2846_v23 = vsub.f32 %v2844_v0, %v2845_v26  ;;  %v6594_v50 = vsub.f32 %v2761_v39, %v6579_v48  ;;  %v6599_v56 = vand.u32 4294901760, %v2797_v7  ;;  %v6631_v39 = vand.u32 4294901760, %v6619_v57 }
 0x249   : > { %v6557_v40 = vpop.f32.mrf.mxu2  ;;  %v6559_v32 = vand.u32 4294901760, %v5390_v31  ;;  %v6574_v28 = vand.u32 4294901760, %v2789_v37  ;;  %v2841_v63 = vand.u32 4294901760, %v2840_v6  ;;  %v2852_v21 = vsub.f32 %v2850_v24, %v2851_v1 }
 0x24a   : > { %v2847_v52 = vand.u32 4294901760, %v2846_v23  ;;  %v6602_v44 = vand.u32 4294901760, %v6594_v50 }
 0x24b   : > { %2779 = vmatpush.msra.mxu0 %v6559_v32  ;;  %2930 = vmatpush.msra.mxu3 %v6559_v32  ;;  %v2832_v11 = vsub.f32 %v5390_v31, %v6559_v32  ;;  %v2853_v3 = vand.u32 4294901760, %v2852_v21  ;;  %v1970_v31 = vadd.f32 %v6507_v38, %v1909_v30 }
 0x24c   : > { %v2805_v12 = vsub.f32 %v6594_v50, %v6602_v44 }
 0x24d   : > { %2781 = vmatpush.msra.mxu0 %v6533_v20  ;;  %2886 = vmatpush.msra.mxu2 %v2832_v11  ;;  %v2833_v41 = vand.u32 4294901760, %v2832_v11 }
 0x24e   : > { %2932 = vmatpush.msra.mxu3 %v6533_v20  ;;  %v2017_v53 = vpop.f32.mrf.mxu0 }
 0x24f   : > { %v2055_v51 = vpop.f32.mrf.mxu1  ;;  %2783 = vmatpush.msra.mxu0 %v6537_v36  ;;  %2889 = vmatpush.msra.mxu2 %v2838_v19  ;;  %v2834_v4 = vsub.f32 %v2832_v11, %v2833_v41  ;;  %v1901_v19 = vadd.f32 %v6483_v10, %v6487_v33  ;;  %v2013_v10 = vadd.f32 %v6539_v16, %v1970_v31 }
 0x250   : > { %2934 = vmatpush.msra.mxu3 %v6537_v36  ;;  %v6583_v43 = vpop.f32.mrf.mxu3  ;;  %v2018_v38 = vadd.f32 %v2017_v53, %v1974_v17 }
 0x251   : > { %v2104_v45 = vpop.f32.mrf.mxu2  ;;  %2785 = vmatpush.msra.mxu0 %v6550_v46  ;;  %2892 = vmatpush.msra.mxu2 %v2844_v0  ;;  %v2835_v13 = vand.u32 4294901760, %v2834_v4  ;;  %v1966_v37 = vadd.f32 %v6496_v60, %v1901_v19  ;;  %v2056_v11 = vadd.f32 %v2055_v51, %v2013_v10  ;;  %v1925_v60 = vadd.f32 %v6528_v42, %v6473_v59 }
 0x252   : > { %2936 = vmatpush.msra.mxu3 %v6550_v46  ;;  %2791 = vmatmul.f32.vlgmr.msra.gmra.mxu0 %v6574_v28  ;;  %v2813_v42 = vsub.f32 %v6619_v57, %v6631_v39 }
 0x253   : > { %2977 = vmatpush.msrb.mxu0 %v2833_v41  ;;  %2836 = vmatpush.msra.mxu1 %v2835_v13  ;;  %v2008_v14 = vadd.f32 %v6517_v54, %v1966_v37  ;;  %v1978_v41 = vadd.f32 %v6552_v55, %v1925_v60 }
 0x254   : > { %2895 = vmatpush.msra.mxu2 %v2850_v24  ;;  %2940 = vmatmul.f32.vlgmr.msra.gmra.mxu3 %v6542_v29 }
 0x255   : > { %2981 = vmatpush.msrb.mxu0 %v2839_v25  ;;  %2842 = vmatpush.msra.mxu1 %v2841_v63  ;;  %v6628_v25 = vand.u32 4294901760, %v2805_v12  ;;  %v2050_v16 = vadd.f32 %v6547_v22, %v2008_v14 }
 0x256   : > { %2898 = vmatmul.f32.vlgmr.msra.gmra.mxu2 %v6531_v9  ;;  %v2022_v47 = vpop.f32.mrf.mxu0 }
 0x257   : > { %2985 = vmatpush.msrb.mxu0 %v2845_v26  ;;  %v2061_v34 = vpop.f32.mrf.mxu1  ;;  %2848 = vmatpush.msra.mxu1 %v2847_v52  ;;  %v2023_v22 = vadd.f32 %v2022_v47, %v1978_v41 }
 0x258   : > { %v2141_v61 = vpop.f32.mrf.mxu3  ;;  %v2062_v24 = vadd.f32 %v2061_v34, %v2018_v38 }
 0x259   : > { %2989 = vmatpush.msrb.mxu0 %v2851_v1  ;;  %v2108_v0 = vpop.f32.mrf.mxu2  ;;  %2854 = vmatpush.msra.mxu1 %v2853_v3 }
 0x25a   : > { %2799 = vmatmul.f32.gmra.mxu0 %v6599_v56  ;;  %2856 = vmatmul.f32.vlgmr.msra.gmra.mxu1 %v6519_v15  ;;  %v2109_v26 = vadd.f32 %v2108_v0, %v2062_v24 }
 0x25b   : > { %3020 = vmatpush.msrb.mxu1 %v6559_v32 }
 0x25c   : > { %2946 = vmatmul.f32.gmra.mxu3 %v6577_v18 }
 0x25d   : > { %3022 = vmatpush.msrb.mxu1 %v6533_v20  ;;  %v2105_v20 = vadd.f32 %v2104_v45, %v2056_v11 }
 0x25e   : > { %2903 = vmatmul.f32.gmra.mxu2 %v6565_v27 }
 0x25f   : > { %3024 = vmatpush.msrb.mxu1 %v6537_v36  ;;  %v2101_v36 = vadd.f32 %v6557_v40, %v2050_v16  ;;  %v2142_v4 = vadd.f32 %v2141_v61, %v2105_v20 }
 0x260   : > { %v2067_v32 = vpop.f32.mrf.mxu1  ;;  %v6637_v54 = vpop.f32.mrf.mxu0 }
 0x261   : > { %3026 = vmatpush.msrb.mxu1 %v6550_v46  ;;  %v2112_v53 = vpop.f32.mrf.mxu2  ;;  %v2138_v55 = vadd.f32 %v6583_v43, %v2101_v36  ;;  %v2068_v1 = vadd.f32 %v2067_v32, %v2023_v22  ;;  %v6649_v46 = vand.u32 4294901760, %v2813_v42 }
 0x262   : > { %v2145_v51 = vpop.f32.mrf.mxu3  ;;  %2807 = vmatmul.f32.gmra.mxu0 %v6628_v25  ;;  %2860 = vmatmul.f32.gmra.mxu1 %v6544_v62 }
 0x263   : > { %v2146_v6 = vadd.f32 %v2145_v51, %v2109_v26  ;;  %v2113_v40 = vadd.f32 %v2112_v53, %v2068_v1 }
 0x264   : > { %2952 = vmatmul.f32.gmra.mxu3 %v6602_v44 }
 0x265   : > { %5391 = vtanh.f32 %v2146_v6 }
 0x266   : > { %2908 = vmatmul.f32.gmra.mxu2 %v6594_v50  ;;  %5393 = vtanh.f32 %v2142_v4 }
 0x267   : > { %5395 = vtanh.f32 %v2138_v55 }
 0x268   : > { %v6651_v58 = vpop.f32.mrf.mxu0  ;;  %v6653_v45 = vpop.f32.mrf.mxu1 }
 0x26a   : > { %v2149_v13 = vpop.f32.mrf.mxu3  ;;  %v6655_v23 = vpop.f32.mrf.mxu2  ;;  %2815 = vmatmul.f32.gmra.mxu0 %v6649_v46  ;;  %2864 = vmatmul.f32.gmra.mxu1 %v6579_v48 }
 0x26b   : > { %v5392_v43 = vpop.eup %5391  ;;  %v2150_v7 = vadd.f32 %v2149_v13, %v2113_v40 }
 0x26c   : > { %2958 = vmatmul.f32.gmra.mxu3 %v6631_v39  ;;  %v5394_v63 = vpop.eup %5393  ;;  %v6661_v21 = vand.u32 4294901760, %v5392_v43 }
 0x26d   : > { %5397 = vtanh.f32 %v2150_v7  ;;  %v5396_v5 = vpop.eup %5395  ;;  %v3060_v30 = vand.u32 4294901760, %v5394_v63 }
 0x26e   : > { %2913 = vmatmul.f32.gmra.mxu2 %v6619_v57  ;;  %v3116_v3 = vsub.f32 %v5392_v43, %v6661_v21  ;;  %v3062_v61 = vand.u32 4294901760, %v5396_v5 }
 0x26f   : > { %v3122_v17 = vsub.f32 %v5394_v63, %v3060_v30  ;;  %v2187_v63 = vadd.f32 %v6651_v58, %v6478_v2 }
 0x270   : > { %v6663_v52 = vpop.f32.mrf.mxu0  ;;  %v6665_v47 = vpop.f32.mrf.mxu1  ;;  %v3128_v12 = vsub.f32 %v5396_v5, %v3062_v61  ;;  %v3117_v37 = vand.u32 4294901760, %v3116_v3 }
 0x271   : > { %v3123_v11 = vand.u32 4294901760, %v3122_v17  ;;  %v2195_v7 = vadd.f32 %v6663_v52, %v6481_v49 }
 0x272   : > { %v6667_v35 = vpop.f32.mrf.mxu2  ;;  %v6669_v34 = vpop.f32.mrf.mxu3  ;;  %2868 = vmatmul.f32.gmra.mxu1 %v6604_v8  ;;  %2991 = vmatmul.f32.vlgmr.msrb.gmra.mxu0 %v6519_v15  ;;  %v3118_v32 = vsub.f32 %v3116_v3, %v3117_v37  ;;  %v3129_v41 = vand.u32 4294901760, %v3128_v12 }
 0x273   : > { %v5398_v19 = vpop.eup %5397  ;;  %v3124_v26 = vsub.f32 %v3122_v17, %v3123_v11 }
 0x274   : > { %v3056_v31 = vand.u32 4294901760, %v5398_v19  ;;  %v3119_v53 = vand.u32 4294901760, %v3118_v32  ;;  %v3130_v51 = vsub.f32 %v3128_v12, %v3129_v41 }
 0x275   : > { %v3125_v22 = vand.u32 4294901760, %v3124_v26 }
 0x276   : > { %3057 = vmatpush.msrb.mxu2 %v3056_v31  ;;  %3208 = vmatpush.msra.mxu1 %v3056_v31  ;;  %v3110_v0 = vsub.f32 %v5398_v19, %v3056_v31  ;;  %v3131_v55 = vand.u32 4294901760, %v3130_v51 }
 0x278   : > { %v6674_v10 = vpop.f32.mrf.mxu0  ;;  %v2251_v38 = vpop.f32.mrf.mxu1  ;;  %3059 = vmatpush.msrb.mxu2 %v6661_v21  ;;  %3164 = vmatpush.msra.mxu0 %v3110_v0  ;;  %v3111_v14 = vand.u32 4294901760, %v3110_v0 }
 0x279   : > { %3210 = vmatpush.msra.mxu1 %v6661_v21 }
 0x27a   : > { %v2295_v24 = vpop.f32.mrf.mxu2  ;;  %v6678_v60 = vpop.f32.mrf.mxu3  ;;  %3061 = vmatpush.msrb.mxu2 %v3060_v30  ;;  %3167 = vmatpush.msra.mxu0 %v3116_v3  ;;  %v3112_v16 = vsub.f32 %v3110_v0, %v3111_v14  ;;  %v2248_v3 = vadd.f32 %v6665_v47, %v2187_v63 }
 0x27b   : > { %3212 = vmatpush.msra.mxu1 %v3060_v30  ;;  %2995 = vmatmul.f32.gmra.mxu0 %v6544_v62 }
 0x27c   : > { %3028 = vmatmul.f32.vlgmr.msrb.gmra.mxu1 %v6519_v15  ;;  %3063 = vmatpush.msrb.mxu2 %v3062_v61  ;;  %v3113_v20 = vand.u32 4294901760, %v3112_v16  ;;  %v2291_v58 = vadd.f32 %v6667_v35, %v2248_v3 }
 0x27d   : > { %3170 = vmatpush.msra.mxu0 %v3122_v17  ;;  %3214 = vmatpush.msra.mxu1 %v3062_v61 }
 0x27e   : > { %3069 = vmatmul.f32.vlgmr.msrb.gmra.mxu2 %v6574_v28  ;;  %3114 = vmatpush.msrb.mxu3 %v3113_v20 }
 0x27f   : > { %3255 = vmatpush.msra.mxu2 %v3111_v14  ;;  %3173 = vmatpush.msra.mxu0 %v3128_v12 }
 0x280   : > { %v2255_v42 = vpop.f32.mrf.mxu1  ;;  %v2378_v36 = vpop.f32.mrf.mxu0  ;;  %3120 = vmatpush.msrb.mxu3 %v3119_v53 }
 0x281   : > { %3259 = vmatpush.msra.mxu2 %v3117_v37 }
 0x282   : > { %v2300_v4 = vpop.f32.mrf.mxu2  ;;  %v2339_v6 = vpop.f32.mrf.mxu3  ;;  %3126 = vmatpush.msrb.mxu3 %v3125_v22 }
 0x283   : > { %3263 = vmatpush.msra.mxu2 %v3123_v11  ;;  %2999 = vmatmul.f32.gmra.mxu0 %v6579_v48 }
 0x284   : > { %3032 = vmatmul.f32.gmra.mxu1 %v6544_v62  ;;  %3132 = vmatpush.msrb.mxu3 %v3131_v55 }
 0x285   : > { %3267 = vmatpush.msra.mxu2 %v3129_v41  ;;  %3134 = vmatmul.f32.vlgmr.msrb.gmra.mxu3 %v6519_v15 }
 0x286   : > { %3077 = vmatmul.f32.gmra.mxu2 %v6599_v56  ;;  %3298 = vmatpush.msra.mxu3 %v3056_v31 }
 0x288   : > { %3300 = vmatpush.msra.mxu3 %v6661_v21  ;;  %v2382_v1 = vpop.f32.mrf.mxu0  ;;  %v2252_v21 = vadd.f32 %v2251_v38, %v2195_v7 }
 0x289   : > { %v2415_v40 = vpop.f32.mrf.mxu1 }
 0x28a   : > { %3302 = vmatpush.msra.mxu3 %v3060_v30  ;;  %v2345_v13 = vpop.f32.mrf.mxu3  ;;  %v2179_v30 = vadd.f32 %v6637_v54, %v6487_v33  ;;  %v2296_v52 = vadd.f32 %v2295_v24, %v2252_v21  ;;  %v2203_v54 = vadd.f32 %v6674_v10, %v6473_v59 }
 0x28b   : > { %v6688_v43 = vpop.f32.mrf.mxu2  ;;  %3003 = vmatmul.f32.gmra.mxu0 %v6604_v8 }
 0x28c   : > { %3036 = vmatmul.f32.gmra.mxu1 %v6579_v48  ;;  %3304 = vmatpush.msra.mxu3 %v3062_v61  ;;  %v2244_v61 = vadd.f32 %v6653_v45, %v2179_v30  ;;  %v2340_v47 = vadd.f32 %v2339_v6, %v2296_v52  ;;  %v2334_v45 = vadd.f32 %v6678_v60, %v2291_v58 }
 0x28d   : > { %3138 = vmatmul.f32.gmra.mxu3 %v6544_v62  ;;  %v2256_v12 = vadd.f32 %v2255_v42, %v2203_v54 }
 0x28e   : > { %3085 = vmatmul.f32.gmra.mxu2 %v6628_v25  ;;  %v2286_v0 = vadd.f32 %v6655_v23, %v2244_v61  ;;  %v2383_v11 = vadd.f32 %v2382_v1, %v2334_v45 }
 0x28f   : > { %v2301_v20 = vadd.f32 %v2300_v4, %v2256_v12 }
 0x290   : > { %v2386_v5 = vpop.f32.mrf.mxu0  ;;  %v2328_v14 = vadd.f32 %v6669_v34, %v2286_v0 }
 0x291   : > { %v2419_v19 = vpop.f32.mrf.mxu1  ;;  %v2387_v37 = vadd.f32 %v2386_v5, %v2340_v47  ;;  %v2346_v60 = vadd.f32 %v2345_v13, %v2301_v20 }
 0x292   : > { %v6701_v31 = vpop.f32.mrf.mxu3  ;;  %v2379_v32 = vadd.f32 %v2378_v36, %v2328_v14  ;;  %v2420_v41 = vadd.f32 %v2419_v19, %v2383_v11 }
 0x293   : > { %v6704_v17 = vpop.f32.mrf.mxu2  ;;  %3176 = vmatmul.f32.vlgmr.msra.gmra.mxu0 %v6531_v9 }
 0x294   : > { %3040 = vmatmul.f32.gmra.mxu1 %v6604_v8  ;;  %v2416_v23 = vadd.f32 %v2415_v40, %v2379_v32 }
 0x295   : > { %3142 = vmatmul.f32.gmra.mxu3 %v6579_v48 }
 0x296   : > { %3093 = vmatmul.f32.gmra.mxu2 %v6649_v46 }
 0x298   : > { %v2390_v38 = vpop.f32.mrf.mxu0 }
 0x299   : > { %v2423_v24 = vpop.f32.mrf.mxu1  ;;  %v2391_v34 = vadd.f32 %v2390_v38, %v2346_v60  ;;  %v2465_v60 = vadd.f32 %v6704_v17, %v6478_v2 }
 0x29a   : > { %v2424_v35 = vadd.f32 %v2423_v24, %v2387_v37  ;;  %v6716_v16 = vpop.f32.mrf.mxu3 }
 0x29b   : > { %v6718_v10 = vpop.f32.mrf.mxu2  ;;  %3181 = vmatmul.f32.gmra.mxu0 %v6565_v27 }
 0x29c   : > { %3218 = vmatmul.f32.vlgmr.msra.gmra.mxu1 %v6542_v29  ;;  %5399 = vtanh.f32 %v2424_v35  ;;  %v2473_v20 = vadd.f32 %v6718_v10, %v6481_v49  ;;  %v2457_v49 = vadd.f32 %v6688_v43, %v6487_v33  ;;  %v2526_v10 = vadd.f32 %v6716_v16, %v2465_v60 }
 0x29d   : > { %3146 = vmatmul.f32.gmra.mxu3 %v6604_v8  ;;  %5401 = vtanh.f32 %v2420_v41 }
 0x29e   : > { %3269 = vmatmul.f32.vlgmr.msra.gmra.mxu2 %v6519_v15  ;;  %5403 = vtanh.f32 %v2416_v23 }
 0x2a0   : > { %v6724_v51 = vpop.f32.mrf.mxu0 }
 0x2a1   : > { %v2427_v26 = vpop.f32.mrf.mxu1 }
 0x2a2   : > { %v2428_v53 = vadd.f32 %v2427_v26, %v2391_v34  ;;  %v6726_v42 = vpop.f32.mrf.mxu3  ;;  %v5400_v36 = vpop.eup %5399 }
 0x2a3   : > { %v6728_v22 = vpop.f32.mrf.mxu2  ;;  %3186 = vmatmul.f32.gmra.mxu0 %v6594_v50  ;;  %v5402_v4 = vpop.eup %5401  ;;  %v6734_v6 = vand.u32 4294901760, %v5400_v36  ;;  %v2530_v34 = vadd.f32 %v6726_v42, %v2473_v20 }
 0x2a4   : > { %5405 = vtanh.f32 %v2428_v53  ;;  %3224 = vmatmul.f32.gmra.mxu1 %v6577_v18  ;;  %v5404_v55 = vpop.eup %5403  ;;  %v6736_v1 = vand.u32 4294901760, %v5402_v4  ;;  %v2481_v33 = vadd.f32 %v6728_v22, %v6473_v59 }
 0x2a5   : > { %3306 = vmatmul.f32.vlgmr.msra.gmra.mxu3 %v6519_v15  ;;  %v3394_v63 = vsub.f32 %v5400_v36, %v6734_v6  ;;  %v6743_v21 = vand.u32 4294901760, %v5404_v55 }
 0x2a6   : > { %3273 = vmatmul.f32.gmra.mxu2 %v6544_v62  ;;  %v3400_v19 = vsub.f32 %v5402_v4, %v6736_v1 }
 0x2a7   : > { %v3406_v52 = vsub.f32 %v5404_v55, %v6743_v21  ;;  %v3395_v58 = vand.u32 4294901760, %v3394_v63 }
 0x2a8   : > { %v2568_v3 = vpop.f32.mrf.mxu0  ;;  %v3401_v47 = vand.u32 4294901760, %v3400_v19 }
 0x2a9   : > { %v6738_v40 = vpop.f32.mrf.mxu1  ;;  %v3396_v37 = vsub.f32 %v3394_v63, %v3395_v58  ;;  %v3407_v38 = vand.u32 4294901760, %v3406_v52 }
 0x2aa   : > { %v5406_v13 = vpop.eup %5405  ;;  %v6740_v7 = vpop.f32.mrf.mxu3  ;;  %v3402_v24 = vsub.f32 %v3400_v19, %v3401_v47 }
 0x2ab   : > { %v6745_v5 = vpop.f32.mrf.mxu2  ;;  %3191 = vmatmul.f32.gmra.mxu0 %v6619_v57  ;;  %v3334_v30 = vand.u32 4294901760, %v5406_v13  ;;  %v3397_v32 = vand.u32 4294901760, %v3396_v37  ;;  %v3408_v41 = vsub.f32 %v3406_v52, %v3407_v38  ;;  %v2534_v42 = vadd.f32 %v6740_v7, %v2481_v33 }
 0x2ac   : > { %3230 = vmatmul.f32.gmra.mxu1 %v6602_v44  ;;  %v3403_v23 = vand.u32 4294901760, %v3402_v24 }
 0x2ad   : > { %3335 = vmatpush.msrb.mxu0 %v3334_v30  ;;  %3486 = vmatpush.msrb.mxu3 %v3334_v30  ;;  %v3388_v61 = vsub.f32 %v5406_v13, %v3334_v30  ;;  %v3409_v36 = vand.u32 4294901760, %v3408_v41  ;;  %v2522_v13 = vadd.f32 %v6701_v31, %v2457_v49 }
 0x2ae   : > { %3277 = vmatmul.f32.gmra.mxu2 %v6579_v48  ;;  %3310 = vmatmul.f32.gmra.mxu3 %v6544_v62 }
 0x2af   : > { %3337 = vmatpush.msrb.mxu0 %v6734_v6  ;;  %3442 = vmatpush.msrb.mxu2 %v3388_v61  ;;  %v3389_v54 = vand.u32 4294901760, %v3388_v61  ;;  %v2564_v17 = vadd.f32 %v6724_v51, %v2522_v13 }
 0x2b0   : > { %3488 = vmatpush.msrb.mxu3 %v6734_v6  ;;  %v2573_v35 = vpop.f32.mrf.mxu0 }
 0x2b1   : > { %v2611_v0 = vpop.f32.mrf.mxu1  ;;  %3339 = vmatpush.msrb.mxu0 %v6736_v1  ;;  %3445 = vmatpush.msrb.mxu2 %v3394_v63  ;;  %v3390_v45 = vsub.f32 %v3388_v61, %v3389_v54  ;;  %v2574_v4 = vadd.f32 %v2573_v35, %v2530_v34  ;;  %v2569_v63 = vadd.f32 %v2568_v3, %v2526_v10 }
 0x2b2   : > { %3490 = vmatpush.msrb.mxu3 %v6736_v1  ;;  %v6757_v12 = vpop.f32.mrf.mxu3  ;;  %v2606_v31 = vadd.f32 %v6738_v40, %v2564_v17 }
 0x2b3   : > { %v2660_v14 = vpop.f32.mrf.mxu2  ;;  %3341 = vmatpush.msrb.mxu0 %v6743_v21  ;;  %3448 = vmatpush.msrb.mxu2 %v3400_v19  ;;  %v3391_v11 = vand.u32 4294901760, %v3390_v45  ;;  %v2612_v43 = vadd.f32 %v2611_v0, %v2569_v63 }
 0x2b4   : > { %3492 = vmatpush.msrb.mxu3 %v6743_v21  ;;  %3236 = vmatmul.f32.gmra.mxu1 %v6631_v39  ;;  %v2657_v22 = vadd.f32 %v6745_v5, %v2606_v31 }
 0x2b5   : > { %3347 = vmatmul.f32.vlgmr.msrb.gmra.mxu0 %v6574_v28  ;;  %3392 = vmatpush.msrb.mxu1 %v3391_v11  ;;  %v2661_v19 = vadd.f32 %v2660_v14, %v2612_v43 }
 0x2b6   : > { %3533 = vmatpush.msra.mxu0 %v3389_v54  ;;  %3451 = vmatpush.msrb.mxu2 %v3406_v52  ;;  %v2694_v40 = vadd.f32 %v6757_v12, %v2657_v22 }
 0x2b7   : > { %3281 = vmatmul.f32.gmra.mxu2 %v6604_v8  ;;  %3314 = vmatmul.f32.gmra.mxu3 %v6579_v48 }
 0x2b8   : > { %3537 = vmatpush.msra.mxu0 %v3395_v58  ;;  %3398 = vmatpush.msrb.mxu1 %v3397_v32  ;;  %v2578_v16 = vpop.f32.mrf.mxu0 }
 0x2b9   : > { %v2617_v26 = vpop.f32.mrf.mxu1  ;;  %v2579_v61 = vadd.f32 %v2578_v16, %v2534_v42 }
 0x2ba   : > { %3541 = vmatpush.msra.mxu0 %v3401_v47  ;;  %3404 = vmatpush.msrb.mxu1 %v3403_v23  ;;  %v2697_v53 = vpop.f32.mrf.mxu3  ;;  %v2618_v2 = vadd.f32 %v2617_v26, %v2574_v4 }
 0x2bb   : > { %v2664_v55 = vpop.f32.mrf.mxu2  ;;  %v2698_v52 = vadd.f32 %v2697_v53, %v2661_v19 }
 0x2bc   : > { %3545 = vmatpush.msra.mxu0 %v3407_v38  ;;  %3410 = vmatpush.msrb.mxu1 %v3409_v36  ;;  %v2665_v3 = vadd.f32 %v2664_v55, %v2618_v2 }
 0x2bd   : > { %3355 = vmatmul.f32.gmra.mxu0 %v6599_v56  ;;  %3412 = vmatmul.f32.vlgmr.msrb.gmra.mxu1 %v6519_v15 }
 0x2be   : > { %3576 = vmatpush.msra.mxu1 %v3334_v30 }
 0x2bf   : > { %3318 = vmatmul.f32.gmra.mxu3 %v6604_v8  ;;  %3454 = vmatmul.f32.vlgmr.msrb.gmra.mxu2 %v6531_v9 }
 0x2c0   : > { %3578 = vmatpush.msra.mxu1 %v6734_v6 }
 0x2c1   : > { %v2623_v30 = vpop.f32.mrf.mxu1 }
 0x2c2   : > { %3580 = vmatpush.msra.mxu1 %v6736_v1  ;;  %v2701_v51 = vpop.f32.mrf.mxu3  ;;  %v2624_v58 = vadd.f32 %v2623_v30, %v2579_v61 }
 0x2c3   : > { %v2702_v59 = vadd.f32 %v2701_v51, %v2665_v3  ;;  %v2668_v6 = vpop.f32.mrf.mxu2  ;;  %v6838_v51 = vpop.permute.xlu1 %2751 }
 0x2c4   : > { %3582 = vmatpush.msra.mxu1 %v6743_v21  ;;  %v2669_v1 = vadd.f32 %v2668_v6, %v2624_v58 }
 0x2c5   : > { %3363 = vmatmul.f32.gmra.mxu0 %v6628_v25  ;;  %3416 = vmatmul.f32.gmra.mxu1 %v6544_v62  ;;  %5407 = vtanh.f32 %v2702_v59 }
 0x2c6   : > { %5409 = vtanh.f32 %v2698_v52  ;;  %v6844_v52 = vpop.permute.xlu2 %2746 }
 0x2c7   : > { %3459 = vmatmul.f32.gmra.mxu2 %v6565_v27  ;;  %3496 = vmatmul.f32.vlgmr.msrb.gmra.mxu3 %v6542_v29  ;;  %5411 = vtanh.f32 %v2694_v40 }
 0x2ca   : > { %v2705_v7 = vpop.f32.mrf.mxu3 }
 0x2cb   : > { %v2706_v21 = vadd.f32 %v2705_v7, %v2669_v1  ;;  %v5408_v5 = vpop.eup %5407  ;;  %v6848_v58 = vpop.permute.xlu1 %2736 }
 0x2cc   : > { %v5410_v54 = vpop.eup %5409  ;;  %v6798_v0 = vand.u32 4294901760, %v5408_v5 }
 0x2cd   : > { %5413 = vtanh.f32 %v2706_v21  ;;  %3371 = vmatmul.f32.gmra.mxu0 %v6649_v46  ;;  %3420 = vmatmul.f32.gmra.mxu1 %v6579_v48  ;;  %v5412_v45 = vpop.eup %5411  ;;  %v6800_v12 = vand.u32 4294901760, %v5410_v54 }
 0x2ce   : > { %v3672_v14 = vsub.f32 %v5408_v5, %v6798_v0  ;;  %v6803_v11 = vand.u32 4294901760, %v5412_v45 }
 0x2cf   : > { %3464 = vmatmul.f32.gmra.mxu2 %v6594_v50  ;;  %3502 = vmatmul.f32.gmra.mxu3 %v6577_v18  ;;  %v6796_v47 = vpop.f32.mrf.mxu0  ;;  %v3678_v35 = vsub.f32 %v5410_v54, %v6800_v12 }
 0x2d0   : > { %v3684_v23 = vsub.f32 %v5412_v45, %v6803_v11  ;;  %v3673_v60 = vand.u32 4294901760, %v3672_v14 }
 0x2d1   : > { %v3679_v53 = vand.u32 4294901760, %v3678_v35 }
 0x2d2   : > { %v3674_v49 = vsub.f32 %v3672_v14, %v3673_v60  ;;  %v3685_v10 = vand.u32 4294901760, %v3684_v23 }
 0x2d3   : > { %v5414_v37 = vpop.eup %5413  ;;  %v3680_v4 = vsub.f32 %v3678_v35, %v3679_v53 }
 0x2d4   : > { %v3612_v38 = vand.u32 4294901760, %v5414_v37  ;;  %v3675_v63 = vand.u32 4294901760, %v3674_v49  ;;  %v3686_v2 = vsub.f32 %v3684_v23, %v3685_v10 }
 0x2d5   : > { %3424 = vmatmul.f32.gmra.mxu1 %v6604_v8  ;;  %3547 = vmatmul.f32.vlgmr.msra.gmra.mxu0 %v6519_v15  ;;  %v3681_v33 = vand.u32 4294901760, %v3680_v4 }
 0x2d6   : > { %3613 = vmatpush.msra.mxu2 %v3612_v38  ;;  %3764 = vmatpush.msrb.mxu1 %v3612_v38  ;;  %v3666_v24 = vsub.f32 %v5414_v37, %v3612_v38  ;;  %v3687_v16 = vand.u32 4294901760, %v3686_v2 }
 0x2d7   : > { %3469 = vmatmul.f32.gmra.mxu2 %v6619_v57  ;;  %3508 = vmatmul.f32.gmra.mxu3 %v6602_v44  ;;  %v6810_v32 = vpop.f32.mrf.mxu0  ;;  %v6812_v41 = vpop.f32.mrf.mxu1 }
 0x2d8   : > { %3615 = vmatpush.msra.mxu2 %v6798_v0  ;;  %3720 = vmatpush.msrb.mxu0 %v3666_v24  ;;  %v3667_v20 = vand.u32 4294901760, %v3666_v24  ;;  %v2941_v17 = vpop.f32.mrf.mxu3 }
 0x2d9   : > { %3766 = vmatpush.msrb.mxu1 %v6798_v0  ;;  %v6817_v34 = vpop.f32.mrf.mxu2 }
 0x2da   : > { %3617 = vmatpush.msra.mxu2 %v6800_v12  ;;  %3723 = vmatpush.msrb.mxu0 %v3672_v14  ;;  %v3668_v26 = vsub.f32 %v3666_v24, %v3667_v20 }
 0x2db   : > { %3768 = vmatpush.msrb.mxu1 %v6800_v12 }
 0x2dc   : > { %3619 = vmatpush.msra.mxu2 %v6803_v11  ;;  %3726 = vmatpush.msrb.mxu0 %v3678_v35  ;;  %v3669_v36 = vand.u32 4294901760, %v3668_v26 }
 0x2dd   : > { %3551 = vmatmul.f32.gmra.mxu0 %v6544_v62  ;;  %3584 = vmatmul.f32.vlgmr.msra.gmra.mxu1 %v6519_v15 }
 0x2de   : > { %3770 = vmatpush.msrb.mxu1 %v6803_v11  ;;  %3811 = vmatpush.msrb.mxu2 %v3667_v20 }
 0x2df   : > { %3514 = vmatmul.f32.gmra.mxu3 %v6631_v39  ;;  %3625 = vmatmul.f32.vlgmr.msra.gmra.mxu2 %v6574_v28  ;;  %v2808_v55 = vpop.f32.mrf.mxu0  ;;  %v2861_v13 = vpop.f32.mrf.mxu1 }
 0x2e0   : > { %3670 = vmatpush.msra.mxu3 %v3669_v36  ;;  %3729 = vmatpush.msrb.mxu0 %v3684_v23  ;;  %v2947_v42 = vpop.f32.mrf.mxu3  ;;  %v2809_v40 = vadd.f32 %v2808_v55, %v6844_v52 }
 0x2e1   : > { %3815 = vmatpush.msrb.mxu2 %v3673_v60  ;;  %v2904_v43 = vpop.f32.mrf.mxu2 }
 0x2e2   : > { %3676 = vmatpush.msra.mxu3 %v3675_v63  ;;  %v5265_v63 = vld [vmem:[%s7346_s3 + $0x68] sm:$0xff] }
 0x2e3   : > { %3819 = vmatpush.msrb.mxu2 %v3679_v53 }
 0x2e4   : > { %3682 = vmatpush.msra.mxu3 %v3681_v33 }
 0x2e5   : > { %3555 = vmatmul.f32.gmra.mxu0 %v6579_v48  ;;  %3588 = vmatmul.f32.gmra.mxu1 %v6544_v62 }
 0x2e6   : > { %3823 = vmatpush.msrb.mxu2 %v3685_v10  ;;  %3688 = vmatpush.msra.mxu3 %v3687_v16 }
 0x2e7   : > { %3633 = vmatmul.f32.gmra.mxu2 %v6599_v56  ;;  %3690 = vmatmul.f32.vlgmr.msra.gmra.mxu3 %v6519_v15  ;;  %v2816_v28 = vpop.f32.mrf.mxu0  ;;  %v2865_v31 = vpop.f32.mrf.mxu1 }
 0x2e8   : > { %3854 = vmatpush.msrb.mxu3 %v3612_v38  ;;  %v2953_v19 = vpop.f32.mrf.mxu3  ;;  %v2866_v1 = vadd.f32 %v2865_v31, %v2809_v40 }
 0x2e9   : > { %v2909_v3 = vpop.f32.mrf.mxu2 }
 0x2ea   : > { %3856 = vmatpush.msrb.mxu3 %v6798_v0 }
 0x2ec   : > { %3858 = vmatpush.msrb.mxu3 %v6800_v12  ;;  %v2910_v12 = vadd.f32 %v2909_v3, %v2866_v1 }
 0x2ed   : > { %3559 = vmatmul.f32.gmra.mxu0 %v6604_v8  ;;  %3592 = vmatmul.f32.gmra.mxu1 %v6579_v48 }
 0x2ee   : > { %3860 = vmatpush.msrb.mxu3 %v6803_v11  ;;  %v2954_v37 = vadd.f32 %v2953_v19, %v2910_v12 }
 0x2ef   : > { %3641 = vmatmul.f32.gmra.mxu2 %v6628_v25  ;;  %3694 = vmatmul.f32.gmra.mxu3 %v6544_v62  ;;  %v2869_v56 = vpop.f32.mrf.mxu1  ;;  %v2992_v30 = vpop.f32.mrf.mxu0 }
 0x2f0   : > { %v6846_v25 = vpop.permute.xlu0 %2741  ;;  %v2959_v21 = vpop.f32.mrf.mxu3 }
 0x2f1   : > { %v2914_v59 = vpop.f32.mrf.mxu2  ;;  %v2801_v6 = vadd.f32 %v6810_v32, %v6846_v25 }
 0x2f5   : > { %3596 = vmatmul.f32.gmra.mxu1 %v6604_v8  ;;  %3732 = vmatmul.f32.vlgmr.msrb.gmra.mxu0 %v6531_v9  ;;  %v2793_v9 = vadd.f32 %v6796_v47, %v6848_v58 }
 0x2f7   : > { %3649 = vmatmul.f32.gmra.mxu2 %v6649_v46  ;;  %3698 = vmatmul.f32.gmra.mxu3 %v6579_v48  ;;  %v2862_v46 = vadd.f32 %v2861_v13, %v2801_v6  ;;  %v2858_v7 = vadd.f32 %v6812_v41, %v2793_v9 }
 0x2f8   : > { %v2996_v61 = vpop.f32.mrf.mxu0 }
 0x2f9   : > { %v3029_v22 = vpop.f32.mrf.mxu1  ;;  %v2905_v45 = vadd.f32 %v2904_v43, %v2862_v46  ;;  %v2900_v47 = vadd.f32 %v6817_v34, %v2858_v7  ;;  %v5264_v34 = vld [vmem:[%s7346_s3 + $0x60] sm:$0xff]  ;;  %v3928_v43 = vsel %vm413_vm0, %v5265_v63, 0 }
 0x2fa   : > { %v6916_v19 = vand.u32 4294901760, %v3928_v43 }
 0x2fb   : > { %v2942_v14 = vadd.f32 %v2941_v17, %v2900_v47 }
 0x2fc   : > { %v6931_v1 = vsub.f32 %v3928_v43, %v6916_v19 }
 0x2fd   : > { %3737 = vmatmul.f32.gmra.mxu0 %v6565_v27  ;;  %3774 = vmatmul.f32.vlgmr.msrb.gmra.mxu1 %v6542_v29  ;;  %v2817_v27 = vadd.f32 %v2816_v28, %v6838_v51  ;;  %v2948_v29 = vadd.f32 %v2947_v42, %v2905_v45  ;;  %v2993_v41 = vadd.f32 %v2992_v30, %v2942_v14 }
 0x2ff   : > { %3702 = vmatmul.f32.gmra.mxu3 %v6604_v8  ;;  %3825 = vmatmul.f32.vlgmr.msrb.gmra.mxu2 %v6519_v15  ;;  %v2870_v38 = vadd.f32 %v2869_v56, %v2817_v27  ;;  %v2997_v11 = vadd.f32 %v2996_v61, %v2948_v29  ;;  %v3030_v26 = vadd.f32 %v3029_v22, %v2993_v41  ;;  %v5266_v22 = vld [vmem:[%s7346_s3 + $0x70] sm:$0xff] }
 0x300   : > { %v3000_v5 = vpop.f32.mrf.mxu0  ;;  %v3931_v7 = vsel %vm413_vm0, %v5266_v22, 0 }
 0x301   : > { %v3033_v54 = vpop.f32.mrf.mxu1  ;;  %v6860_v0 = vpop.f32.mrf.mxu2  ;;  %v3001_v24 = vadd.f32 %v3000_v5, %v2954_v37  ;;  %v6951_v14 = vand.u32 4294901760, %v3931_v7 }
 0x302   : > { %v3034_v60 = vadd.f32 %v3033_v54, %v2997_v11 }
 0x305   : > { %3742 = vmatmul.f32.gmra.mxu0 %v6594_v50  ;;  %3780 = vmatmul.f32.gmra.mxu1 %v6577_v18  ;;  %v2915_v50 = vadd.f32 %v2914_v59, %v2870_v38  ;;  %v6949_v38 = vand.u32 4294901760, %v6931_v1 }
 0x307   : > { %3829 = vmatmul.f32.gmra.mxu2 %v6544_v62  ;;  %3862 = vmatmul.f32.vlgmr.msrb.gmra.mxu3 %v6519_v15  ;;  %v3925_v15 = vsel %vm413_vm0, %v5264_v34, 0  ;;  %v2960_v53 = vadd.f32 %v2959_v21, %v2915_v50  ;;  %v3967_v50 = vsub.f32 %v6931_v1, %v6949_v38 }
 0x308   : > { %v3004_v35 = vpop.f32.mrf.mxu0  ;;  %v6868_v32 = vpop.f32.mrf.mxu3  ;;  %v6884_v4 = vand.u32 4294901760, %v3925_v15 }
 0x309   : > { %v3037_v20 = vpop.f32.mrf.mxu1  ;;  %v6870_v23 = vpop.f32.mrf.mxu2  ;;  %v3005_v36 = vadd.f32 %v3004_v35, %v2960_v53  ;;  %v5267_v35 = vld [vmem:[%s7346_s3 + $0x78] sm:$0xff] }
 0x30a   : > { %v3038_v18 = vadd.f32 %v3037_v20, %v3001_v24  ;;  %v3079_v22 = vadd.f32 %v6870_v23, %v6846_v25 }
 0x30c   : > { %5415 = vtanh.f32 %v3038_v18  ;;  %v3934_v18 = vsel %vm413_vm0, %v5267_v35, 0 }
 0x30d   : > { %3747 = vmatmul.f32.gmra.mxu0 %v6619_v57  ;;  %3786 = vmatmul.f32.gmra.mxu1 %v6602_v44  ;;  %5417 = vtanh.f32 %v3034_v60  ;;  %v6963_v60 = vsub.f32 %v3931_v7, %v6951_v14  ;;  %v6973_v63 = vand.u32 4294901760, %v3934_v18 }
 0x30e   : > { %5419 = vtanh.f32 %v3030_v26 }
 0x30f   : > { %3833 = vmatmul.f32.gmra.mxu2 %v6579_v48  ;;  %3866 = vmatmul.f32.gmra.mxu3 %v6544_v62  ;;  %v6892_v62 = vsub.f32 %v3925_v15, %v6884_v4 }
 0x310   : > { %v6880_v49 = vpop.f32.mrf.mxu3  ;;  %v6882_v10 = vpop.f32.mrf.mxu0 }
 0x311   : > { %v3041_v55 = vpop.f32.mrf.mxu1  ;;  %v6886_v57 = vpop.f32.mrf.mxu2  ;;  %v6909_v3 = vand.u32 4294901760, %v6892_v62 }
 0x312   : > { %v5416_v44 = vpop.eup %5415  ;;  %v3042_v13 = vadd.f32 %v3041_v55, %v3005_v36  ;;  %v3087_v43 = vadd.f32 %v6886_v57, %v6844_v52  ;;  %v3071_v57 = vadd.f32 %v6860_v0, %v6848_v58 }
 0x313   : > { %v5418_v2 = vpop.eup %5417  ;;  %v6895_v33 = vand.u32 4294901760, %v5416_v44  ;;  %v3959_v6 = vsub.f32 %v6892_v62, %v6909_v3 }
 0x314   : > { %5421 = vtanh.f32 %v3042_v13  ;;  %v5420_v17 = vpop.eup %5419  ;;  %v6900_v16 = vand.u32 4294901760, %v5418_v2  ;;  %v6971_v13 = vand.u32 4294901760, %v6963_v60 }
 0x315   : > { %3792 = vmatmul.f32.gmra.mxu1 %v6631_v39  ;;  %v6906_v42 = vand.u32 4294901760, %v5420_v17  ;;  %v4008_v30 = vsub.f32 %v5416_v44, %v6895_v33  ;;  %v6941_v12 = vand.u32 4294901760, %v3959_v6  ;;  %v6968_v44 = vand.u32 4294901760, %v3967_v50 }
 0x316   : > { %v4014_v59 = vsub.f32 %v5418_v2, %v6900_v16  ;;  %v3975_v2 = vsub.f32 %v6963_v60, %v6971_v13 }
 0x317   : > { %3837 = vmatmul.f32.gmra.mxu2 %v6604_v8  ;;  %3870 = vmatmul.f32.gmra.mxu3 %v6579_v48  ;;  %v4020_v40 = vsub.f32 %v5420_v17, %v6906_v42  ;;  %v4009_v46 = vand.u32 4294901760, %v4008_v30  ;;  %v6981_v17 = vsub.f32 %v3934_v18, %v6973_v63 }
 0x318   : > { %v6902_v28 = vpop.f32.mrf.mxu3  ;;  %v6904_v31 = vpop.f32.mrf.mxu0  ;;  %v4015_v5 = vand.u32 4294901760, %v4014_v59 }
 0x319   : > { %v6911_v39 = vpop.f32.mrf.mxu2  ;;  %v6913_v56 = vpop.f32.mrf.mxu1  ;;  %v4021_v47 = vand.u32 4294901760, %v4020_v40  ;;  %v4010_v37 = vsub.f32 %v4008_v30, %v4009_v46 }
 0x31a   : > { %v5422_v48 = vpop.eup %5421  ;;  %v4016_v24 = vsub.f32 %v4014_v59, %v4015_v5 }
 0x31b   : > { %v6918_v61 = vand.u32 4294901760, %v5422_v48  ;;  %v4011_v41 = vand.u32 4294901760, %v4010_v37  ;;  %v4022_v20 = vsub.f32 %v4020_v40, %v4021_v47 }
 0x31c   : > { %v4017_v34 = vand.u32 4294901760, %v4016_v24 }
 0x31d   : > { %3949 = vmatpush.msra.mxu0 %v6918_v61  ;;  %4100 = vmatpush.msra.mxu3 %v6918_v61  ;;  %v4002_v9 = vsub.f32 %v5422_v48, %v6918_v61  ;;  %v4023_v55 = vand.u32 4294901760, %v4022_v20 }
 0x31f   : > { %3874 = vmatmul.f32.gmra.mxu3 %v6604_v8  ;;  %3951 = vmatpush.msra.mxu0 %v6895_v33  ;;  %v4003_v21 = vand.u32 4294901760, %v4002_v9 }
 0x320   : > { %4056 = vmatpush.msra.mxu2 %v4002_v9  ;;  %4102 = vmatpush.msra.mxu3 %v6895_v33  ;;  %v6937_v54 = vpop.f32.mrf.mxu3  ;;  %v6939_v45 = vpop.f32.mrf.mxu0 }
 0x321   : > { %v6943_v27 = vpop.f32.mrf.mxu1  ;;  %v6945_v29 = vpop.f32.mrf.mxu2  ;;  %3953 = vmatpush.msra.mxu0 %v6900_v16  ;;  %v4004_v8 = vsub.f32 %v4002_v9, %v4003_v21 }
 0x322   : > { %4059 = vmatpush.msra.mxu2 %v4008_v30  ;;  %4104 = vmatpush.msra.mxu3 %v6900_v16 }
 0x323   : > { %3955 = vmatpush.msra.mxu0 %v6906_v42  ;;  %v4005_v11 = vand.u32 4294901760, %v4004_v8 }
 0x324   : > { %4062 = vmatpush.msra.mxu2 %v4014_v59  ;;  %4106 = vmatpush.msra.mxu3 %v6906_v42  ;;  %v6992_v59 = vand.u32 4294901760, %v6981_v17 }
 0x325   : > { %3961 = vmatmul.f32.vlgmr.msra.gmra.mxu0 %v6941_v12  ;;  %4006 = vmatpush.msra.mxu1 %v4005_v11 }
 0x326   : > { %4147 = vmatpush.msrb.mxu0 %v4003_v21  ;;  %4065 = vmatpush.msra.mxu2 %v4020_v40  ;;  %v3144_v40 = vadd.f32 %v6902_v28, %v3087_v43  ;;  %v3983_v23 = vsub.f32 %v6981_v17, %v6992_v59 }
 0x327   : > { %4012 = vmatpush.msra.mxu1 %v4011_v41  ;;  %4068 = vmatmul.f32.vlgmr.msra.gmra.mxu2 %v6892_v62 }
 0x328   : > { %4151 = vmatpush.msrb.mxu0 %v4009_v46  ;;  %v3192_v26 = vpop.f32.mrf.mxu0  ;;  %v3307_v15 = vpop.f32.mrf.mxu3  ;;  %4110 = vmatmul.f32.vlgmr.msra.gmra.mxu3 %v6909_v3  ;;  %v3188_v9 = vadd.f32 %v6939_v45, %v3144_v40  ;;  %v3136_v46 = vadd.f32 %v6868_v32, %v3071_v57 }
 0x329   : > { %v3231_v53 = vpop.f32.mrf.mxu1  ;;  %v3274_v36 = vpop.f32.mrf.mxu2  ;;  %4018 = vmatpush.msra.mxu1 %v4017_v34 }
 0x32a   : > { %4155 = vmatpush.msrb.mxu0 %v4015_v5  ;;  %v3232_v7 = vadd.f32 %v3231_v53, %v3188_v9  ;;  %v3178_v0 = vadd.f32 %v6882_v10, %v3136_v46  ;;  %v7016_v5 = vand.u32 4294901760, %v3983_v23 }
 0x32b   : > { %4024 = vmatpush.msra.mxu1 %v4023_v55 }
 0x32c   : > { %4159 = vmatpush.msrb.mxu0 %v4021_v47  ;;  %4026 = vmatmul.f32.vlgmr.msra.gmra.mxu1 %v6884_v4  ;;  %v3220_v45 = vadd.f32 %v6913_v56, %v3178_v0 }
 0x32d   : > { %3969 = vmatmul.f32.gmra.mxu0 %v6968_v44  ;;  %4190 = vmatpush.msrb.mxu1 %v6918_v61  ;;  %v6989_v61 = vand.u32 4294901760, %v3975_v2 }
 0x32f   : > { %4192 = vmatpush.msrb.mxu1 %v6895_v33  ;;  %4073 = vmatmul.f32.gmra.mxu2 %v6931_v1 }
 0x330   : > { %4116 = vmatmul.f32.gmra.mxu3 %v6949_v38 }
 0x331   : > { %4194 = vmatpush.msrb.mxu1 %v6900_v16  ;;  %v3237_v30 = vpop.f32.mrf.mxu1  ;;  %v3278_v48 = vpop.f32.mrf.mxu2  ;;  %v3140_v16 = vadd.f32 %v6880_v49, %v3079_v22 }
 0x332   : > { %v3311_v33 = vpop.f32.mrf.mxu3  ;;  %v6996_v6 = vpop.f32.mrf.mxu0  ;;  %v3279_v21 = vadd.f32 %v3278_v48, %v3232_v7 }
 0x333   : > { %4196 = vmatpush.msrb.mxu1 %v6906_v42  ;;  %v3183_v28 = vadd.f32 %v6904_v31, %v3140_v16  ;;  %v3095_v42 = vadd.f32 %v6911_v39, %v6838_v51 }
 0x334   : > { %4030 = vmatmul.f32.gmra.mxu1 %v6916_v19 }
 0x335   : > { %3977 = vmatmul.f32.gmra.mxu0 %v6989_v61  ;;  %v3226_v49 = vadd.f32 %v6943_v27, %v3183_v28  ;;  %v3148_v8 = vadd.f32 %v6937_v54, %v3095_v42  ;;  %v3271_v27 = vadd.f32 %v6945_v29, %v3220_v45 }
 0x337   : > { %4078 = vmatmul.f32.gmra.mxu2 %v6963_v60  ;;  %v3275_v32 = vadd.f32 %v3274_v36, %v3226_v49  ;;  %v3193_v39 = vadd.f32 %v3192_v26, %v3148_v8  ;;  %v3308_v35 = vadd.f32 %v3307_v15, %v3271_v27 }
 0x338   : > { %4122 = vmatmul.f32.gmra.mxu3 %v6971_v13 }
 0x339   : > { %v3312_v24 = vadd.f32 %v3311_v33, %v3275_v32  ;;  %v3238_v56 = vadd.f32 %v3237_v30, %v3193_v39 }
 0x33a   : > { %v3282_v47 = vpop.f32.mrf.mxu2  ;;  %v3315_v31 = vpop.f32.mrf.mxu3 }
 0x33b   : > { %v3316_v37 = vadd.f32 %v3315_v31, %v3279_v21  ;;  %v7020_v11 = vpop.f32.mrf.mxu0  ;;  %v7022_v10 = vpop.f32.mrf.mxu1  ;;  %v3283_v54 = vadd.f32 %v3282_v47, %v3238_v56 }
 0x33c   : > { %4034 = vmatmul.f32.gmra.mxu1 %v6951_v14 }
 0x33d   : > { %3985 = vmatmul.f32.gmra.mxu0 %v7016_v5  ;;  %5423 = vtanh.f32 %v3316_v37 }
 0x33e   : > { %5425 = vtanh.f32 %v3312_v24 }
 0x33f   : > { %4083 = vmatmul.f32.gmra.mxu2 %v6981_v17  ;;  %5427 = vtanh.f32 %v3308_v35 }
 0x340   : > { %4128 = vmatmul.f32.gmra.mxu3 %v6992_v59 }
 0x342   : > { %v3319_v41 = vpop.f32.mrf.mxu3  ;;  %v7029_v20 = vpop.f32.mrf.mxu2 }
 0x343   : > { %v3320_v29 = vadd.f32 %v3319_v41, %v3283_v54  ;;  %v7031_v50 = vpop.f32.mrf.mxu0  ;;  %v7033_v18 = vpop.f32.mrf.mxu1 }
 0x344   : > { %v5424_v34 = vpop.eup %5423  ;;  %4038 = vmatmul.f32.gmra.mxu1 %v6973_v63  ;;  %v3365_v41 = vadd.f32 %v7031_v50, %v6844_v52 }
 0x345   : > { %5429 = vtanh.f32 %v3320_v29  ;;  %4161 = vmatmul.f32.vlgmr.msrb.gmra.mxu0 %v6884_v4  ;;  %v5426_v26 = vpop.eup %5425  ;;  %v7037_v15 = vand.u32 4294901760, %v5424_v34 }
 0x346   : > { %v5428_v53 = vpop.eup %5427  ;;  %v7039_v36 = vand.u32 4294901760, %v5426_v26 }
 0x347   : > { %v4286_v22 = vsub.f32 %v5424_v34, %v7037_v15  ;;  %v7050_v33 = vand.u32 4294901760, %v5428_v53 }
 0x348   : > { %v4292_v57 = vsub.f32 %v5426_v26, %v7039_v36 }
 0x349   : > { %v4298_v9 = vsub.f32 %v5428_v53, %v7050_v33  ;;  %v4287_v23 = vand.u32 4294901760, %v4286_v22  ;;  %v3357_v53 = vadd.f32 %v7020_v11, %v6846_v25 }
 0x34a   : > { %v7041_v55 = vpop.f32.mrf.mxu2  ;;  %v7043_v2 = vpop.f32.mrf.mxu3  ;;  %v4293_v28 = vand.u32 4294901760, %v4292_v57 }
 0x34b   : > { %v5430_v43 = vpop.eup %5429  ;;  %v7045_v30 = vpop.f32.mrf.mxu0  ;;  %v4288_v45 = vsub.f32 %v4286_v22, %v4287_v23  ;;  %v4299_v32 = vand.u32 4294901760, %v4298_v9 }
 0x34c   : > { %v7047_v48 = vpop.f32.mrf.mxu1  ;;  %4198 = vmatmul.f32.vlgmr.msrb.gmra.mxu1 %v6884_v4  ;;  %v4226_v40 = vand.u32 4294901760, %v5430_v43  ;;  %v4294_v31 = vsub.f32 %v4292_v57, %v4293_v28 }
 0x34d   : > { %4165 = vmatmul.f32.gmra.mxu0 %v6916_v19  ;;  %v4289_v8 = vand.u32 4294901760, %v4288_v45  ;;  %v4300_v37 = vsub.f32 %v4298_v9, %v4299_v32 }
 0x34e   : > { %4227 = vmatpush.msrb.mxu2 %v4226_v40  ;;  %4378 = vmatpush.msra.mxu1 %v4226_v40  ;;  %v4280_v16 = vsub.f32 %v5430_v43, %v4226_v40  ;;  %v4295_v27 = vand.u32 4294901760, %v4294_v31  ;;  %v3422_v43 = vadd.f32 %v7047_v48, %v3365_v41 }
 0x34f   : > { %v4301_v54 = vand.u32 4294901760, %v4300_v37 }
 0x350   : > { %4229 = vmatpush.msrb.mxu2 %v7037_v15  ;;  %4334 = vmatpush.msra.mxu0 %v4280_v16  ;;  %v4281_v46 = vand.u32 4294901760, %v4280_v16 }
 0x351   : > { %4380 = vmatpush.msra.mxu1 %v7037_v15 }
 0x352   : > { %v3465_v7 = vpop.f32.mrf.mxu2  ;;  %v3503_v0 = vpop.f32.mrf.mxu3  ;;  %4231 = vmatpush.msrb.mxu2 %v7039_v36  ;;  %4337 = vmatpush.msra.mxu0 %v4286_v22  ;;  %v4282_v49 = vsub.f32 %v4280_v16, %v4281_v46 }
 0x353   : > { %v7061_v21 = vpop.f32.mrf.mxu0  ;;  %4382 = vmatpush.msra.mxu1 %v7039_v36  ;;  %v3466_v50 = vadd.f32 %v3465_v7, %v3422_v43 }
 0x354   : > { %v7059_v42 = vpop.f32.mrf.mxu1  ;;  %4233 = vmatpush.msrb.mxu2 %v7050_v33  ;;  %4340 = vmatpush.msra.mxu0 %v4292_v57  ;;  %v4283_v47 = vand.u32 4294901760, %v4282_v49  ;;  %v3418_v57 = vadd.f32 %v7033_v18, %v3357_v53  ;;  %v3373_v18 = vadd.f32 %v7045_v30, %v6838_v51 }
 0x355   : > { %4384 = vmatpush.msra.mxu1 %v7050_v33  ;;  %4169 = vmatmul.f32.gmra.mxu0 %v6951_v14 }
 0x356   : > { %4202 = vmatmul.f32.gmra.mxu1 %v6916_v19  ;;  %4239 = vmatmul.f32.vlgmr.msrb.gmra.mxu2 %v6941_v12 }
 0x357   : > { %4425 = vmatpush.msra.mxu2 %v4281_v46  ;;  %4284 = vmatpush.msrb.mxu3 %v4283_v47 }
 0x358   : > { %4343 = vmatpush.msra.mxu0 %v4298_v9 }
 0x359   : > { %4429 = vmatpush.msra.mxu2 %v4287_v23  ;;  %4290 = vmatpush.msrb.mxu3 %v4289_v8 }
 0x35a   : > { %v3470_v24 = vpop.f32.mrf.mxu2  ;;  %v3509_v39 = vpop.f32.mrf.mxu3 }
 0x35b   : > { %4433 = vmatpush.msra.mxu2 %v4293_v28  ;;  %v3552_v35 = vpop.f32.mrf.mxu0  ;;  %4296 = vmatpush.msrb.mxu3 %v4295_v27 }
 0x35c   : > { %v3585_v56 = vpop.f32.mrf.mxu1 }
 0x35d   : > { %4437 = vmatpush.msra.mxu2 %v4299_v32  ;;  %4302 = vmatpush.msrb.mxu3 %v4301_v54 }
 0x35e   : > { %4173 = vmatmul.f32.gmra.mxu0 %v6973_v63  ;;  %4206 = vmatmul.f32.gmra.mxu1 %v6951_v14 }
 0x35f   : > { %4247 = vmatmul.f32.gmra.mxu2 %v6968_v44  ;;  %4304 = vmatmul.f32.vlgmr.msrb.gmra.mxu3 %v6884_v4 }
 0x360   : > { %4468 = vmatpush.msra.mxu3 %v4226_v40  ;;  %v3349_v40 = vadd.f32 %v6996_v6, %v6848_v58 }
 0x362   : > { %4470 = vmatpush.msra.mxu3 %v7037_v15  ;;  %v3515_v29 = vpop.f32.mrf.mxu3  ;;  %v7076_v34 = vpop.f32.mrf.mxu2  ;;  %v3414_v11 = vadd.f32 %v7022_v10, %v3349_v40  ;;  %v3461_v15 = vadd.f32 %v7041_v55, %v3418_v57  ;;  %v3426_v10 = vadd.f32 %v7059_v42, %v3373_v18 }
 0x363   : > { %v3556_v22 = vpop.f32.mrf.mxu0 }
 0x364   : > { %v3589_v26 = vpop.f32.mrf.mxu1  ;;  %4472 = vmatpush.msra.mxu3 %v7039_v36  ;;  %v3510_v36 = vadd.f32 %v3509_v39, %v3466_v50  ;;  %v3456_v6 = vadd.f32 %v7029_v20, %v3414_v11  ;;  %v3504_v48 = vadd.f32 %v3503_v0, %v3461_v15  ;;  %v3471_v49 = vadd.f32 %v3470_v24, %v3426_v10 }
 0x366   : > { %4474 = vmatpush.msra.mxu3 %v7050_v33  ;;  %4210 = vmatmul.f32.gmra.mxu1 %v6973_v63  ;;  %v3557_v33 = vadd.f32 %v3556_v22, %v3510_v36  ;;  %v3498_v46 = vadd.f32 %v7043_v2, %v3456_v6  ;;  %v3553_v55 = vadd.f32 %v3552_v35, %v3504_v48 }
 0x367   : > { %4255 = vmatmul.f32.gmra.mxu2 %v6989_v61  ;;  %4308 = vmatmul.f32.gmra.mxu3 %v6916_v19  ;;  %v3516_v45 = vadd.f32 %v3515_v29, %v3471_v49 }
 0x368   : > { %4346 = vmatmul.f32.vlgmr.msra.gmra.mxu0 %v6892_v62  ;;  %v3549_v7 = vadd.f32 %v7061_v21, %v3498_v46  ;;  %v3590_v20 = vadd.f32 %v3589_v26, %v3553_v55 }
 0x36a   : > { %v7095_v16 = vpop.f32.mrf.mxu2  ;;  %v7097_v9 = vpop.f32.mrf.mxu3  ;;  %v3586_v0 = vadd.f32 %v3585_v56, %v3549_v7 }
 0x36b   : > { %v3560_v30 = vpop.f32.mrf.mxu0 }
 0x36c   : > { %v3593_v23 = vpop.f32.mrf.mxu1  ;;  %v3561_v2 = vadd.f32 %v3560_v30, %v3516_v45 }
 0x36d   : > { %v3594_v28 = vadd.f32 %v3593_v23, %v3557_v33 }
 0x36e   : > { %4388 = vmatmul.f32.vlgmr.msra.gmra.mxu1 %v6909_v3 }
 0x36f   : > { %4263 = vmatmul.f32.gmra.mxu2 %v7016_v5  ;;  %4312 = vmatmul.f32.gmra.mxu3 %v6951_v14  ;;  %5431 = vtanh.f32 %v3594_v28 }
 0x370   : > { %4351 = vmatmul.f32.gmra.mxu0 %v6931_v1  ;;  %5433 = vtanh.f32 %v3590_v20 }
 0x371   : > { %5435 = vtanh.f32 %v3586_v0 }
 0x372   : > { %v7106_v42 = vpop.f32.mrf.mxu2  ;;  %v7108_v32 = vpop.f32.mrf.mxu3 }
 0x373   : > { %v7122_v54 = vpop.f32.mrf.mxu0  ;;  %v3643_v45 = vadd.f32 %v7106_v42, %v6844_v52 }
 0x374   : > { %v3597_v21 = vpop.f32.mrf.mxu1 }
 0x375   : > { %v3598_v47 = vadd.f32 %v3597_v21, %v3561_v2  ;;  %v5432_v31 = vpop.eup %5431 }
 0x376   : > { %4394 = vmatmul.f32.gmra.mxu1 %v6949_v38  ;;  %v5434_v8 = vpop.eup %5433  ;;  %v7114_v37 = vand.u32 4294901760, %v5432_v31 }
 0x377   : > { %5437 = vtanh.f32 %v3598_v47  ;;  %4316 = vmatmul.f32.gmra.mxu3 %v6973_v63  ;;  %4439 = vmatmul.f32.vlgmr.msra.gmra.mxu2 %v6884_v4  ;;  %v5436_v27 = vpop.eup %5435  ;;  %v7120_v35 = vand.u32 4294901760, %v5434_v8  ;;  %v3635_v47 = vadd.f32 %v7095_v16, %v6846_v25 }
 0x378   : > { %4356 = vmatmul.f32.gmra.mxu0 %v6963_v60  ;;  %v4564_v29 = vsub.f32 %v5432_v31, %v7114_v37  ;;  %v7125_v26 = vand.u32 4294901760, %v5436_v27 }
 0x379   : > { %v4570_v22 = vsub.f32 %v5434_v8, %v7120_v35  ;;  %v3627_v8 = vadd.f32 %v7076_v34, %v6848_v58  ;;  %v3696_v52 = vadd.f32 %v7108_v32, %v3635_v47 }
 0x37a   : > { %v7116_v24 = vpop.f32.mrf.mxu2  ;;  %v7118_v39 = vpop.f32.mrf.mxu3  ;;  %v4576_v57 = vsub.f32 %v5436_v27, %v7125_v26  ;;  %v4565_v50 = vand.u32 4294901760, %v4564_v29 }
 0x37b   : > { %v4571_v6 = vand.u32 4294901760, %v4570_v22  ;;  %v3738_v23 = vpop.f32.mrf.mxu0  ;;  %v3700_v31 = vadd.f32 %v7118_v39, %v3643_v45  ;;  %v3651_v25 = vadd.f32 %v7116_v24, %v6838_v51 }
 0x37c   : > { %v7127_v53 = vpop.f32.mrf.mxu1  ;;  %v4566_v48 = vsub.f32 %v4564_v29, %v4565_v50  ;;  %v4577_v33 = vand.u32 4294901760, %v4576_v57 }
 0x37d   : > { %v5438_v56 = vpop.eup %5437  ;;  %v4572_v46 = vsub.f32 %v4570_v22, %v4571_v6 }
 0x37e   : > { %v4504_v41 = vand.u32 4294901760, %v5438_v56  ;;  %4400 = vmatmul.f32.gmra.mxu1 %v6971_v13  ;;  %v4567_v55 = vand.u32 4294901760, %v4566_v48  ;;  %v4578_v28 = vsub.f32 %v4576_v57, %v4577_v33 }
 0x37f   : > { %4443 = vmatmul.f32.gmra.mxu2 %v6916_v19  ;;  %4476 = vmatmul.f32.vlgmr.msra.gmra.mxu3 %v6884_v4  ;;  %v4573_v20 = vand.u32 4294901760, %v4572_v46 }
 0x380   : > { %v4558_v43 = vsub.f32 %v5438_v56, %v4504_v41  ;;  %4361 = vmatmul.f32.gmra.mxu0 %v6981_v17  ;;  %4656 = vmatpush.msrb.mxu3 %v4504_v41  ;;  %v4579_v30 = vand.u32 4294901760, %v4578_v28  ;;  %v3692_v56 = vadd.f32 %v7097_v9, %v3627_v8  ;;  %v7201_v8 = vpop.permute.xlu0 %3911 }
 0x381   : > { %4505 = vmatpush.msrb.mxu0 %v4504_v41 }
 0x382   : > { %4612 = vmatpush.msrb.mxu2 %v4558_v43  ;;  %v4559_v40 = vand.u32 4294901760, %v4558_v43  ;;  %4658 = vmatpush.msrb.mxu3 %v7114_v37  ;;  %v7136_v11 = vpop.f32.mrf.mxu3  ;;  %v7138_v15 = vpop.f32.mrf.mxu2 }
 0x383   : > { %4507 = vmatpush.msrb.mxu0 %v7114_v37  ;;  %v3743_v0 = vpop.f32.mrf.mxu0 }
 0x384   : > { %4615 = vmatpush.msrb.mxu2 %v4564_v29  ;;  %v4560_v36 = vsub.f32 %v4558_v43, %v4559_v40  ;;  %4660 = vmatpush.msrb.mxu3 %v7120_v35  ;;  %v3781_v10 = vpop.f32.mrf.mxu1  ;;  %v3744_v42 = vadd.f32 %v3743_v0, %v3700_v31  ;;  %v3734_v43 = vadd.f32 %v7122_v54, %v3692_v56 }
 0x385   : > { %4509 = vmatpush.msrb.mxu0 %v7120_v35 }
 0x386   : > { %4618 = vmatpush.msrb.mxu2 %v4570_v22  ;;  %v4561_v18 = vand.u32 4294901760, %v4560_v36  ;;  %4662 = vmatpush.msrb.mxu3 %v7125_v26  ;;  %v3776_v32 = vadd.f32 %v7127_v53, %v3734_v43 }
 0x387   : > { %4406 = vmatmul.f32.gmra.mxu1 %v6992_v59  ;;  %4511 = vmatpush.msrb.mxu0 %v7125_v26 }
 0x388   : > { %4447 = vmatmul.f32.gmra.mxu2 %v6951_v14  ;;  %4480 = vmatmul.f32.gmra.mxu3 %v6916_v19 }
 0x389   : > { %4517 = vmatmul.f32.vlgmr.msrb.gmra.mxu0 %v6941_v12  ;;  %4562 = vmatpush.msrb.mxu1 %v4561_v18  ;;  %v7179_v18 = vpop.permute.xlu2 %3906 }
 0x38a   : > { %4703 = vmatpush.msra.mxu0 %v4559_v40  ;;  %4621 = vmatpush.msrb.mxu2 %v4576_v57  ;;  %v3830_v7 = vpop.f32.mrf.mxu2  ;;  %v3863_v49 = vpop.f32.mrf.mxu3 }
 0x38b   : > { %4568 = vmatpush.msrb.mxu1 %v4567_v55  ;;  %v3748_v16 = vpop.f32.mrf.mxu0 }
 0x38c   : > { %4707 = vmatpush.msra.mxu0 %v4565_v50  ;;  %v3787_v2 = vpop.f32.mrf.mxu1 }
 0x38d   : > { %4574 = vmatpush.msrb.mxu1 %v4573_v20  ;;  %v3788_v29 = vadd.f32 %v3787_v2, %v3744_v42 }
 0x38e   : > { %4711 = vmatpush.msra.mxu0 %v4571_v6 }
 0x38f   : > { %4580 = vmatpush.msrb.mxu1 %v4579_v30 }
 0x390   : > { %4715 = vmatpush.msra.mxu0 %v4577_v33  ;;  %4451 = vmatmul.f32.gmra.mxu2 %v6973_v63 }
 0x391   : > { %4484 = vmatmul.f32.gmra.mxu3 %v6951_v14  ;;  %4525 = vmatmul.f32.gmra.mxu0 %v6968_v44 }
 0x392   : > { %4582 = vmatmul.f32.vlgmr.msrb.gmra.mxu1 %v6884_v4  ;;  %v3867_v21 = vpop.f32.mrf.mxu3  ;;  %v3834_v27 = vpop.f32.mrf.mxu2 }
 0x393   : > { %4746 = vmatpush.msra.mxu1 %v4504_v41  ;;  %v3739_v41 = vadd.f32 %v3738_v23, %v3696_v52  ;;  %v3835_v34 = vadd.f32 %v3834_v27, %v3788_v29 }
 0x394   : > { %v3793_v54 = vpop.f32.mrf.mxu1 }
 0x395   : > { %4748 = vmatpush.msra.mxu1 %v7114_v37  ;;  %v3782_v58 = vadd.f32 %v3781_v10, %v3739_v41  ;;  %v3704_v37 = vadd.f32 %v7136_v11, %v3651_v25 }
 0x397   : > { %4750 = vmatpush.msra.mxu1 %v7120_v35  ;;  %v3831_v39 = vadd.f32 %v3830_v7, %v3782_v58  ;;  %v3749_v51 = vadd.f32 %v3748_v16, %v3704_v37 }
 0x398   : > { %4624 = vmatmul.f32.vlgmr.msrb.gmra.mxu2 %v6892_v62 }
 0x399   : > { %4752 = vmatpush.msra.mxu1 %v7125_v26  ;;  %4488 = vmatmul.f32.gmra.mxu3 %v6973_v63  ;;  %v3827_v26 = vadd.f32 %v7138_v15, %v3776_v32  ;;  %v3868_v24 = vadd.f32 %v3867_v21, %v3831_v39  ;;  %v3794_v57 = vadd.f32 %v3793_v54, %v3749_v51 }
 0x39a   : > { %4533 = vmatmul.f32.gmra.mxu0 %v6989_v61  ;;  %4586 = vmatmul.f32.gmra.mxu1 %v6916_v19  ;;  %v3871_v9 = vpop.f32.mrf.mxu3  ;;  %v3838_v22 = vpop.f32.mrf.mxu2 }
 0x39b   : > { %v3872_v35 = vadd.f32 %v3871_v9, %v3835_v34  ;;  %v3864_v40 = vadd.f32 %v3863_v49, %v3827_v26  ;;  %v3839_v50 = vadd.f32 %v3838_v22, %v3794_v57  ;;  %v7214_v26 = vpop.permute.xlu1 %3916 }
 0x39d   : > { %5439 = vtanh.f32 %v3872_v35 }
 0x39e   : > { %5441 = vtanh.f32 %v3868_v24 }
 0x39f   : > { %5443 = vtanh.f32 %v3864_v40 }
 0x3a0   : > { %4629 = vmatmul.f32.gmra.mxu2 %v6931_v1 }
 0x3a1   : > { %4666 = vmatmul.f32.vlgmr.msrb.gmra.mxu3 %v6909_v3 }
 0x3a2   : > { %4541 = vmatmul.f32.gmra.mxu0 %v7016_v5  ;;  %4590 = vmatmul.f32.gmra.mxu1 %v6951_v14  ;;  %v3875_v53 = vpop.f32.mrf.mxu3  ;;  %v3962_v11 = vpop.f32.mrf.mxu0 }
 0x3a3   : > { %v3876_v15 = vadd.f32 %v3875_v53, %v3839_v50  ;;  %v5440_v36 = vpop.eup %5439  ;;  %v3963_v48 = vadd.f32 %v3962_v11, %v7179_v18 }
 0x3a4   : > { %v5442_v6 = vpop.eup %5441  ;;  %v7183_v33 = vand.u32 4294901760, %v5440_v36 }
 0x3a5   : > { %5445 = vtanh.f32 %v3876_v15  ;;  %v5444_v23 = vpop.eup %5443  ;;  %v7188_v7 = vand.u32 4294901760, %v5442_v6 }
 0x3a6   : > { %v4842_v45 = vsub.f32 %v5440_v36, %v7183_v33  ;;  %v7193_v2 = vand.u32 4294901760, %v5444_v23 }
 0x3a7   : > { %v4848_v31 = vsub.f32 %v5442_v6, %v7188_v7 }
 0x3a8   : > { %4634 = vmatmul.f32.gmra.mxu2 %v6963_v60  ;;  %v4854_v42 = vsub.f32 %v5444_v23, %v7193_v2  ;;  %v4843_v56 = vand.u32 4294901760, %v4842_v45  ;;  %v7222_v23 = vpop.permute.xlu2 %3921 }
 0x3a9   : > { %4672 = vmatmul.f32.gmra.mxu3 %v6949_v38  ;;  %v4027_v46 = vpop.f32.mrf.mxu1  ;;  %v4849_v34 = vand.u32 4294901760, %v4848_v31 }
 0x3aa   : > { %4594 = vmatmul.f32.gmra.mxu1 %v6973_v63  ;;  %4717 = vmatmul.f32.vlgmr.msra.gmra.mxu0 %v6884_v4  ;;  %v3970_v10 = vpop.f32.mrf.mxu0  ;;  %v4028_v55 = vadd.f32 %v4027_v46, %v3963_v48  ;;  %v4069_v28 = vpop.f32.mrf.mxu2  ;;  %v4844_v37 = vsub.f32 %v4842_v45, %v4843_v56  ;;  %v4855_v39 = vand.u32 4294901760, %v4854_v42 }
 0x3ab   : > { %v5446_v49 = vpop.eup %5445  ;;  %v4111_v20 = vpop.f32.mrf.mxu3  ;;  %v3971_v27 = vadd.f32 %v3970_v10, %v7201_v8  ;;  %v4850_v54 = vsub.f32 %v4848_v31, %v4849_v34 }
 0x3ac   : > { %v4070_v30 = vadd.f32 %v4069_v28, %v4028_v55  ;;  %v7190_v0 = vand.u32 4294901760, %v5446_v49  ;;  %v4845_v24 = vand.u32 4294901760, %v4844_v37  ;;  %v4856_v22 = vsub.f32 %v4854_v42, %v4855_v39 }
 0x3ad   : > { %v4851_v53 = vand.u32 4294901760, %v4850_v54 }
 0x3ae   : > { %v7195_v21 = vadd.f32 %v4111_v20, %v4070_v30  ;;  %4783 = vmatpush.msra.mxu2 %v7190_v0  ;;  %4934 = vmatpush.msrb.mxu1 %v7190_v0  ;;  %v4836_v47 = vsub.f32 %v5446_v49, %v7190_v0  ;;  %v4857_v6 = vand.u32 4294901760, %v4856_v22 }
 0x3b0   : > { %4785 = vmatpush.msra.mxu2 %v7183_v33  ;;  %v4837_v52 = vand.u32 4294901760, %v4836_v47  ;;  %4890 = vmatpush.msrb.mxu0 %v4836_v47 }
 0x3b1   : > { %4678 = vmatmul.f32.gmra.mxu3 %v6971_v13  ;;  %v4031_v41 = vpop.f32.mrf.mxu1  ;;  %4639 = vmatmul.f32.gmra.mxu2 %v6981_v17 }
 0x3b2   : > { %4721 = vmatmul.f32.gmra.mxu0 %v6916_v19  ;;  %4754 = vmatmul.f32.vlgmr.msra.gmra.mxu1 %v6884_v4  ;;  %v3978_v29 = vpop.f32.mrf.mxu0  ;;  %v4032_v43 = vadd.f32 %v4031_v41, %v3971_v27  ;;  %v4074_v25 = vpop.f32.mrf.mxu2  ;;  %v4838_v58 = vsub.f32 %v4836_v47, %v4837_v52 }
 0x3b3   : > { %4936 = vmatpush.msrb.mxu1 %v7183_v33  ;;  %4787 = vmatpush.msra.mxu2 %v7188_v7  ;;  %v4117_v16 = vpop.f32.mrf.mxu3  ;;  %v3979_v51 = vadd.f32 %v3978_v29, %v7214_v26 }
 0x3b4   : > { %4893 = vmatpush.msrb.mxu0 %v4842_v45  ;;  %v4075_v9 = vadd.f32 %v4074_v25, %v4032_v43  ;;  %v4839_v32 = vand.u32 4294901760, %v4838_v58 }
 0x3b5   : > { %4938 = vmatpush.msrb.mxu1 %v7188_v7  ;;  %4789 = vmatpush.msra.mxu2 %v7193_v2 }
 0x3b6   : > { %4896 = vmatpush.msrb.mxu0 %v4848_v31  ;;  %v4118_v35 = vadd.f32 %v4117_v16, %v4075_v9  ;;  %4840 = vmatpush.msra.mxu3 %v4839_v32  ;;  %v7257_v9 = vpop.permute.xlu2 %5080 }
 0x3b7   : > { %4981 = vmatpush.msrb.mxu2 %v4837_v52  ;;  %4940 = vmatpush.msrb.mxu1 %v7193_v2  ;;  %v7248_v52 = vpop.permute.xlu1 %5075 }
 0x3b8   : > { %4899 = vmatpush.msrb.mxu0 %v4854_v42  ;;  %4846 = vmatpush.msra.mxu3 %v4845_v24 }
 0x3b9   : > { %4684 = vmatmul.f32.gmra.mxu3 %v6992_v59  ;;  %v4035_v40 = vpop.f32.mrf.mxu1  ;;  %4795 = vmatmul.f32.vlgmr.msra.gmra.mxu2 %v6941_v12 }
 0x3ba   : > { %4725 = vmatmul.f32.gmra.mxu0 %v6951_v14  ;;  %4758 = vmatmul.f32.gmra.mxu1 %v6916_v19  ;;  %v3986_v57 = vpop.f32.mrf.mxu0  ;;  %v4036_v50 = vadd.f32 %v4035_v40, %v3979_v51  ;;  %v4079_v11 = vpop.f32.mrf.mxu2 }
 0x3bb   : > { %4985 = vmatpush.msrb.mxu2 %v4843_v56  ;;  %v4123_v15 = vpop.f32.mrf.mxu3  ;;  %4852 = vmatpush.msra.mxu3 %v4851_v53  ;;  %v3987_v12 = vadd.f32 %v3986_v57, %v7222_v23 }
 0x3bc   : > { %v4080_v36 = vadd.f32 %v4079_v11, %v4036_v50 }
 0x3bd   : > { %4989 = vmatpush.msrb.mxu2 %v4849_v34  ;;  %4858 = vmatpush.msra.mxu3 %v4857_v6 }
 0x3be   : > { %v4124_v48 = vadd.f32 %v4123_v15, %v4080_v36 }
 0x3bf   : > { %4993 = vmatpush.msrb.mxu2 %v4855_v39  ;;  %5024 = vmatpush.msrb.mxu3 %v7190_v0 }
 0x3c1   : > { %4860 = vmatmul.f32.vlgmr.msra.gmra.mxu3 %v6884_v4  ;;  %v4039_v46 = vpop.f32.mrf.mxu1  ;;  %4803 = vmatmul.f32.gmra.mxu2 %v6968_v44 }
 0x3c2   : > { %4729 = vmatmul.f32.gmra.mxu0 %v6973_v63  ;;  %4762 = vmatmul.f32.gmra.mxu1 %v6951_v14  ;;  %v4040_v10 = vadd.f32 %v4039_v46, %v3987_v12  ;;  %v4162_v55 = vpop.f32.mrf.mxu0  ;;  %v4084_v28 = vpop.f32.mrf.mxu2 }
 0x3c3   : > { %5026 = vmatpush.msrb.mxu3 %v7183_v33  ;;  %v4163_v49 = vadd.f32 %v4162_v55, %v7195_v21  ;;  %v4129_v20 = vpop.f32.mrf.mxu3 }
 0x3c4   : > { %v4085_v30 = vadd.f32 %v4084_v28, %v4040_v10 }
 0x3c5   : > { %5028 = vmatpush.msrb.mxu3 %v7188_v7 }
 0x3c6   : > { %v4130_v0 = vadd.f32 %v4129_v20, %v4085_v30 }
 0x3c7   : > { %5030 = vmatpush.msrb.mxu3 %v7193_v2 }
 0x3c9   : > { %4864 = vmatmul.f32.gmra.mxu3 %v6916_v19  ;;  %v4199_v44 = vpop.f32.mrf.mxu1  ;;  %4811 = vmatmul.f32.gmra.mxu2 %v6989_v61 }
 0x3ca   : > { %4766 = vmatmul.f32.gmra.mxu1 %v6973_v63  ;;  %4902 = vmatmul.f32.vlgmr.msrb.gmra.mxu0 %v6892_v62  ;;  %v4166_v33 = vpop.f32.mrf.mxu0  ;;  %v4200_v45 = vadd.f32 %v4199_v44, %v4163_v49 }
 0x3cb   : > { %v4167_v47 = vadd.f32 %v4166_v33, %v4118_v35 }
 0x3cc   : > { %5447 = vtanh.f32 %v4200_v45 }
 0x3d1   : > { %4868 = vmatmul.f32.gmra.mxu3 %v6951_v14  ;;  %4819 = vmatmul.f32.gmra.mxu2 %v7016_v5  ;;  %v7246_v5 = vpop.permute.xlu0 %5070 }
 0x3d2   : > { %4907 = vmatmul.f32.gmra.mxu0 %v6931_v1  ;;  %4944 = vmatmul.f32.vlgmr.msrb.gmra.mxu1 %v6909_v3  ;;  %v4170_v7 = vpop.f32.mrf.mxu0  ;;  %v5448_v61 = vpop.eup %5447 }
 0x3d3   : > { %v4171_v2 = vadd.f32 %v4170_v7, %v4124_v48  ;;  %v4203_v21 = vpop.f32.mrf.mxu1  ;;  %v5088_v41 = vmul.f32 %v5448_v61, %v7246_v5 }
 0x3d4   : > { %v4204_v31 = vadd.f32 %v4203_v21, %v4167_v47 }
 0x3d6   : > { %5449 = vtanh.f32 %v4204_v31 }
 0x3d9   : > { %4872 = vmatmul.f32.gmra.mxu3 %v6973_v63  ;;  %v4240_v62 = vpop.f32.mrf.mxu2  ;;  %4995 = vmatmul.f32.vlgmr.msrb.gmra.mxu2 %v6884_v4  ;;  %v7264_v40 = vpop.permute.xlu0 %5085 }
 0x3da   : > { %4912 = vmatmul.f32.gmra.mxu0 %v6963_v60  ;;  %4950 = vmatmul.f32.gmra.mxu1 %v6949_v38  ;;  %v4241_v38 = vadd.f32 %v4240_v62, %v7179_v18 }
 0x3db   : > { %v4174_v1 = vpop.f32.mrf.mxu0  ;;  %v4207_v3 = vpop.f32.mrf.mxu1 }
 0x3dc   : > { %v5450_v27 = vpop.eup %5449  ;;  %v4175_v42 = vadd.f32 %v4174_v1, %v4130_v0  ;;  %v4208_v56 = vadd.f32 %v4207_v3, %v4171_v2 }
 0x3dd   : > { %v5092_v29 = vmul.f32 %v5450_v27, %v7248_v52 }
 0x3de   : > { %5451 = vtanh.f32 %v4208_v56 }
 0x3df   : > { %v5104_v60 = vadd.f32 %v5092_v29, %v5088_v41 }
 0x3e1   : > { %5032 = vmatmul.f32.vlgmr.msrb.gmra.mxu3 %v6884_v4  ;;  %4999 = vmatmul.f32.gmra.mxu2 %v6916_v19 }
 0x3e2   : > { %4917 = vmatmul.f32.gmra.mxu0 %v6981_v17  ;;  %4956 = vmatmul.f32.gmra.mxu1 %v6971_v13  ;;  %v4248_v43 = vpop.f32.mrf.mxu2  ;;  %v4305_v25 = vpop.f32.mrf.mxu3 }
 0x3e3   : > { %v4306_v58 = vadd.f32 %v4305_v25, %v4241_v38  ;;  %v4211_v34 = vpop.f32.mrf.mxu1  ;;  %v4249_v13 = vadd.f32 %v4248_v43, %v7201_v8 }
 0x3e4   : > { %v5452_v16 = vpop.eup %5451  ;;  %v4212_v32 = vadd.f32 %v4211_v34, %v4175_v42 }
 0x3e5   : > { %v5096_v37 = vmul.f32 %v5452_v16, %v7257_v9  ;;  %v4347_v39 = vpop.f32.mrf.mxu0 }
 0x3e6   : > { %5453 = vtanh.f32 %v4212_v32  ;;  %v4348_v4 = vadd.f32 %v4347_v39, %v4306_v58 }
 0x3e7   : > { %v5105_v35 = vadd.f32 %v5104_v60, %v5096_v37 }
 0x3e9   : > { %5036 = vmatmul.f32.gmra.mxu3 %v6916_v19  ;;  %5003 = vmatmul.f32.gmra.mxu2 %v6951_v14 }
 0x3ea   : > { %4962 = vmatmul.f32.gmra.mxu1 %v6992_v59  ;;  %v4256_v17 = vpop.f32.mrf.mxu2  ;;  %v4309_v54 = vpop.f32.mrf.mxu3 }
 0x3eb   : > { %v4310_v51 = vadd.f32 %v4309_v54, %v4249_v13  ;;  %v4389_v24 = vpop.f32.mrf.mxu1  ;;  %v4257_v19 = vadd.f32 %v4256_v17, %v7214_v26 }
 0x3ec   : > { %v5454_v22 = vpop.eup %5453  ;;  %v4390_v57 = vadd.f32 %v4389_v24, %v4348_v4 }
 0x3ed   : > { %v5100_v50 = vmul.f32 %v5454_v22, %v7264_v40  ;;  %v4352_v53 = vpop.f32.mrf.mxu0 }
 0x3ee   : > { %v4353_v11 = vadd.f32 %v4352_v53, %v4310_v51 }
 0x3ef   : > { %v7267_v15 = vadd.f32 %v5105_v35, %v5100_v50 }
 0x3f1   : > { %5040 = vmatmul.f32.gmra.mxu3 %v6951_v14  ;;  %5007 = vmatmul.f32.gmra.mxu2 %v6973_v63 }
 0x3f2   : > { %v4264_v59 = vpop.f32.mrf.mxu2  ;;  %v4313_v36 = vpop.f32.mrf.mxu3 }
 0x3f3   : > { %v4314_v6 = vadd.f32 %v4313_v36, %v4257_v19  ;;  %v4395_v48 = vpop.f32.mrf.mxu1  ;;  %v4265_v55 = vadd.f32 %v4264_v59, %v7222_v23 }
 0x3f4   : > { %v4396_v12 = vadd.f32 %v4395_v48, %v4353_v11  ;;  %v5107_v11 = vrot.slane %v7267_v15, 4 }
 0x3f5   : > { %v4357_v46 = vpop.f32.mrf.mxu0 }
 0x3f6   : > { %v4358_v10 = vadd.f32 %v4357_v46, %v4314_v6  ;;  %v5108_v36 = vadd.f32 %v5107_v11, %v7267_v15 }
 0x3f9   : > { %5044 = vmatmul.f32.gmra.mxu3 %v6973_v63 }
 0x3fa   : > { %v4317_v28 = vpop.f32.mrf.mxu3  ;;  %v4440_v49 = vpop.f32.mrf.mxu2 }
 0x3fb   : > { %v4318_v20 = vadd.f32 %v4317_v28, %v4265_v55  ;;  %v4441_v30 = vadd.f32 %v4440_v49, %v4390_v57  ;;  %v4401_v14 = vpop.f32.mrf.mxu1 }
 0x3fc   : > { %v4402_v0 = vadd.f32 %v4401_v14, %v4358_v10 }
 0x3fd   : > { %v4362_v44 = vpop.f32.mrf.mxu0 }
 0x3fe   : > { %v4363_v33 = vadd.f32 %v4362_v44, %v4318_v20  ;;  %v5109_v20 = vrot.slane %v5108_v36, 2 }
 0x402   : > { %v4444_v45 = vpop.f32.mrf.mxu2  ;;  %v4477_v47 = vpop.f32.mrf.mxu3 }
 0x403   : > { %v4445_v7 = vadd.f32 %v4444_v45, %v4396_v12  ;;  %v4478_v2 = vadd.f32 %v4477_v47, %v4441_v30 }
 0x404   : > { %v4407_v21 = vpop.f32.mrf.mxu1 }
 0x405   : > { %v4408_v31 = vadd.f32 %v4407_v21, %v4363_v33  ;;  %5455 = vtanh.f32 %v4478_v2 }
 0x406   : > { %v4518_v62 = vpop.f32.mrf.mxu0 }
 0x407   : > { %v4519_v27 = vadd.f32 %v4518_v62, %v7179_v18  ;;  %v5144_v62 = vpop.permute.xlu1 %5143 }
 0x40b   : > { %v4448_v61 = vpop.f32.mrf.mxu2  ;;  %v4481_v63 = vpop.f32.mrf.mxu3 }
 0x40c   : > { %v4449_v1 = vadd.f32 %v4448_v61, %v4402_v0  ;;  %v4482_v3 = vadd.f32 %v4481_v63, %v4445_v7  ;;  %v5456_v29 = vpop.eup %5455  ;;  %v5110_v0 = vadd.f32 %v5109_v20, %v5108_v36 }
 0x40d   : > { %v5089_v34 = vmul.f32 %v5456_v29, %v7246_v5 }
 0x40e   : > { %5457 = vtanh.f32 %v4482_v3  ;;  %v4526_v42 = vpop.f32.mrf.mxu0  ;;  %v5111_v21 = vrot.slane %v5110_v0, 1  ;;  %v7287_v3 = vperm.slane %v5144_v62, 0 }
 0x40f   : > { %v4583_v56 = vpop.f32.mrf.mxu1  ;;  %v4527_v32 = vadd.f32 %v4526_v42, %v7201_v8 }
 0x410   : > { %v4584_v41 = vadd.f32 %v4583_v56, %v4519_v27  ;;  %v5112_v56 = vadd.f32 %v5111_v21, %v5110_v0 }
 0x413   : > { %v4452_v60 = vpop.f32.mrf.mxu2 }
 0x414   : > { %v4485_v38 = vpop.f32.mrf.mxu3  ;;  %v5458_v43 = vpop.eup %5457  ;;  %v4453_v25 = vadd.f32 %v4452_v60, %v4408_v31 }
 0x415   : > { %v4486_v58 = vadd.f32 %v4485_v38, %v4449_v1  ;;  %v5093_v16 = vmul.f32 %v5458_v43, %v7248_v52 }
 0x417   : > { %5459 = vtanh.f32 %v4486_v58  ;;  %v4534_v37 = vpop.f32.mrf.mxu0  ;;  %v4587_v39 = vpop.f32.mrf.mxu1  ;;  %v5113_v4 = vadd.f32 %v5093_v16, %v5089_v34  ;;  %v5147_v34 = vadd.f32 %v7287_v3, %v5112_v56 }
 0x418   : > { %v4588_v35 = vadd.f32 %v4587_v39, %v4527_v32  ;;  %v4535_v24 = vadd.f32 %v4534_v37, %v7214_v26 }
 0x41b   : > { %v4625_v22 = vpop.f32.mrf.mxu2 }
 0x41c   : > { %v4489_v13 = vpop.f32.mrf.mxu3  ;;  %v4626_v57 = vadd.f32 %v4625_v22, %v4584_v41 }
 0x41d   : > { %v5460_v17 = vpop.eup %5459  ;;  %v4490_v54 = vadd.f32 %v4489_v13, %v4453_v25 }
 0x41e   : > { %v5097_v51 = vmul.f32 %v5460_v17, %v7257_v9 }
 0x41f   : > { %5461 = vtanh.f32 %v4490_v54  ;;  %v7280_v50 = vpop.f32.mrf.mxu0  ;;  %v4591_v53 = vpop.f32.mrf.mxu1 }
 0x420   : > { %v5114_v19 = vadd.f32 %v5113_v4, %v5097_v51  ;;  %v4592_v59 = vadd.f32 %v4591_v53, %v4535_v24 }
 0x423   : > { %v4630_v10 = vpop.f32.mrf.mxu2 }
 0x424   : > { %v4667_v6 = vpop.f32.mrf.mxu3  ;;  %v4631_v55 = vadd.f32 %v4630_v10, %v4588_v35 }
 0x425   : > { %v5462_v48 = vpop.eup %5461  ;;  %v4668_v12 = vadd.f32 %v4667_v6, %v4626_v57 }
 0x426   : > { %v5101_v46 = vmul.f32 %v5462_v48, %v7264_v40 }
 0x427   : > { %v7285_v28 = vpop.f32.mrf.mxu1  ;;  %v4718_v49 = vpop.f32.mrf.mxu0 }
 0x428   : > { %v5115_v30 = vadd.f32 %v5114_v19, %v5101_v46  ;;  %v4719_v63 = vadd.f32 %v4718_v49, %v4668_v12 }
 0x42a   : > { %v5116_v14 = vrot.slane %v5115_v30, 4 }
 0x42b   : > { %v4635_v7 = vpop.f32.mrf.mxu2 }
 0x42c   : > { %v5117_v44 = vadd.f32 %v5116_v14, %v5115_v30  ;;  %v4673_v33 = vpop.f32.mrf.mxu3  ;;  %v4636_v15 = vadd.f32 %v4635_v7, %v4592_v59  ;;  %v4543_v30 = vadd.f32 %v7280_v50, %v7222_v23 }
 0x42d   : > { %v4674_v45 = vadd.f32 %v4673_v33, %v4631_v55 }
 0x42e   : > { %v5118_v47 = vrot.slane %v5117_v44, 2  ;;  %v4596_v0 = vadd.f32 %v7285_v28, %v4543_v30 }
 0x42f   : > { %v4755_v2 = vpop.f32.mrf.mxu1  ;;  %v4722_v61 = vpop.f32.mrf.mxu0 }
 0x430   : > { %v5119_v31 = vadd.f32 %v5118_v47, %v5117_v44  ;;  %v4756_v27 = vadd.f32 %v4755_v2, %v4719_v63  ;;  %v4723_v60 = vadd.f32 %v4722_v61, %v4674_v45 }
 0x432   : > { %v5120_v1 = vrot.slane %v5119_v31, 1  ;;  %5463 = vtanh.f32 %v4756_v27 }
 0x434   : > { %v4679_v42 = vpop.f32.mrf.mxu3  ;;  %v5121_v41 = vadd.f32 %v5120_v1, %v5119_v31  ;;  %v4640_v38 = vpop.f32.mrf.mxu2 }
 0x435   : > { %v4680_v29 = vadd.f32 %v4679_v42, %v4636_v15  ;;  %v4641_v33 = vadd.f32 %v4640_v38, %v4596_v0 }
 0x436   : > { %v5148_v43 = vadd.f32 %v7287_v3, %v5121_v41 }
 0x437   : > { %v4759_v25 = vpop.f32.mrf.mxu1  ;;  %v4726_v37 = vpop.f32.mrf.mxu0 }
 0x438   : > { %v4760_v58 = vadd.f32 %v4759_v25, %v4723_v60  ;;  %v5155_v16 = vrot.slane %v5148_v43, 7  ;;  %v5464_v4 = vpop.eup %5463  ;;  %v4727_v35 = vadd.f32 %v4726_v37, %v4680_v29 }
 0x439   : > { %v5090_v24 = vmul.f32 %v5464_v4, %v7246_v5 }
 0x43a   : > { %5465 = vtanh.f32 %v4760_v58  ;;  %v7291_v32 = vsel %vm5158_vm1, %v5147_v34, %v5155_v16 }
 0x43c   : > { %v4685_v39 = vpop.f32.mrf.mxu3  ;;  %v4796_v13 = vpop.f32.mrf.mxu2 }
 0x43d   : > { %v4686_v47 = vadd.f32 %v4685_v39, %v4641_v33  ;;  %v4797_v61 = vadd.f32 %v4796_v13, %v7179_v18 }
 0x43f   : > { %v4763_v17 = vpop.f32.mrf.mxu1  ;;  %v4730_v6 = vpop.f32.mrf.mxu0 }
 0x440   : > { %v5466_v54 = vpop.eup %5465  ;;  %v4764_v51 = vadd.f32 %v4763_v17, %v4727_v35  ;;  %v4731_v2 = vadd.f32 %v4730_v6, %v4686_v47 }
 0x441   : > { %v5094_v22 = vmul.f32 %v5466_v54, %v7248_v52 }
 0x442   : > { %5467 = vtanh.f32 %v4764_v51 }
 0x443   : > { %v5122_v57 = vadd.f32 %v5094_v22, %v5090_v24 }
 0x444   : > { %v4861_v53 = vpop.f32.mrf.mxu3  ;;  %v4804_v11 = vpop.f32.mrf.mxu2 }
 0x445   : > { %v4805_v31 = vadd.f32 %v4804_v11, %v7201_v8  ;;  %v4862_v50 = vadd.f32 %v4861_v53, %v4797_v61 }
 0x447   : > { %v4767_v12 = vpop.f32.mrf.mxu1  ;;  %v4903_v55 = vpop.f32.mrf.mxu0 }
 0x448   : > { %v5468_v19 = vpop.eup %5467  ;;  %v4768_v62 = vadd.f32 %v4767_v12, %v4731_v2  ;;  %v4904_v29 = vadd.f32 %v4903_v55, %v4862_v50 }
 0x449   : > { %v5098_v59 = vmul.f32 %v5468_v19, %v7257_v9 }
 0x44a   : > { %5469 = vtanh.f32 %v4768_v62 }
 0x44b   : > { %v5123_v36 = vadd.f32 %v5122_v57, %v5098_v59 }
 0x44c   : > { %v4865_v48 = vpop.f32.mrf.mxu3  ;;  %v4812_v46 = vpop.f32.mrf.mxu2 }
 0x44d   : > { %v4813_v1 = vadd.f32 %v4812_v46, %v7214_v26  ;;  %v4866_v63 = vadd.f32 %v4865_v48, %v4805_v31  ;;  %v5165_v31 = vlaneseq }
 0x44f   : > { %v4945_v20 = vpop.f32.mrf.mxu1  ;;  %v4908_v45 = vpop.f32.mrf.mxu0  ;;  %vm5167_vm4 = vcmp.lt.s32.totalorder %v5165_v31, 512 }
 0x450   : > { %v4909_v41 = vadd.f32 %v4908_v45, %v4866_v63  ;;  %v4946_v25 = vadd.f32 %v4945_v20, %v4904_v29  ;;  %v5470_v58 = vpop.eup %5469 }
 0x451   : > { %v5102_v4 = vmul.f32 %v5470_v58, %v7264_v40 }
 0x453   : > { %v5124_v22 = vadd.f32 %v5123_v36, %v5102_v4 }
 0x454   : > { %v4869_v10 = vpop.f32.mrf.mxu3  ;;  %v4820_v49 = vpop.f32.mrf.mxu2 }
 0x455   : > { %v4870_v28 = vadd.f32 %v4869_v10, %v4813_v1  ;;  %v4821_v8 = vadd.f32 %v4820_v49, %v7222_v23  ;;  %v5125_v11 = vrot.slane %v5124_v22, 4 }
 0x457   : > { %v4951_v7 = vpop.f32.mrf.mxu1  ;;  %v4913_v27 = vpop.f32.mrf.mxu0  ;;  %v5126_v46 = vadd.f32 %v5125_v11, %v5124_v22 }
 0x458   : > { %v4914_v38 = vadd.f32 %v4913_v27, %v4870_v28  ;;  %v4952_v43 = vadd.f32 %v4951_v7, %v4909_v41 }
 0x459   : > { %v5127_v49 = vrot.slane %v5126_v46, 2 }
 0x45c   : > { %v4873_v14 = vpop.f32.mrf.mxu3  ;;  %v4996_v44 = vpop.f32.mrf.mxu2 }
 0x45d   : > { %v4997_v16 = vadd.f32 %v4996_v44, %v4946_v25  ;;  %v4874_v26 = vadd.f32 %v4873_v14, %v4821_v8  ;;  %v5128_v44 = vadd.f32 %v5127_v49, %v5126_v46 }
 0x45f   : > { %v4957_v42 = vpop.f32.mrf.mxu1  ;;  %v4918_v35 = vpop.f32.mrf.mxu0  ;;  %v5129_v47 = vrot.slane %v5128_v44, 1 }
 0x460   : > { %v4958_v34 = vadd.f32 %v4957_v42, %v4914_v38  ;;  %v4919_v24 = vadd.f32 %v4918_v35, %v4874_v26 }
 0x464   : > { %v5033_v15 = vpop.f32.mrf.mxu3  ;;  %v5000_v21 = vpop.f32.mrf.mxu2 }
 0x465   : > { %v5001_v18 = vadd.f32 %v5000_v21, %v4952_v43  ;;  %v5034_v13 = vadd.f32 %v5033_v15, %v4997_v16 }
 0x467   : > { %v4963_v51 = vpop.f32.mrf.mxu1 }
 0x468   : > { %v4964_v53 = vadd.f32 %v4963_v51, %v4919_v24 }
 0x46c   : > { %v5037_v56 = vpop.f32.mrf.mxu3  ;;  %v5004_v60 = vpop.f32.mrf.mxu2 }
 0x46d   : > { %v5005_v37 = vadd.f32 %v5004_v60, %v4958_v34  ;;  %v5038_v39 = vadd.f32 %v5037_v56, %v5001_v18 }
 0x46f   : > { %5471 = vtanh.f32 %v5038_v39 }
 0x470   : > { %5473 = vtanh.f32 %v5034_v13 }
 0x474   : > { %v5041_v17 = vpop.f32.mrf.mxu3  ;;  %v5008_v57 = vpop.f32.mrf.mxu2 }
 0x475   : > { %v5042_v54 = vadd.f32 %v5041_v17, %v5005_v37  ;;  %v5009_v23 = vadd.f32 %v5008_v57, %v4964_v53  ;;  %v5472_v59 = vpop.eup %5471 }
 0x476   : > { %v5474_v48 = vpop.eup %5473  ;;  %v5095_v10 = vmul.f32 %v5472_v59, %v7248_v52  ;;  %v5130_v52 = vadd.f32 %v5129_v47, %v5128_v44 }
 0x477   : > { %5475 = vtanh.f32 %v5042_v54  ;;  %v5091_v55 = vmul.f32 %v5474_v48, %v7246_v5 }
 0x479   : > { %v5131_v20 = vadd.f32 %v5095_v10, %v5091_v55 }
 0x47c   : > { %v5045_v19 = vpop.f32.mrf.mxu3 }
 0x47d   : > { %v5046_v6 = vadd.f32 %v5045_v19, %v5009_v23  ;;  %v5476_v12 = vpop.eup %5475 }
 0x47e   : > { %v5099_v36 = vmul.f32 %v5476_v12, %v7257_v9  ;;  %v5149_v9 = vadd.f32 %v7287_v3, %v5130_v52 }
 0x47f   : > { %5477 = vtanh.f32 %v5046_v6 }
 0x480   : > { %v5132_v14 = vadd.f32 %v5131_v20, %v5099_v36  ;;  %v5156_v62 = vrot.slane %v5149_v9, 6 }
 0x485   : > { %v5478_v30 = vpop.eup %5477 }
 0x486   : > { %v5103_v0 = vmul.f32 %v5478_v30, %v7264_v40 }
 0x488   : > { %v5133_v33 = vadd.f32 %v5132_v14, %v5103_v0 }
 0x48a   : > { %v5134_v45 = vrot.slane %v5133_v33, 4 }
 0x48c   : > { %v5135_v7 = vadd.f32 %v5134_v45, %v5133_v33 }
 0x48e   : > { %v5136_v15 = vrot.slane %v5135_v7, 2 }
 0x490   : > { %v5137_v2 = vadd.f32 %v5136_v15, %v5135_v7 }
 0x492   : > { %v5138_v5 = vrot.slane %v5137_v2, 1 }
 0x494   : > { %v5139_v21 = vadd.f32 %v5138_v5, %v5137_v2 }
 0x496   : > { %v5150_v40 = vadd.f32 %v7287_v3, %v5139_v21 }
 0x498   : > { %v5157_v61 = vrot.slane %v5150_v40, 5 }
 0x49a   : > { %v5161_v1 = vsel %vm5160_vm2, %v5156_v62, %v5157_v61 }
 0x49b   : > { %v5163_v63 = vsel %vm5162_vm3, %v7291_v32, %v5161_v1 }
 0x49c   : > { %5169 = vst.msk [vmem:[%s272_s21] sm:$0xf] %vm5167_vm4, %v5163_v63 }
 0x49d   : > { %5506 = shalt.err (!%p5503_p3)
}
 0x49e   : > { %5276 = dma.vmem_to_hbm [thread:$0]  (%p5624_p5), %s5184_s22, 64, %s5186_s23, %s5171_s24  }
 0x49f PF: > { %p5282_p4 = scmp.ge.s32.totalorder %s5541_s29, 2  ;;  %s5197_s16 = sand.u32 1, %s5529_s26  }
 0x4a0   : > { %s5198_s17 = scalar_lea.sflag [#allocation4], %s5197_s16 }
 0x4a1   : > { %p5279_p7 = pnand %p5282_p4, %p5628_p6 }
 0x4a3   : > { %p5280_p8 = pneg %p5279_p7 }
 0x4a5   : > { %5524 = dma.done.wait (%p5280_p8), %s5198_s17, 64  }
 0x4a6   : > { %5526 = vsyncadd (%p5280_p8), %s5198_s17, 4294967232  ;;  %p19_p9 = scmp.ge.s32.totalorder %s5610_s8, 4   ;;  %s7353_s26 = smov %s5533_s27 }
 0x4a7   : > { %s7354_s27 = smov %s5537_s28  ;;  %s7355_s28 = smov %s5622_s11 }
 0x4a8   : > { %s7356_s29 = smov %s5610_s8  ;;  %21 = sbr.rel (!%p19_p9) target bundleno = 6 (0x6), region = 89 }
 0x4ad   :  { %5204 = vsyncpa [#allocation4], 1 }
 0x4ae   :  { %5206 = vsyncpa [#allocation4 + $0x1], 1 }

</bundles_post_ra>
